<compile_context>
chip_gen: v7x
topology: tpu7x:2x2x1
jax: 0.10.0
libtpu: 0.0.40
codegen_flags: <defaults>
</compile_context>

<pallas_src>
from functools import partial

import jax
import jax.numpy as jnp
from jax.experimental import pallas as pl
from jax.experimental.pallas import tpu as pltpu


def _round_up(a: int, b: int) -> int:
    return ((a + b - 1) // b) * b


def _make_conv_kernel(C, HH, WW, HOUT, WOUT, stride, wout_pad):
    """Builds the per-image fused im2col + matmul kernel (all sizes static)."""

    def kernel(x_ref, w_ref, b_ref, o_ref, p_ref):
        # x_ref: (1, H, C, W)            bf16  -- one image, H-major layout
        # w_ref: (F, K)                  bf16  -- K ordered (kh, kw, c)
        # b_ref: (F, 1)                  f32
        # o_ref: (1, F, HOUT*wout_pad)   f32   -- lane-dense (multiple of 128)
        # p_ref: (K, HOUT*wout_pad)      f32   -- fused im2col scratch in VMEM
        p_ref[...] = jnp.zeros_like(p_ref)

        # Assemble the patch matrix in VMEM.  All offsets are static; lane
        # offsets (i * wout_pad) are 128-aligned.
        # TODO(synk): for large images, tile HOUT through the grid instead of
        # fully unrolling it and holding the whole per-image patch matrix.
        for i in range(HOUT):
            for kh in range(HH):
                row = x_ref[0, i * stride + kh, :, :]          # [C, W]
                for kw in range(WW):
                    t = kh * WW + kw
                    if stride == 1:
                        tap = row[:, kw:kw + WOUT]
                    else:
                        tap = row[:, kw:kw + (WOUT - 1) * stride + 1:stride]
                    p_ref[t * C:(t + 1) * C,
                          i * wout_pad:i * wout_pad + WOUT] = tap.astype(p_ref.dtype)

        # One lane-dense MXU matmul per image: [F, K] @ [K, HOUT*wout_pad].
        acc = jnp.dot(w_ref[...], p_ref[...].astype(w_ref.dtype),
                      preferred_element_type=jnp.float32)
        o_ref[0] = acc + b_ref[...]                            # bias add in f32

    return kernel


@partial(jax.jit, static_argnames=("stride", "padding", "compute_dtype"))
def conv2d_pallas(x, weight, bias, stride=1, padding=0,
                  compute_dtype=jnp.bfloat16):
    """Reproduces _Conv._conv2d (padding == 0 path) on TPU."""
    N, C, H, W = x.shape
    F_, C_w, HH, WW = weight.shape
    assert C_w == C, "groups != 1 not supported by the reference forward"
    if padding != 0:
        # TODO(synk): reference _conv2d pads only H (F.pad(x, (0,0,p,p))) yet
        # sizes WOUT with 2*padding, so padding > 0 is ill-defined there; we
        # implement only the well-defined padding == 0 path.
        raise NotImplementedError("padding != 0 is ill-defined in the reference module")

    HOUT = 1 + (H - HH) // stride
    WOUT = 1 + (W - WW) // stride
    K = C * HH * WW
    WOUT_PAD = _round_up(WOUT, 128)          # lane-dense output rows
    M_PAD = HOUT * WOUT_PAD

    # Tiny layout-only transforms (no im2col materialization in HBM).
    x_hcw = jnp.transpose(x, (0, 2, 1, 3)).astype(compute_dtype)            # [N, H, C, W]
    w_mat = jnp.transpose(weight, (0, 2, 3, 1)).reshape(F_, K).astype(compute_dtype)  # [F, K]
    b_col = bias.reshape(F_, 1).astype(jnp.float32)                         # [F, 1]

    kernel = _make_conv_kernel(C, HH, WW, HOUT, WOUT, stride, WOUT_PAD)

    # Explicit VMEM budget (double-buffered x/out blocks + resident w/b + scratch).
    itm = jnp.dtype(compute_dtype).itemsize
    x_blk_bytes = H * C * W * itm
    out_blk_bytes = F_ * M_PAD * 4
    p_bytes = K * M_PAD * 4
    vmem_bytes = 2 * (x_blk_bytes + out_blk_bytes) + F_ * K * itm + F_ * 4 + p_bytes
    vmem_limit = int(min(max(2 * vmem_bytes, 16 * 1024 * 1024), 48 * 1024 * 1024))

    cost = pl.CostEstimate(
        flops=2 * N * HOUT * WOUT * K * F_,
        transcendentals=0,
        bytes_accessed=(N * H * C * W * itm) + (F_ * K * itm) + (F_ * 4)
        + (N * F_ * M_PAD * 4),
    )

    out_p = pl.pallas_call(
        kernel,
        out_shape=jax.ShapeDtypeStruct((N, F_, M_PAD), jnp.float32),
        grid_spec=pltpu.PrefetchScalarGridSpec(
            num_scalar_prefetch=0,
            grid=(N,),
            in_specs=[
                pl.BlockSpec((1, H, C, W), lambda n: (n, 0, 0, 0)),  # one image
                pl.BlockSpec((F_, K), lambda n: (0, 0)),             # resident weights
                pl.BlockSpec((F_, 1), lambda n: (0, 0)),             # resident bias
            ],
            out_specs=pl.BlockSpec((1, F_, M_PAD), lambda n: (n, 0, 0)),
            scratch_shapes=[pltpu.VMEM((K, M_PAD), jnp.float32)],
        ),
        compiler_params=pltpu.CompilerParams(
            dimension_semantics=("parallel",),
            vmem_limit_bytes=vmem_limit,
        ),
        cost_estimate=cost,
    )(x_hcw, w_mat, b_col)

    # Output is already F-major (NCHW); just drop the lane padding.
    out = out_p.reshape(N, F_, HOUT, WOUT_PAD)[:, :, :, :WOUT]
    return out


if __name__ == "__main__":
    key = jax.random.PRNGKey(0)
    k_x, k_w, k_b = jax.random.split(key, 3)

    # Module config: Conv2d(in_channels=4, out_channels=8, kernel_size=3,
    #                       stride=1, padding=0, bias=True)
    N, C, H, W = 2, 4, 16, 16
    F_, KS = 8, 3

    x = jax.random.normal(k_x, (N, C, H, W), dtype=jnp.float32)
    weight = jax.random.normal(k_w, (F_, C, KS, KS), dtype=jnp.float32)
    bias = jax.random.normal(k_b, (F_,), dtype=jnp.float32)

    out = conv2d_pallas(x, weight, bias, stride=1, padding=0)
    out = jax.block_until_ready(out)

    # Reference: same bf16-rounded operands, f32 accumulation (matches the
    # kernel's bf16-MXU / f32-accumulate math).
    x_r = x.astype(jnp.bfloat16).astype(jnp.float32)
    w_r = weight.astype(jnp.bfloat16).astype(jnp.float32)
    ref = jax.lax.conv_general_dilated(
        x_r, w_r, window_strides=(1, 1), padding="VALID",
        dimension_numbers=("NCHW", "OIHW", "NCHW"),
        precision=jax.lax.Precision.HIGHEST,
    ) + bias[None, :, None, None]

    assert out.shape == (N, F_, H - KS + 1, W - KS + 1), out.shape
    assert jnp.allclose(out, ref, atol=1e-2, rtol=1e-2), "mismatch vs reference"

    print("KERNEL_OK")
</pallas_src>

<mosaic_0001>
module attributes {stable_mosaic.version = 11 : i64} {
  func.func @kernel(%arg0: i32, %arg1: memref<1x16x4x16xbf16, #tpu.memory_space<vmem>>, %arg2: memref<8x36xbf16, #tpu.memory_space<vmem>>, %arg3: memref<8x1xf32, #tpu.memory_space<vmem>>, %arg4: memref<1x8x1792xf32, #tpu.memory_space<vmem>>, %arg5: memref<36x1792xf32, #tpu.memory_space<vmem>>) attributes {dimension_semantics = [#tpu.dimension_semantics<parallel>], iteration_bounds = array<i64: 2>, scalar_prefetch = 0 : i64, scratch_operands = 1 : i64, tpu.core_type = #tpu.core_type<tc>, window_params = [{transform_indices = @transform_0, window_bounds = array<i64: 1, 16, 4, 16>}, {pipeline_mode = #tpu.pipeline_mode<synchronous>, transform_indices = @transform_1, window_bounds = array<i64: 8, 36>}, {pipeline_mode = #tpu.pipeline_mode<synchronous>, transform_indices = @transform_2, window_bounds = array<i64: 8, 1>}, {transform_indices = @transform_3, window_bounds = array<i64: 1, 8, 1792>}]} {
    %cst = arith.constant 0.000000e+00 : f32
    %0 = vector.broadcast %cst : f32 to vector<36x1792xf32>
    %c0 = arith.constant 0 : index
    %c0_0 = arith.constant 0 : index
    %1 = vector.load %arg5[%c0, %c0_0] : memref<36x1792xf32, #tpu.memory_space<vmem>>, vector<36x1792xf32>
    tpu.vector_store %arg5[%c0, %c0_0], %0 {strides = array<i32>} : memref<36x1792xf32, #tpu.memory_space<vmem>>, vector<36x1792xf32>,
    %c0_1 = arith.constant 0 : index
    %c0_2 = arith.constant 0 : index
    %c0_3 = arith.constant 0 : index
    %c0_4 = arith.constant 0 : index
    %2 = vector.load %arg1[%c0_1, %c0_2, %c0_3, %c0_4] : memref<1x16x4x16xbf16, #tpu.memory_space<vmem>>, vector<1x1x4x16xbf16>
    %3 = vector.shape_cast %2 : vector<1x1x4x16xbf16> to vector<4x16xbf16>
    %4 = vector.extract_strided_slice %3 {offsets = [0, 0], sizes = [4, 14], strides = [1, 1]} : vector<4x16xbf16> to vector<4x14xbf16>
    %5 = arith.extf %4 : vector<4x14xbf16> to vector<4x14xf32>
    %c0_5 = arith.constant 0 : index
    %c0_6 = arith.constant 0 : index
    %6 = vector.load %arg5[%c0_5, %c0_6] : memref<36x1792xf32, #tpu.memory_space<vmem>>, vector<4x14xf32>
    tpu.vector_store %arg5[%c0_5, %c0_6], %5 {strides = array<i32>} : memref<36x1792xf32, #tpu.memory_space<vmem>>, vector<4x14xf32>,
    %7 = vector.extract_strided_slice %3 {offsets = [0, 1], sizes = [4, 14], strides = [1, 1]} : vector<4x16xbf16> to vector<4x14xbf16>
    %8 = arith.extf %7 : vector<4x14xbf16> to vector<4x14xf32>
    %c4 = arith.constant 4 : index
    %c0_7 = arith.constant 0 : index
    %9 = vector.load %arg5[%c4, %c0_7] : memref<36x1792xf32, #tpu.memory_space<vmem>>, vector<4x14xf32>
    tpu.vector_store %arg5[%c4, %c0_7], %8 {strides = array<i32>} : memref<36x1792xf32, #tpu.memory_space<vmem>>, vector<4x14xf32>,
    %10 = vector.extract_strided_slice %3 {offsets = [0, 2], sizes = [4, 14], strides = [1, 1]} : vector<4x16xbf16> to vector<4x14xbf16>
    %11 = arith.extf %10 : vector<4x14xbf16> to vector<4x14xf32>
    %c8 = arith.constant 8 : index
    %c0_8 = arith.constant 0 : index
    %12 = vector.load %arg5[%c8, %c0_8] : memref<36x1792xf32, #tpu.memory_space<vmem>>, vector<4x14xf32>
    tpu.vector_store %arg5[%c8, %c0_8], %11 {strides = array<i32>} : memref<36x1792xf32, #tpu.memory_space<vmem>>, vector<4x14xf32>,
    %c0_9 = arith.constant 0 : index
    %c1 = arith.constant 1 : index
    %c0_10 = arith.constant 0 : index
    %c0_11 = arith.constant 0 : index
    %13 = vector.load %arg1[%c0_9, %c1, %c0_10, %c0_11] : memref<1x16x4x16xbf16, #tpu.memory_space<vmem>>, vector<1x1x4x16xbf16>
    %14 = vector.shape_cast %13 : vector<1x1x4x16xbf16> to vector<4x16xbf16>
    %15 = vector.extract_strided_slice %14 {offsets = [0, 0], sizes = [4, 14], strides = [1, 1]} : vector<4x16xbf16> to vector<4x14xbf16>
    %16 = arith.extf %15 : vector<4x14xbf16> to vector<4x14xf32>
    %c12 = arith.constant 12 : index
    %c0_12 = arith.constant 0 : index
    %17 = vector.load %arg5[%c12, %c0_12] : memref<36x1792xf32, #tpu.memory_space<vmem>>, vector<4x14xf32>
    tpu.vector_store %arg5[%c12, %c0_12], %16 {strides = array<i32>} : memref<36x1792xf32, #tpu.memory_space<vmem>>, vector<4x14xf32>,
    %18 = vector.extract_strided_slice %14 {offsets = [0, 1], sizes = [4, 14], strides = [1, 1]} : vector<4x16xbf16> to vector<4x14xbf16>
    %19 = arith.extf %18 : vector<4x14xbf16> to vector<4x14xf32>
    %c16 = arith.constant 16 : index
    %c0_13 = arith.constant 0 : index
    %20 = vector.load %arg5[%c16, %c0_13] : memref<36x1792xf32, #tpu.memory_space<vmem>>, vector<4x14xf32>
    tpu.vector_store %arg5[%c16, %c0_13], %19 {strides = array<i32>} : memref<36x1792xf32, #tpu.memory_space<vmem>>, vector<4x14xf32>,
    %21 = vector.extract_strided_slice %14 {offsets = [0, 2], sizes = [4, 14], strides = [1, 1]} : vector<4x16xbf16> to vector<4x14xbf16>
    %22 = arith.extf %21 : vector<4x14xbf16> to vector<4x14xf32>
    %c20 = arith.constant 20 : index
    %c0_14 = arith.constant 0 : index
    %23 = vector.load %arg5[%c20, %c0_14] : memref<36x1792xf32, #tpu.memory_space<vmem>>, vector<4x14xf32>
    tpu.vector_store %arg5[%c20, %c0_14], %22 {strides = array<i32>} : memref<36x1792xf32, #tpu.memory_space<vmem>>, vector<4x14xf32>,
    %c0_15 = arith.constant 0 : index
    %c2 = arith.constant 2 : index
    %c0_16 = arith.constant 0 : index
    %c0_17 = arith.constant 0 : index
    %24 = vector.load %arg1[%c0_15, %c2, %c0_16, %c0_17] : memref<1x16x4x16xbf16, #tpu.memory_space<vmem>>, vector<1x1x4x16xbf16>
    %25 = vector.shape_cast %24 : vector<1x1x4x16xbf16> to vector<4x16xbf16>
    %26 = vector.extract_strided_slice %25 {offsets = [0, 0], sizes = [4, 14], strides = [1, 1]} : vector<4x16xbf16> to vector<4x14xbf16>
    %27 = arith.extf %26 : vector<4x14xbf16> to vector<4x14xf32>
    %c24 = arith.constant 24 : index
    %c0_18 = arith.constant 0 : index
    %28 = vector.load %arg5[%c24, %c0_18] : memref<36x1792xf32, #tpu.memory_space<vmem>>, vector<4x14xf32>
    tpu.vector_store %arg5[%c24, %c0_18], %27 {strides = array<i32>} : memref<36x1792xf32, #tpu.memory_space<vmem>>, vector<4x14xf32>,
    %29 = vector.extract_strided_slice %25 {offsets = [0, 1], sizes = [4, 14], strides = [1, 1]} : vector<4x16xbf16> to vector<4x14xbf16>
    %30 = arith.extf %29 : vector<4x14xbf16> to vector<4x14xf32>
    %c28 = arith.constant 28 : index
    %c0_19 = arith.constant 0 : index
    %31 = vector.load %arg5[%c28, %c0_19] : memref<36x1792xf32, #tpu.memory_space<vmem>>, vector<4x14xf32>
    tpu.vector_store %arg5[%c28, %c0_19], %30 {strides = array<i32>} : memref<36x1792xf32, #tpu.memory_space<vmem>>, vector<4x14xf32>,
    %32 = vector.extract_strided_slice %25 {offsets = [0, 2], sizes = [4, 14], strides = [1, 1]} : vector<4x16xbf16> to vector<4x14xbf16>
    %33 = arith.extf %32 : vector<4x14xbf16> to vector<4x14xf32>
    %c32 = arith.constant 32 : index
    %c0_20 = arith.constant 0 : index
    %34 = vector.load %arg5[%c32, %c0_20] : memref<36x1792xf32, #tpu.memory_space<vmem>>, vector<4x14xf32>
    tpu.vector_store %arg5[%c32, %c0_20], %33 {strides = array<i32>} : memref<36x1792xf32, #tpu.memory_space<vmem>>, vector<4x14xf32>,
    %c0_21 = arith.constant 0 : index
    %c1_22 = arith.constant 1 : index
    %c0_23 = arith.constant 0 : index
    %c0_24 = arith.constant 0 : index
    %35 = vector.load %arg1[%c0_21, %c1_22, %c0_23, %c0_24] : memref<1x16x4x16xbf16, #tpu.memory_space<vmem>>, vector<1x1x4x16xbf16>
    %36 = vector.shape_cast %35 : vector<1x1x4x16xbf16> to vector<4x16xbf16>
    %37 = vector.extract_strided_slice %36 {offsets = [0, 0], sizes = [4, 14], strides = [1, 1]} : vector<4x16xbf16> to vector<4x14xbf16>
    %38 = arith.extf %37 : vector<4x14xbf16> to vector<4x14xf32>
    %c0_25 = arith.constant 0 : index
    %c128 = arith.constant 128 : index
    %39 = vector.load %arg5[%c0_25, %c128] : memref<36x1792xf32, #tpu.memory_space<vmem>>, vector<4x14xf32>
    tpu.vector_store %arg5[%c0_25, %c128], %38 {strides = array<i32>} : memref<36x1792xf32, #tpu.memory_space<vmem>>, vector<4x14xf32>,
    %40 = vector.extract_strided_slice %36 {offsets = [0, 1], sizes = [4, 14], strides = [1, 1]} : vector<4x16xbf16> to vector<4x14xbf16>
    %41 = arith.extf %40 : vector<4x14xbf16> to vector<4x14xf32>
    %c4_26 = arith.constant 4 : index
    %c128_27 = arith.constant 128 : index
    %42 = vector.load %arg5[%c4_26, %c128_27] : memref<36x1792xf32, #tpu.memory_space<vmem>>, vector<4x14xf32>
    tpu.vector_store %arg5[%c4_26, %c128_27], %41 {strides = array<i32>} : memref<36x1792xf32, #tpu.memory_space<vmem>>, vector<4x14xf32>,
    %43 = vector.extract_strided_slice %36 {offsets = [0, 2], sizes = [4, 14], strides = [1, 1]} : vector<4x16xbf16> to vector<4x14xbf16>
    %44 = arith.extf %43 : vector<4x14xbf16> to vector<4x14xf32>
    %c8_28 = arith.constant 8 : index
    %c128_29 = arith.constant 128 : index
    %45 = vector.load %arg5[%c8_28, %c128_29] : memref<36x1792xf32, #tpu.memory_space<vmem>>, vector<4x14xf32>
    tpu.vector_store %arg5[%c8_28, %c128_29], %44 {strides = array<i32>} : memref<36x1792xf32, #tpu.memory_space<vmem>>, vector<4x14xf32>,
    %c0_30 = arith.constant 0 : index
    %c2_31 = arith.constant 2 : index
    %c0_32 = arith.constant 0 : index
    %c0_33 = arith.constant 0 : index
    %46 = vector.load %arg1[%c0_30, %c2_31, %c0_32, %c0_33] : memref<1x16x4x16xbf16, #tpu.memory_space<vmem>>, vector<1x1x4x16xbf16>
    %47 = vector.shape_cast %46 : vector<1x1x4x16xbf16> to vector<4x16xbf16>
    %48 = vector.extract_strided_slice %47 {offsets = [0, 0], sizes = [4, 14], strides = [1, 1]} : vector<4x16xbf16> to vector<4x14xbf16>
    %49 = arith.extf %48 : vector<4x14xbf16> to vector<4x14xf32>
    %c12_34 = arith.constant 12 : index
    %c128_35 = arith.constant 128 : index
    %50 = vector.load %arg5[%c12_34, %c128_35] : memref<36x1792xf32, #tpu.memory_space<vmem>>, vector<4x14xf32>
    tpu.vector_store %arg5[%c12_34, %c128_35], %49 {strides = array<i32>} : memref<36x1792xf32, #tpu.memory_space<vmem>>, vector<4x14xf32>,
    %51 = vector.extract_strided_slice %47 {offsets = [0, 1], sizes = [4, 14], strides = [1, 1]} : vector<4x16xbf16> to vector<4x14xbf16>
    %52 = arith.extf %51 : vector<4x14xbf16> to vector<4x14xf32>
    %c16_36 = arith.constant 16 : index
    %c128_37 = arith.constant 128 : index
    %53 = vector.load %arg5[%c16_36, %c128_37] : memref<36x1792xf32, #tpu.memory_space<vmem>>, vector<4x14xf32>
    tpu.vector_store %arg5[%c16_36, %c128_37], %52 {strides = array<i32>} : memref<36x1792xf32, #tpu.memory_space<vmem>>, vector<4x14xf32>,
    %54 = vector.extract_strided_slice %47 {offsets = [0, 2], sizes = [4, 14], strides = [1, 1]} : vector<4x16xbf16> to vector<4x14xbf16>
    %55 = arith.extf %54 : vector<4x14xbf16> to vector<4x14xf32>
    %c20_38 = arith.constant 20 : index
    %c128_39 = arith.constant 128 : index
    %56 = vector.load %arg5[%c20_38, %c128_39] : memref<36x1792xf32, #tpu.memory_space<vmem>>, vector<4x14xf32>
    tpu.vector_store %arg5[%c20_38, %c128_39], %55 {strides = array<i32>} : memref<36x1792xf32, #tpu.memory_space<vmem>>, vector<4x14xf32>,
    %c0_40 = arith.constant 0 : index
    %c3 = arith.constant 3 : index
    %c0_41 = arith.constant 0 : index
    %c0_42 = arith.constant 0 : index
    %57 = vector.load %arg1[%c0_40, %c3, %c0_41, %c0_42] : memref<1x16x4x16xbf16, #tpu.memory_space<vmem>>, vector<1x1x4x16xbf16>
    %58 = vector.shape_cast %57 : vector<1x1x4x16xbf16> to vector<4x16xbf16>
    %59 = vector.extract_strided_slice %58 {offsets = [0, 0], sizes = [4, 14], strides = [1, 1]} : vector<4x16xbf16> to vector<4x14xbf16>
    %60 = arith.extf %59 : vector<4x14xbf16> to vector<4x14xf32>
    %c24_43 = arith.constant 24 : index
    %c128_44 = arith.constant 128 : index
    %61 = vector.load %arg5[%c24_43, %c128_44] : memref<36x1792xf32, #tpu.memory_space<vmem>>, vector<4x14xf32>
    tpu.vector_store %arg5[%c24_43, %c128_44], %60 {strides = array<i32>} : memref<36x1792xf32, #tpu.memory_space<vmem>>, vector<4x14xf32>,
    %62 = vector.extract_strided_slice %58 {offsets = [0, 1], sizes = [4, 14], strides = [1, 1]} : vector<4x16xbf16> to vector<4x14xbf16>
    %63 = arith.extf %62 : vector<4x14xbf16> to vector<4x14xf32>
    %c28_45 = arith.constant 28 : index
    %c128_46 = arith.constant 128 : index
    %64 = vector.load %arg5[%c28_45, %c128_46] : memref<36x1792xf32, #tpu.memory_space<vmem>>, vector<4x14xf32>
    tpu.vector_store %arg5[%c28_45, %c128_46], %63 {strides = array<i32>} : memref<36x1792xf32, #tpu.memory_space<vmem>>, vector<4x14xf32>,
    %65 = vector.extract_strided_slice %58 {offsets = [0, 2], sizes = [4, 14], strides = [1, 1]} : vector<4x16xbf16> to vector<4x14xbf16>
    %66 = arith.extf %65 : vector<4x14xbf16> to vector<4x14xf32>
    %c32_47 = arith.constant 32 : index
    %c128_48 = arith.constant 128 : index
    %67 = vector.load %arg5[%c32_47, %c128_48] : memref<36x1792xf32, #tpu.memory_space<vmem>>, vector<4x14xf32>
    tpu.vector_store %arg5[%c32_47, %c128_48], %66 {strides = array<i32>} : memref<36x1792xf32, #tpu.memory_space<vmem>>, vector<4x14xf32>,
    %c0_49 = arith.constant 0 : index
    %c2_50 = arith.constant 2 : index
    %c0_51 = arith.constant 0 : index
    %c0_52 = arith.constant 0 : index
    %68 = vector.load %arg1[%c0_49, %c2_50, %c0_51, %c0_52] : memref<1x16x4x16xbf16, #tpu.memory_space<vmem>>, vector<1x1x4x16xbf16>
    %69 = vector.shape_cast %68 : vector<1x1x4x16xbf16> to vector<4x16xbf16>
    %70 = vector.extract_strided_slice %69 {offsets = [0, 0], sizes = [4, 14], strides = [1, 1]} : vector<4x16xbf16> to vector<4x14xbf16>
    %71 = arith.extf %70 : vector<4x14xbf16> to vector<4x14xf32>
    %c0_53 = arith.constant 0 : index
    %c256 = arith.constant 256 : index
    %72 = vector.load %arg5[%c0_53, %c256] : memref<36x1792xf32, #tpu.memory_space<vmem>>, vector<4x14xf32>
    tpu.vector_store %arg5[%c0_53, %c256], %71 {strides = array<i32>} : memref<36x1792xf32, #tpu.memory_space<vmem>>, vector<4x14xf32>,
    %73 = vector.extract_strided_slice %69 {offsets = [0, 1], sizes = [4, 14], strides = [1, 1]} : vector<4x16xbf16> to vector<4x14xbf16>
    %74 = arith.extf %73 : vector<4x14xbf16> to vector<4x14xf32>
    %c4_54 = arith.constant 4 : index
    %c256_55 = arith.constant 256 : index
    %75 = vector.load %arg5[%c4_54, %c256_55] : memref<36x1792xf32, #tpu.memory_space<vmem>>, vector<4x14xf32>
    tpu.vector_store %arg5[%c4_54, %c256_55], %74 {strides = array<i32>} : memref<36x1792xf32, #tpu.memory_space<vmem>>, vector<4x14xf32>,
    %76 = vector.extract_strided_slice %69 {offsets = [0, 2], sizes = [4, 14], strides = [1, 1]} : vector<4x16xbf16> to vector<4x14xbf16>
    %77 = arith.extf %76 : vector<4x14xbf16> to vector<4x14xf32>
    %c8_56 = arith.constant 8 : index
    %c256_57 = arith.constant 256 : index
    %78 = vector.load %arg5[%c8_56, %c256_57] : memref<36x1792xf32, #tpu.memory_space<vmem>>, vector<4x14xf32>
    tpu.vector_store %arg5[%c8_56, %c256_57], %77 {strides = array<i32>} : memref<36x1792xf32, #tpu.memory_space<vmem>>, vector<4x14xf32>,
    %c0_58 = arith.constant 0 : index
    %c3_59 = arith.constant 3 : index
    %c0_60 = arith.constant 0 : index
    %c0_61 = arith.constant 0 : index
    %79 = vector.load %arg1[%c0_58, %c3_59, %c0_60, %c0_61] : memref<1x16x4x16xbf16, #tpu.memory_space<vmem>>, vector<1x1x4x16xbf16>
    %80 = vector.shape_cast %79 : vector<1x1x4x16xbf16> to vector<4x16xbf16>
    %81 = vector.extract_strided_slice %80 {offsets = [0, 0], sizes = [4, 14], strides = [1, 1]} : vector<4x16xbf16> to vector<4x14xbf16>
    %82 = arith.extf %81 : vector<4x14xbf16> to vector<4x14xf32>
    %c12_62 = arith.constant 12 : index
    %c256_63 = arith.constant 256 : index
    %83 = vector.load %arg5[%c12_62, %c256_63] : memref<36x1792xf32, #tpu.memory_space<vmem>>, vector<4x14xf32>
    tpu.vector_store %arg5[%c12_62, %c256_63], %82 {strides = array<i32>} : memref<36x1792xf32, #tpu.memory_space<vmem>>, vector<4x14xf32>,
    %84 = vector.extract_strided_slice %80 {offsets = [0, 1], sizes = [4, 14], strides = [1, 1]} : vector<4x16xbf16> to vector<4x14xbf16>
    %85 = arith.extf %84 : vector<4x14xbf16> to vector<4x14xf32>
    %c16_64 = arith.constant 16 : index
    %c256_65 = arith.constant 256 : index
    %86 = vector.load %arg5[%c16_64, %c256_65] : memref<36x1792xf32, #tpu.memory_space<vmem>>, vector<4x14xf32>
    tpu.vector_store %arg5[%c16_64, %c256_65], %85 {strides = array<i32>} : memref<36x1792xf32, #tpu.memory_space<vmem>>, vector<4x14xf32>,
    %87 = vector.extract_strided_slice %80 {offsets = [0, 2], sizes = [4, 14], strides = [1, 1]} : vector<4x16xbf16> to vector<4x14xbf16>
    %88 = arith.extf %87 : vector<4x14xbf16> to vector<4x14xf32>
    %c20_66 = arith.constant 20 : index
    %c256_67 = arith.constant 256 : index
    %89 = vector.load %arg5[%c20_66, %c256_67] : memref<36x1792xf32, #tpu.memory_space<vmem>>, vector<4x14xf32>
    tpu.vector_store %arg5[%c20_66, %c256_67], %88 {strides = array<i32>} : memref<36x1792xf32, #tpu.memory_space<vmem>>, vector<4x14xf32>,
    %c0_68 = arith.constant 0 : index
    %c4_69 = arith.constant 4 : index
    %c0_70 = arith.constant 0 : index
    %c0_71 = arith.constant 0 : index
    %90 = vector.load %arg1[%c0_68, %c4_69, %c0_70, %c0_71] : memref<1x16x4x16xbf16, #tpu.memory_space<vmem>>, vector<1x1x4x16xbf16>
    %91 = vector.shape_cast %90 : vector<1x1x4x16xbf16> to vector<4x16xbf16>
    %92 = vector.extract_strided_slice %91 {offsets = [0, 0], sizes = [4, 14], strides = [1, 1]} : vector<4x16xbf16> to vector<4x14xbf16>
    %93 = arith.extf %92 : vector<4x14xbf16> to vector<4x14xf32>
    %c24_72 = arith.constant 24 : index
    %c256_73 = arith.constant 256 : index
    %94 = vector.load %arg5[%c24_72, %c256_73] : memref<36x1792xf32, #tpu.memory_space<vmem>>, vector<4x14xf32>
    tpu.vector_store %arg5[%c24_72, %c256_73], %93 {strides = array<i32>} : memref<36x1792xf32, #tpu.memory_space<vmem>>, vector<4x14xf32>,
    %95 = vector.extract_strided_slice %91 {offsets = [0, 1], sizes = [4, 14], strides = [1, 1]} : vector<4x16xbf16> to vector<4x14xbf16>
    %96 = arith.extf %95 : vector<4x14xbf16> to vector<4x14xf32>
    %c28_74 = arith.constant 28 : index
    %c256_75 = arith.constant 256 : index
    %97 = vector.load %arg5[%c28_74, %c256_75] : memref<36x1792xf32, #tpu.memory_space<vmem>>, vector<4x14xf32>
    tpu.vector_store %arg5[%c28_74, %c256_75], %96 {strides = array<i32>} : memref<36x1792xf32, #tpu.memory_space<vmem>>, vector<4x14xf32>,
    %98 = vector.extract_strided_slice %91 {offsets = [0, 2], sizes = [4, 14], strides = [1, 1]} : vector<4x16xbf16> to vector<4x14xbf16>
    %99 = arith.extf %98 : vector<4x14xbf16> to vector<4x14xf32>
    %c32_76 = arith.constant 32 : index
    %c256_77 = arith.constant 256 : index
    %100 = vector.load %arg5[%c32_76, %c256_77] : memref<36x1792xf32, #tpu.memory_space<vmem>>, vector<4x14xf32>
    tpu.vector_store %arg5[%c32_76, %c256_77], %99 {strides = array<i32>} : memref<36x1792xf32, #tpu.memory_space<vmem>>, vector<4x14xf32>,
    %c0_78 = arith.constant 0 : index
    %c3_79 = arith.constant 3 : index
    %c0_80 = arith.constant 0 : index
    %c0_81 = arith.constant 0 : index
    %101 = vector.load %arg1[%c0_78, %c3_79, %c0_80, %c0_81] : memref<1x16x4x16xbf16, #tpu.memory_space<vmem>>, vector<1x1x4x16xbf16>
    %102 = vector.shape_cast %101 : vector<1x1x4x16xbf16> to vector<4x16xbf16>
    %103 = vector.extract_strided_slice %102 {offsets = [0, 0], sizes = [4, 14], strides = [1, 1]} : vector<4x16xbf16> to vector<4x14xbf16>
    %104 = arith.extf %103 : vector<4x14xbf16> to vector<4x14xf32>
    %c0_82 = arith.constant 0 : index
    %c384 = arith.constant 384 : index
    %105 = vector.load %arg5[%c0_82, %c384] : memref<36x1792xf32, #tpu.memory_space<vmem>>, vector<4x14xf32>
    tpu.vector_store %arg5[%c0_82, %c384], %104 {strides = array<i32>} : memref<36x1792xf32, #tpu.memory_space<vmem>>, vector<4x14xf32>,
    %106 = vector.extract_strided_slice %102 {offsets = [0, 1], sizes = [4, 14], strides = [1, 1]} : vector<4x16xbf16> to vector<4x14xbf16>
    %107 = arith.extf %106 : vector<4x14xbf16> to vector<4x14xf32>
    %c4_83 = arith.constant 4 : index
    %c384_84 = arith.constant 384 : index
    %108 = vector.load %arg5[%c4_83, %c384_84] : memref<36x1792xf32, #tpu.memory_space<vmem>>, vector<4x14xf32>
    tpu.vector_store %arg5[%c4_83, %c384_84], %107 {strides = array<i32>} : memref<36x1792xf32, #tpu.memory_space<vmem>>, vector<4x14xf32>,
    %109 = vector.extract_strided_slice %102 {offsets = [0, 2], sizes = [4, 14], strides = [1, 1]} : vector<4x16xbf16> to vector<4x14xbf16>
    %110 = arith.extf %109 : vector<4x14xbf16> to vector<4x14xf32>
    %c8_85 = arith.constant 8 : index
    %c384_86 = arith.constant 384 : index
    %111 = vector.load %arg5[%c8_85, %c384_86] : memref<36x1792xf32, #tpu.memory_space<vmem>>, vector<4x14xf32>
    tpu.vector_store %arg5[%c8_85, %c384_86], %110 {strides = array<i32>} : memref<36x1792xf32, #tpu.memory_space<vmem>>, vector<4x14xf32>,
    %c0_87 = arith.constant 0 : index
    %c4_88 = arith.constant 4 : index
    %c0_89 = arith.constant 0 : index
    %c0_90 = arith.constant 0 : index
    %112 = vector.load %arg1[%c0_87, %c4_88, %c0_89, %c0_90] : memref<1x16x4x16xbf16, #tpu.memory_space<vmem>>, vector<1x1x4x16xbf16>
    %113 = vector.shape_cast %112 : vector<1x1x4x16xbf16> to vector<4x16xbf16>
    %114 = vector.extract_strided_slice %113 {offsets = [0, 0], sizes = [4, 14], strides = [1, 1]} : vector<4x16xbf16> to vector<4x14xbf16>
    %115 = arith.extf %114 : vector<4x14xbf16> to vector<4x14xf32>
    %c12_91 = arith.constant 12 : index
    %c384_92 = arith.constant 384 : index
    %116 = vector.load %arg5[%c12_91, %c384_92] : memref<36x1792xf32, #tpu.memory_space<vmem>>, vector<4x14xf32>
    tpu.vector_store %arg5[%c12_91, %c384_92], %115 {strides = array<i32>} : memref<36x1792xf32, #tpu.memory_space<vmem>>, vector<4x14xf32>,
    %117 = vector.extract_strided_slice %113 {offsets = [0, 1], sizes = [4, 14], strides = [1, 1]} : vector<4x16xbf16> to vector<4x14xbf16>
    %118 = arith.extf %117 : vector<4x14xbf16> to vector<4x14xf32>
    %c16_93 = arith.constant 16 : index
    %c384_94 = arith.constant 384 : index
    %119 = vector.load %arg5[%c16_93, %c384_94] : memref<36x1792xf32, #tpu.memory_space<vmem>>, vector<4x14xf32>
    tpu.vector_store %arg5[%c16_93, %c384_94], %118 {strides = array<i32>} : memref<36x1792xf32, #tpu.memory_space<vmem>>, vector<4x14xf32>,
    %120 = vector.extract_strided_slice %113 {offsets = [0, 2], sizes = [4, 14], strides = [1, 1]} : vector<4x16xbf16> to vector<4x14xbf16>
    %121 = arith.extf %120 : vector<4x14xbf16> to vector<4x14xf32>
    %c20_95 = arith.constant 20 : index
    %c384_96 = arith.constant 384 : index
    %122 = vector.load %arg5[%c20_95, %c384_96] : memref<36x1792xf32, #tpu.memory_space<vmem>>, vector<4x14xf32>
    tpu.vector_store %arg5[%c20_95, %c384_96], %121 {strides = array<i32>} : memref<36x1792xf32, #tpu.memory_space<vmem>>, vector<4x14xf32>,
    %c0_97 = arith.constant 0 : index
    %c5 = arith.constant 5 : index
    %c0_98 = arith.constant 0 : index
    %c0_99 = arith.constant 0 : index
    %123 = vector.load %arg1[%c0_97, %c5, %c0_98, %c0_99] : memref<1x16x4x16xbf16, #tpu.memory_space<vmem>>, vector<1x1x4x16xbf16>
    %124 = vector.shape_cast %123 : vector<1x1x4x16xbf16> to vector<4x16xbf16>
    %125 = vector.extract_strided_slice %124 {offsets = [0, 0], sizes = [4, 14], strides = [1, 1]} : vector<4x16xbf16> to vector<4x14xbf16>
    %126 = arith.extf %125 : vector<4x14xbf16> to vector<4x14xf32>
    %c24_100 = arith.constant 24 : index
    %c384_101 = arith.constant 384 : index
    %127 = vector.load %arg5[%c24_100, %c384_101] : memref<36x1792xf32, #tpu.memory_space<vmem>>, vector<4x14xf32>
    tpu.vector_store %arg5[%c24_100, %c384_101], %126 {strides = array<i32>} : memref<36x1792xf32, #tpu.memory_space<vmem>>, vector<4x14xf32>,
    %128 = vector.extract_strided_slice %124 {offsets = [0, 1], sizes = [4, 14], strides = [1, 1]} : vector<4x16xbf16> to vector<4x14xbf16>
    %129 = arith.extf %128 : vector<4x14xbf16> to vector<4x14xf32>
    %c28_102 = arith.constant 28 : index
    %c384_103 = arith.constant 384 : index
    %130 = vector.load %arg5[%c28_102, %c384_103] : memref<36x1792xf32, #tpu.memory_space<vmem>>, vector<4x14xf32>
    tpu.vector_store %arg5[%c28_102, %c384_103], %129 {strides = array<i32>} : memref<36x1792xf32, #tpu.memory_space<vmem>>, vector<4x14xf32>,
    %131 = vector.extract_strided_slice %124 {offsets = [0, 2], sizes = [4, 14], strides = [1, 1]} : vector<4x16xbf16> to vector<4x14xbf16>
    %132 = arith.extf %131 : vector<4x14xbf16> to vector<4x14xf32>
    %c32_104 = arith.constant 32 : index
    %c384_105 = arith.constant 384 : index
    %133 = vector.load %arg5[%c32_104, %c384_105] : memref<36x1792xf32, #tpu.memory_space<vmem>>, vector<4x14xf32>
    tpu.vector_store %arg5[%c32_104, %c384_105], %132 {strides = array<i32>} : memref<36x1792xf32, #tpu.memory_space<vmem>>, vector<4x14xf32>,
    %c0_106 = arith.constant 0 : index
    %c4_107 = arith.constant 4 : index
    %c0_108 = arith.constant 0 : index
    %c0_109 = arith.constant 0 : index
    %134 = vector.load %arg1[%c0_106, %c4_107, %c0_108, %c0_109] : memref<1x16x4x16xbf16, #tpu.memory_space<vmem>>, vector<1x1x4x16xbf16>
    %135 = vector.shape_cast %134 : vector<1x1x4x16xbf16> to vector<4x16xbf16>
    %136 = vector.extract_strided_slice %135 {offsets = [0, 0], sizes = [4, 14], strides = [1, 1]} : vector<4x16xbf16> to vector<4x14xbf16>
    %137 = arith.extf %136 : vector<4x14xbf16> to vector<4x14xf32>
    %c0_110 = arith.constant 0 : index
    %c512 = arith.constant 512 : index
    %138 = vector.load %arg5[%c0_110, %c512] : memref<36x1792xf32, #tpu.memory_space<vmem>>, vector<4x14xf32>
    tpu.vector_store %arg5[%c0_110, %c512], %137 {strides = array<i32>} : memref<36x1792xf32, #tpu.memory_space<vmem>>, vector<4x14xf32>,
    %139 = vector.extract_strided_slice %135 {offsets = [0, 1], sizes = [4, 14], strides = [1, 1]} : vector<4x16xbf16> to vector<4x14xbf16>
    %140 = arith.extf %139 : vector<4x14xbf16> to vector<4x14xf32>
    %c4_111 = arith.constant 4 : index
    %c512_112 = arith.constant 512 : index
    %141 = vector.load %arg5[%c4_111, %c512_112] : memref<36x1792xf32, #tpu.memory_space<vmem>>, vector<4x14xf32>
    tpu.vector_store %arg5[%c4_111, %c512_112], %140 {strides = array<i32>} : memref<36x1792xf32, #tpu.memory_space<vmem>>, vector<4x14xf32>,
    %142 = vector.extract_strided_slice %135 {offsets = [0, 2], sizes = [4, 14], strides = [1, 1]} : vector<4x16xbf16> to vector<4x14xbf16>
    %143 = arith.extf %142 : vector<4x14xbf16> to vector<4x14xf32>
    %c8_113 = arith.constant 8 : index
    %c512_114 = arith.constant 512 : index
    %144 = vector.load %arg5[%c8_113, %c512_114] : memref<36x1792xf32, #tpu.memory_space<vmem>>, vector<4x14xf32>
    tpu.vector_store %arg5[%c8_113, %c512_114], %143 {strides = array<i32>} : memref<36x1792xf32, #tpu.memory_space<vmem>>, vector<4x14xf32>,
    %c0_115 = arith.constant 0 : index
    %c5_116 = arith.constant 5 : index
    %c0_117 = arith.constant 0 : index
    %c0_118 = arith.constant 0 : index
    %145 = vector.load %arg1[%c0_115, %c5_116, %c0_117, %c0_118] : memref<1x16x4x16xbf16, #tpu.memory_space<vmem>>, vector<1x1x4x16xbf16>
    %146 = vector.shape_cast %145 : vector<1x1x4x16xbf16> to vector<4x16xbf16>
    %147 = vector.extract_strided_slice %146 {offsets = [0, 0], sizes = [4, 14], strides = [1, 1]} : vector<4x16xbf16> to vector<4x14xbf16>
    %148 = arith.extf %147 : vector<4x14xbf16> to vector<4x14xf32>
    %c12_119 = arith.constant 12 : index
    %c512_120 = arith.constant 512 : index
    %149 = vector.load %arg5[%c12_119, %c512_120] : memref<36x1792xf32, #tpu.memory_space<vmem>>, vector<4x14xf32>
    tpu.vector_store %arg5[%c12_119, %c512_120], %148 {strides = array<i32>} : memref<36x1792xf32, #tpu.memory_space<vmem>>, vector<4x14xf32>,
    %150 = vector.extract_strided_slice %146 {offsets = [0, 1], sizes = [4, 14], strides = [1, 1]} : vector<4x16xbf16> to vector<4x14xbf16>
    %151 = arith.extf %150 : vector<4x14xbf16> to vector<4x14xf32>
    %c16_121 = arith.constant 16 : index
    %c512_122 = arith.constant 512 : index
    %152 = vector.load %arg5[%c16_121, %c512_122] : memref<36x1792xf32, #tpu.memory_space<vmem>>, vector<4x14xf32>
    tpu.vector_store %arg5[%c16_121, %c512_122], %151 {strides = array<i32>} : memref<36x1792xf32, #tpu.memory_space<vmem>>, vector<4x14xf32>,
    %153 = vector.extract_strided_slice %146 {offsets = [0, 2], sizes = [4, 14], strides = [1, 1]} : vector<4x16xbf16> to vector<4x14xbf16>
    %154 = arith.extf %153 : vector<4x14xbf16> to vector<4x14xf32>
    %c20_123 = arith.constant 20 : index
    %c512_124 = arith.constant 512 : index
    %155 = vector.load %arg5[%c20_123, %c512_124] : memref<36x1792xf32, #tpu.memory_space<vmem>>, vector<4x14xf32>
    tpu.vector_store %arg5[%c20_123, %c512_124], %154 {strides = array<i32>} : memref<36x1792xf32, #tpu.memory_space<vmem>>, vector<4x14xf32>,
    %c0_125 = arith.constant 0 : index
    %c6 = arith.constant 6 : index
    %c0_126 = arith.constant 0 : index
    %c0_127 = arith.constant 0 : index
    %156 = vector.load %arg1[%c0_125, %c6, %c0_126, %c0_127] : memref<1x16x4x16xbf16, #tpu.memory_space<vmem>>, vector<1x1x4x16xbf16>
    %157 = vector.shape_cast %156 : vector<1x1x4x16xbf16> to vector<4x16xbf16>
    %158 = vector.extract_strided_slice %157 {offsets = [0, 0], sizes = [4, 14], strides = [1, 1]} : vector<4x16xbf16> to vector<4x14xbf16>
    %159 = arith.extf %158 : vector<4x14xbf16> to vector<4x14xf32>
    %c24_128 = arith.constant 24 : index
    %c512_129 = arith.constant 512 : index
    %160 = vector.load %arg5[%c24_128, %c512_129] : memref<36x1792xf32, #tpu.memory_space<vmem>>, vector<4x14xf32>
    tpu.vector_store %arg5[%c24_128, %c512_129], %159 {strides = array<i32>} : memref<36x1792xf32, #tpu.memory_space<vmem>>, vector<4x14xf32>,
    %161 = vector.extract_strided_slice %157 {offsets = [0, 1], sizes = [4, 14], strides = [1, 1]} : vector<4x16xbf16> to vector<4x14xbf16>
    %162 = arith.extf %161 : vector<4x14xbf16> to vector<4x14xf32>
    %c28_130 = arith.constant 28 : index
    %c512_131 = arith.constant 512 : index
    %163 = vector.load %arg5[%c28_130, %c512_131] : memref<36x1792xf32, #tpu.memory_space<vmem>>, vector<4x14xf32>
    tpu.vector_store %arg5[%c28_130, %c512_131], %162 {strides = array<i32>} : memref<36x1792xf32, #tpu.memory_space<vmem>>, vector<4x14xf32>,
    %164 = vector.extract_strided_slice %157 {offsets = [0, 2], sizes = [4, 14], strides = [1, 1]} : vector<4x16xbf16> to vector<4x14xbf16>
    %165 = arith.extf %164 : vector<4x14xbf16> to vector<4x14xf32>
    %c32_132 = arith.constant 32 : index
    %c512_133 = arith.constant 512 : index
    %166 = vector.load %arg5[%c32_132, %c512_133] : memref<36x1792xf32, #tpu.memory_space<vmem>>, vector<4x14xf32>
    tpu.vector_store %arg5[%c32_132, %c512_133], %165 {strides = array<i32>} : memref<36x1792xf32, #tpu.memory_space<vmem>>, vector<4x14xf32>,
    %c0_134 = arith.constant 0 : index
    %c5_135 = arith.constant 5 : index
    %c0_136 = arith.constant 0 : index
    %c0_137 = arith.constant 0 : index
    %167 = vector.load %arg1[%c0_134, %c5_135, %c0_136, %c0_137] : memref<1x16x4x16xbf16, #tpu.memory_space<vmem>>, vector<1x1x4x16xbf16>
    %168 = vector.shape_cast %167 : vector<1x1x4x16xbf16> to vector<4x16xbf16>
    %169 = vector.extract_strided_slice %168 {offsets = [0, 0], sizes = [4, 14], strides = [1, 1]} : vector<4x16xbf16> to vector<4x14xbf16>
    %170 = arith.extf %169 : vector<4x14xbf16> to vector<4x14xf32>
    %c0_138 = arith.constant 0 : index
    %c640 = arith.constant 640 : index
    %171 = vector.load %arg5[%c0_138, %c640] : memref<36x1792xf32, #tpu.memory_space<vmem>>, vector<4x14xf32>
    tpu.vector_store %arg5[%c0_138, %c640], %170 {strides = array<i32>} : memref<36x1792xf32, #tpu.memory_space<vmem>>, vector<4x14xf32>,
    %172 = vector.extract_strided_slice %168 {offsets = [0, 1], sizes = [4, 14], strides = [1, 1]} : vector<4x16xbf16> to vector<4x14xbf16>
    %173 = arith.extf %172 : vector<4x14xbf16> to vector<4x14xf32>
    %c4_139 = arith.constant 4 : index
    %c640_140 = arith.constant 640 : index
    %174 = vector.load %arg5[%c4_139, %c640_140] : memref<36x1792xf32, #tpu.memory_space<vmem>>, vector<4x14xf32>
    tpu.vector_store %arg5[%c4_139, %c640_140], %173 {strides = array<i32>} : memref<36x1792xf32, #tpu.memory_space<vmem>>, vector<4x14xf32>,
    %175 = vector.extract_strided_slice %168 {offsets = [0, 2], sizes = [4, 14], strides = [1, 1]} : vector<4x16xbf16> to vector<4x14xbf16>
    %176 = arith.extf %175 : vector<4x14xbf16> to vector<4x14xf32>
    %c8_141 = arith.constant 8 : index
    %c640_142 = arith.constant 640 : index
    %177 = vector.load %arg5[%c8_141, %c640_142] : memref<36x1792xf32, #tpu.memory_space<vmem>>, vector<4x14xf32>
    tpu.vector_store %arg5[%c8_141, %c640_142], %176 {strides = array<i32>} : memref<36x1792xf32, #tpu.memory_space<vmem>>, vector<4x14xf32>,
    %c0_143 = arith.constant 0 : index
    %c6_144 = arith.constant 6 : index
    %c0_145 = arith.constant 0 : index
    %c0_146 = arith.constant 0 : index
    %178 = vector.load %arg1[%c0_143, %c6_144, %c0_145, %c0_146] : memref<1x16x4x16xbf16, #tpu.memory_space<vmem>>, vector<1x1x4x16xbf16>
    %179 = vector.shape_cast %178 : vector<1x1x4x16xbf16> to vector<4x16xbf16>
    %180 = vector.extract_strided_slice %179 {offsets = [0, 0], sizes = [4, 14], strides = [1, 1]} : vector<4x16xbf16> to vector<4x14xbf16>
    %181 = arith.extf %180 : vector<4x14xbf16> to vector<4x14xf32>
    %c12_147 = arith.constant 12 : index
    %c640_148 = arith.constant 640 : index
    %182 = vector.load %arg5[%c12_147, %c640_148] : memref<36x1792xf32, #tpu.memory_space<vmem>>, vector<4x14xf32>
    tpu.vector_store %arg5[%c12_147, %c640_148], %181 {strides = array<i32>} : memref<36x1792xf32, #tpu.memory_space<vmem>>, vector<4x14xf32>,
    %183 = vector.extract_strided_slice %179 {offsets = [0, 1], sizes = [4, 14], strides = [1, 1]} : vector<4x16xbf16> to vector<4x14xbf16>
    %184 = arith.extf %183 : vector<4x14xbf16> to vector<4x14xf32>
    %c16_149 = arith.constant 16 : index
    %c640_150 = arith.constant 640 : index
    %185 = vector.load %arg5[%c16_149, %c640_150] : memref<36x1792xf32, #tpu.memory_space<vmem>>, vector<4x14xf32>
    tpu.vector_store %arg5[%c16_149, %c640_150], %184 {strides = array<i32>} : memref<36x1792xf32, #tpu.memory_space<vmem>>, vector<4x14xf32>,
    %186 = vector.extract_strided_slice %179 {offsets = [0, 2], sizes = [4, 14], strides = [1, 1]} : vector<4x16xbf16> to vector<4x14xbf16>
    %187 = arith.extf %186 : vector<4x14xbf16> to vector<4x14xf32>
    %c20_151 = arith.constant 20 : index
    %c640_152 = arith.constant 640 : index
    %188 = vector.load %arg5[%c20_151, %c640_152] : memref<36x1792xf32, #tpu.memory_space<vmem>>, vector<4x14xf32>
    tpu.vector_store %arg5[%c20_151, %c640_152], %187 {strides = array<i32>} : memref<36x1792xf32, #tpu.memory_space<vmem>>, vector<4x14xf32>,
    %c0_153 = arith.constant 0 : index
    %c7 = arith.constant 7 : index
    %c0_154 = arith.constant 0 : index
    %c0_155 = arith.constant 0 : index
    %189 = vector.load %arg1[%c0_153, %c7, %c0_154, %c0_155] : memref<1x16x4x16xbf16, #tpu.memory_space<vmem>>, vector<1x1x4x16xbf16>
    %190 = vector.shape_cast %189 : vector<1x1x4x16xbf16> to vector<4x16xbf16>
    %191 = vector.extract_strided_slice %190 {offsets = [0, 0], sizes = [4, 14], strides = [1, 1]} : vector<4x16xbf16> to vector<4x14xbf16>
    %192 = arith.extf %191 : vector<4x14xbf16> to vector<4x14xf32>
    %c24_156 = arith.constant 24 : index
    %c640_157 = arith.constant 640 : index
    %193 = vector.load %arg5[%c24_156, %c640_157] : memref<36x1792xf32, #tpu.memory_space<vmem>>, vector<4x14xf32>
    tpu.vector_store %arg5[%c24_156, %c640_157], %192 {strides = array<i32>} : memref<36x1792xf32, #tpu.memory_space<vmem>>, vector<4x14xf32>,
    %194 = vector.extract_strided_slice %190 {offsets = [0, 1], sizes = [4, 14], strides = [1, 1]} : vector<4x16xbf16> to vector<4x14xbf16>
    %195 = arith.extf %194 : vector<4x14xbf16> to vector<4x14xf32>
    %c28_158 = arith.constant 28 : index
    %c640_159 = arith.constant 640 : index
    %196 = vector.load %arg5[%c28_158, %c640_159] : memref<36x1792xf32, #tpu.memory_space<vmem>>, vector<4x14xf32>
    tpu.vector_store %arg5[%c28_158, %c640_159], %195 {strides = array<i32>} : memref<36x1792xf32, #tpu.memory_space<vmem>>, vector<4x14xf32>,
    %197 = vector.extract_strided_slice %190 {offsets = [0, 2], sizes = [4, 14], strides = [1, 1]} : vector<4x16xbf16> to vector<4x14xbf16>
    %198 = arith.extf %197 : vector<4x14xbf16> to vector<4x14xf32>
    %c32_160 = arith.constant 32 : index
    %c640_161 = arith.constant 640 : index
    %199 = vector.load %arg5[%c32_160, %c640_161] : memref<36x1792xf32, #tpu.memory_space<vmem>>, vector<4x14xf32>
    tpu.vector_store %arg5[%c32_160, %c640_161], %198 {strides = array<i32>} : memref<36x1792xf32, #tpu.memory_space<vmem>>, vector<4x14xf32>,
    %c0_162 = arith.constant 0 : index
    %c6_163 = arith.constant 6 : index
    %c0_164 = arith.constant 0 : index
    %c0_165 = arith.constant 0 : index
    %200 = vector.load %arg1[%c0_162, %c6_163, %c0_164, %c0_165] : memref<1x16x4x16xbf16, #tpu.memory_space<vmem>>, vector<1x1x4x16xbf16>
    %201 = vector.shape_cast %200 : vector<1x1x4x16xbf16> to vector<4x16xbf16>
    %202 = vector.extract_strided_slice %201 {offsets = [0, 0], sizes = [4, 14], strides = [1, 1]} : vector<4x16xbf16> to vector<4x14xbf16>
    %203 = arith.extf %202 : vector<4x14xbf16> to vector<4x14xf32>
    %c0_166 = arith.constant 0 : index
    %c768 = arith.constant 768 : index
    %204 = vector.load %arg5[%c0_166, %c768] : memref<36x1792xf32, #tpu.memory_space<vmem>>, vector<4x14xf32>
    tpu.vector_store %arg5[%c0_166, %c768], %203 {strides = array<i32>} : memref<36x1792xf32, #tpu.memory_space<vmem>>, vector<4x14xf32>,
    %205 = vector.extract_strided_slice %201 {offsets = [0, 1], sizes = [4, 14], strides = [1, 1]} : vector<4x16xbf16> to vector<4x14xbf16>
    %206 = arith.extf %205 : vector<4x14xbf16> to vector<4x14xf32>
    %c4_167 = arith.constant 4 : index
    %c768_168 = arith.constant 768 : index
    %207 = vector.load %arg5[%c4_167, %c768_168] : memref<36x1792xf32, #tpu.memory_space<vmem>>, vector<4x14xf32>
    tpu.vector_store %arg5[%c4_167, %c768_168], %206 {strides = array<i32>} : memref<36x1792xf32, #tpu.memory_space<vmem>>, vector<4x14xf32>,
    %208 = vector.extract_strided_slice %201 {offsets = [0, 2], sizes = [4, 14], strides = [1, 1]} : vector<4x16xbf16> to vector<4x14xbf16>
    %209 = arith.extf %208 : vector<4x14xbf16> to vector<4x14xf32>
    %c8_169 = arith.constant 8 : index
    %c768_170 = arith.constant 768 : index
    %210 = vector.load %arg5[%c8_169, %c768_170] : memref<36x1792xf32, #tpu.memory_space<vmem>>, vector<4x14xf32>
    tpu.vector_store %arg5[%c8_169, %c768_170], %209 {strides = array<i32>} : memref<36x1792xf32, #tpu.memory_space<vmem>>, vector<4x14xf32>,
    %c0_171 = arith.constant 0 : index
    %c7_172 = arith.constant 7 : index
    %c0_173 = arith.constant 0 : index
    %c0_174 = arith.constant 0 : index
    %211 = vector.load %arg1[%c0_171, %c7_172, %c0_173, %c0_174] : memref<1x16x4x16xbf16, #tpu.memory_space<vmem>>, vector<1x1x4x16xbf16>
    %212 = vector.shape_cast %211 : vector<1x1x4x16xbf16> to vector<4x16xbf16>
    %213 = vector.extract_strided_slice %212 {offsets = [0, 0], sizes = [4, 14], strides = [1, 1]} : vector<4x16xbf16> to vector<4x14xbf16>
    %214 = arith.extf %213 : vector<4x14xbf16> to vector<4x14xf32>
    %c12_175 = arith.constant 12 : index
    %c768_176 = arith.constant 768 : index
    %215 = vector.load %arg5[%c12_175, %c768_176] : memref<36x1792xf32, #tpu.memory_space<vmem>>, vector<4x14xf32>
    tpu.vector_store %arg5[%c12_175, %c768_176], %214 {strides = array<i32>} : memref<36x1792xf32, #tpu.memory_space<vmem>>, vector<4x14xf32>,
    %216 = vector.extract_strided_slice %212 {offsets = [0, 1], sizes = [4, 14], strides = [1, 1]} : vector<4x16xbf16> to vector<4x14xbf16>
    %217 = arith.extf %216 : vector<4x14xbf16> to vector<4x14xf32>
    %c16_177 = arith.constant 16 : index
    %c768_178 = arith.constant 768 : index
    %218 = vector.load %arg5[%c16_177, %c768_178] : memref<36x1792xf32, #tpu.memory_space<vmem>>, vector<4x14xf32>
    tpu.vector_store %arg5[%c16_177, %c768_178], %217 {strides = array<i32>} : memref<36x1792xf32, #tpu.memory_space<vmem>>, vector<4x14xf32>,
    %219 = vector.extract_strided_slice %212 {offsets = [0, 2], sizes = [4, 14], strides = [1, 1]} : vector<4x16xbf16> to vector<4x14xbf16>
    %220 = arith.extf %219 : vector<4x14xbf16> to vector<4x14xf32>
    %c20_179 = arith.constant 20 : index
    %c768_180 = arith.constant 768 : index
    %221 = vector.load %arg5[%c20_179, %c768_180] : memref<36x1792xf32, #tpu.memory_space<vmem>>, vector<4x14xf32>
    tpu.vector_store %arg5[%c20_179, %c768_180], %220 {strides = array<i32>} : memref<36x1792xf32, #tpu.memory_space<vmem>>, vector<4x14xf32>,
    %c0_181 = arith.constant 0 : index
    %c8_182 = arith.constant 8 : index
    %c0_183 = arith.constant 0 : index
    %c0_184 = arith.constant 0 : index
    %222 = vector.load %arg1[%c0_181, %c8_182, %c0_183, %c0_184] : memref<1x16x4x16xbf16, #tpu.memory_space<vmem>>, vector<1x1x4x16xbf16>
    %223 = vector.shape_cast %222 : vector<1x1x4x16xbf16> to vector<4x16xbf16>
    %224 = vector.extract_strided_slice %223 {offsets = [0, 0], sizes = [4, 14], strides = [1, 1]} : vector<4x16xbf16> to vector<4x14xbf16>
    %225 = arith.extf %224 : vector<4x14xbf16> to vector<4x14xf32>
    %c24_185 = arith.constant 24 : index
    %c768_186 = arith.constant 768 : index
    %226 = vector.load %arg5[%c24_185, %c768_186] : memref<36x1792xf32, #tpu.memory_space<vmem>>, vector<4x14xf32>
    tpu.vector_store %arg5[%c24_185, %c768_186], %225 {strides = array<i32>} : memref<36x1792xf32, #tpu.memory_space<vmem>>, vector<4x14xf32>,
    %227 = vector.extract_strided_slice %223 {offsets = [0, 1], sizes = [4, 14], strides = [1, 1]} : vector<4x16xbf16> to vector<4x14xbf16>
    %228 = arith.extf %227 : vector<4x14xbf16> to vector<4x14xf32>
    %c28_187 = arith.constant 28 : index
    %c768_188 = arith.constant 768 : index
    %229 = vector.load %arg5[%c28_187, %c768_188] : memref<36x1792xf32, #tpu.memory_space<vmem>>, vector<4x14xf32>
    tpu.vector_store %arg5[%c28_187, %c768_188], %228 {strides = array<i32>} : memref<36x1792xf32, #tpu.memory_space<vmem>>, vector<4x14xf32>,
    %230 = vector.extract_strided_slice %223 {offsets = [0, 2], sizes = [4, 14], strides = [1, 1]} : vector<4x16xbf16> to vector<4x14xbf16>
    %231 = arith.extf %230 : vector<4x14xbf16> to vector<4x14xf32>
    %c32_189 = arith.constant 32 : index
    %c768_190 = arith.constant 768 : index
    %232 = vector.load %arg5[%c32_189, %c768_190] : memref<36x1792xf32, #tpu.memory_space<vmem>>, vector<4x14xf32>
    tpu.vector_store %arg5[%c32_189, %c768_190], %231 {strides = array<i32>} : memref<36x1792xf32, #tpu.memory_space<vmem>>, vector<4x14xf32>,
    %c0_191 = arith.constant 0 : index
    %c7_192 = arith.constant 7 : index
    %c0_193 = arith.constant 0 : index
    %c0_194 = arith.constant 0 : index
    %233 = vector.load %arg1[%c0_191, %c7_192, %c0_193, %c0_194] : memref<1x16x4x16xbf16, #tpu.memory_space<vmem>>, vector<1x1x4x16xbf16>
    %234 = vector.shape_cast %233 : vector<1x1x4x16xbf16> to vector<4x16xbf16>
    %235 = vector.extract_strided_slice %234 {offsets = [0, 0], sizes = [4, 14], strides = [1, 1]} : vector<4x16xbf16> to vector<4x14xbf16>
    %236 = arith.extf %235 : vector<4x14xbf16> to vector<4x14xf32>
    %c0_195 = arith.constant 0 : index
    %c896 = arith.constant 896 : index
    %237 = vector.load %arg5[%c0_195, %c896] : memref<36x1792xf32, #tpu.memory_space<vmem>>, vector<4x14xf32>
    tpu.vector_store %arg5[%c0_195, %c896], %236 {strides = array<i32>} : memref<36x1792xf32, #tpu.memory_space<vmem>>, vector<4x14xf32>,
    %238 = vector.extract_strided_slice %234 {offsets = [0, 1], sizes = [4, 14], strides = [1, 1]} : vector<4x16xbf16> to vector<4x14xbf16>
    %239 = arith.extf %238 : vector<4x14xbf16> to vector<4x14xf32>
    %c4_196 = arith.constant 4 : index
    %c896_197 = arith.constant 896 : index
    %240 = vector.load %arg5[%c4_196, %c896_197] : memref<36x1792xf32, #tpu.memory_space<vmem>>, vector<4x14xf32>
    tpu.vector_store %arg5[%c4_196, %c896_197], %239 {strides = array<i32>} : memref<36x1792xf32, #tpu.memory_space<vmem>>, vector<4x14xf32>,
    %241 = vector.extract_strided_slice %234 {offsets = [0, 2], sizes = [4, 14], strides = [1, 1]} : vector<4x16xbf16> to vector<4x14xbf16>
    %242 = arith.extf %241 : vector<4x14xbf16> to vector<4x14xf32>
    %c8_198 = arith.constant 8 : index
    %c896_199 = arith.constant 896 : index
    %243 = vector.load %arg5[%c8_198, %c896_199] : memref<36x1792xf32, #tpu.memory_space<vmem>>, vector<4x14xf32>
    tpu.vector_store %arg5[%c8_198, %c896_199], %242 {strides = array<i32>} : memref<36x1792xf32, #tpu.memory_space<vmem>>, vector<4x14xf32>,
    %c0_200 = arith.constant 0 : index
    %c8_201 = arith.constant 8 : index
    %c0_202 = arith.constant 0 : index
    %c0_203 = arith.constant 0 : index
    %244 = vector.load %arg1[%c0_200, %c8_201, %c0_202, %c0_203] : memref<1x16x4x16xbf16, #tpu.memory_space<vmem>>, vector<1x1x4x16xbf16>
    %245 = vector.shape_cast %244 : vector<1x1x4x16xbf16> to vector<4x16xbf16>
    %246 = vector.extract_strided_slice %245 {offsets = [0, 0], sizes = [4, 14], strides = [1, 1]} : vector<4x16xbf16> to vector<4x14xbf16>
    %247 = arith.extf %246 : vector<4x14xbf16> to vector<4x14xf32>
    %c12_204 = arith.constant 12 : index
    %c896_205 = arith.constant 896 : index
    %248 = vector.load %arg5[%c12_204, %c896_205] : memref<36x1792xf32, #tpu.memory_space<vmem>>, vector<4x14xf32>
    tpu.vector_store %arg5[%c12_204, %c896_205], %247 {strides = array<i32>} : memref<36x1792xf32, #tpu.memory_space<vmem>>, vector<4x14xf32>,
    %249 = vector.extract_strided_slice %245 {offsets = [0, 1], sizes = [4, 14], strides = [1, 1]} : vector<4x16xbf16> to vector<4x14xbf16>
    %250 = arith.extf %249 : vector<4x14xbf16> to vector<4x14xf32>
    %c16_206 = arith.constant 16 : index
    %c896_207 = arith.constant 896 : index
    %251 = vector.load %arg5[%c16_206, %c896_207] : memref<36x1792xf32, #tpu.memory_space<vmem>>, vector<4x14xf32>
    tpu.vector_store %arg5[%c16_206, %c896_207], %250 {strides = array<i32>} : memref<36x1792xf32, #tpu.memory_space<vmem>>, vector<4x14xf32>,
    %252 = vector.extract_strided_slice %245 {offsets = [0, 2], sizes = [4, 14], strides = [1, 1]} : vector<4x16xbf16> to vector<4x14xbf16>
    %253 = arith.extf %252 : vector<4x14xbf16> to vector<4x14xf32>
    %c20_208 = arith.constant 20 : index
    %c896_209 = arith.constant 896 : index
    %254 = vector.load %arg5[%c20_208, %c896_209] : memref<36x1792xf32, #tpu.memory_space<vmem>>, vector<4x14xf32>
    tpu.vector_store %arg5[%c20_208, %c896_209], %253 {strides = array<i32>} : memref<36x1792xf32, #tpu.memory_space<vmem>>, vector<4x14xf32>,
    %c0_210 = arith.constant 0 : index
    %c9 = arith.constant 9 : index
    %c0_211 = arith.constant 0 : index
    %c0_212 = arith.constant 0 : index
    %255 = vector.load %arg1[%c0_210, %c9, %c0_211, %c0_212] : memref<1x16x4x16xbf16, #tpu.memory_space<vmem>>, vector<1x1x4x16xbf16>
    %256 = vector.shape_cast %255 : vector<1x1x4x16xbf16> to vector<4x16xbf16>
    %257 = vector.extract_strided_slice %256 {offsets = [0, 0], sizes = [4, 14], strides = [1, 1]} : vector<4x16xbf16> to vector<4x14xbf16>
    %258 = arith.extf %257 : vector<4x14xbf16> to vector<4x14xf32>
    %c24_213 = arith.constant 24 : index
    %c896_214 = arith.constant 896 : index
    %259 = vector.load %arg5[%c24_213, %c896_214] : memref<36x1792xf32, #tpu.memory_space<vmem>>, vector<4x14xf32>
    tpu.vector_store %arg5[%c24_213, %c896_214], %258 {strides = array<i32>} : memref<36x1792xf32, #tpu.memory_space<vmem>>, vector<4x14xf32>,
    %260 = vector.extract_strided_slice %256 {offsets = [0, 1], sizes = [4, 14], strides = [1, 1]} : vector<4x16xbf16> to vector<4x14xbf16>
    %261 = arith.extf %260 : vector<4x14xbf16> to vector<4x14xf32>
    %c28_215 = arith.constant 28 : index
    %c896_216 = arith.constant 896 : index
    %262 = vector.load %arg5[%c28_215, %c896_216] : memref<36x1792xf32, #tpu.memory_space<vmem>>, vector<4x14xf32>
    tpu.vector_store %arg5[%c28_215, %c896_216], %261 {strides = array<i32>} : memref<36x1792xf32, #tpu.memory_space<vmem>>, vector<4x14xf32>,
    %263 = vector.extract_strided_slice %256 {offsets = [0, 2], sizes = [4, 14], strides = [1, 1]} : vector<4x16xbf16> to vector<4x14xbf16>
    %264 = arith.extf %263 : vector<4x14xbf16> to vector<4x14xf32>
    %c32_217 = arith.constant 32 : index
    %c896_218 = arith.constant 896 : index
    %265 = vector.load %arg5[%c32_217, %c896_218] : memref<36x1792xf32, #tpu.memory_space<vmem>>, vector<4x14xf32>
    tpu.vector_store %arg5[%c32_217, %c896_218], %264 {strides = array<i32>} : memref<36x1792xf32, #tpu.memory_space<vmem>>, vector<4x14xf32>,
    %c0_219 = arith.constant 0 : index
    %c8_220 = arith.constant 8 : index
    %c0_221 = arith.constant 0 : index
    %c0_222 = arith.constant 0 : index
    %266 = vector.load %arg1[%c0_219, %c8_220, %c0_221, %c0_222] : memref<1x16x4x16xbf16, #tpu.memory_space<vmem>>, vector<1x1x4x16xbf16>
    %267 = vector.shape_cast %266 : vector<1x1x4x16xbf16> to vector<4x16xbf16>
    %268 = vector.extract_strided_slice %267 {offsets = [0, 0], sizes = [4, 14], strides = [1, 1]} : vector<4x16xbf16> to vector<4x14xbf16>
    %269 = arith.extf %268 : vector<4x14xbf16> to vector<4x14xf32>
    %c0_223 = arith.constant 0 : index
    %c1024 = arith.constant 1024 : index
    %270 = vector.load %arg5[%c0_223, %c1024] : memref<36x1792xf32, #tpu.memory_space<vmem>>, vector<4x14xf32>
    tpu.vector_store %arg5[%c0_223, %c1024], %269 {strides = array<i32>} : memref<36x1792xf32, #tpu.memory_space<vmem>>, vector<4x14xf32>,
    %271 = vector.extract_strided_slice %267 {offsets = [0, 1], sizes = [4, 14], strides = [1, 1]} : vector<4x16xbf16> to vector<4x14xbf16>
    %272 = arith.extf %271 : vector<4x14xbf16> to vector<4x14xf32>
    %c4_224 = arith.constant 4 : index
    %c1024_225 = arith.constant 1024 : index
    %273 = vector.load %arg5[%c4_224, %c1024_225] : memref<36x1792xf32, #tpu.memory_space<vmem>>, vector<4x14xf32>
    tpu.vector_store %arg5[%c4_224, %c1024_225], %272 {strides = array<i32>} : memref<36x1792xf32, #tpu.memory_space<vmem>>, vector<4x14xf32>,
    %274 = vector.extract_strided_slice %267 {offsets = [0, 2], sizes = [4, 14], strides = [1, 1]} : vector<4x16xbf16> to vector<4x14xbf16>
    %275 = arith.extf %274 : vector<4x14xbf16> to vector<4x14xf32>
    %c8_226 = arith.constant 8 : index
    %c1024_227 = arith.constant 1024 : index
    %276 = vector.load %arg5[%c8_226, %c1024_227] : memref<36x1792xf32, #tpu.memory_space<vmem>>, vector<4x14xf32>
    tpu.vector_store %arg5[%c8_226, %c1024_227], %275 {strides = array<i32>} : memref<36x1792xf32, #tpu.memory_space<vmem>>, vector<4x14xf32>,
    %c0_228 = arith.constant 0 : index
    %c9_229 = arith.constant 9 : index
    %c0_230 = arith.constant 0 : index
    %c0_231 = arith.constant 0 : index
    %277 = vector.load %arg1[%c0_228, %c9_229, %c0_230, %c0_231] : memref<1x16x4x16xbf16, #tpu.memory_space<vmem>>, vector<1x1x4x16xbf16>
    %278 = vector.shape_cast %277 : vector<1x1x4x16xbf16> to vector<4x16xbf16>
    %279 = vector.extract_strided_slice %278 {offsets = [0, 0], sizes = [4, 14], strides = [1, 1]} : vector<4x16xbf16> to vector<4x14xbf16>
    %280 = arith.extf %279 : vector<4x14xbf16> to vector<4x14xf32>
    %c12_232 = arith.constant 12 : index
    %c1024_233 = arith.constant 1024 : index
    %281 = vector.load %arg5[%c12_232, %c1024_233] : memref<36x1792xf32, #tpu.memory_space<vmem>>, vector<4x14xf32>
    tpu.vector_store %arg5[%c12_232, %c1024_233], %280 {strides = array<i32>} : memref<36x1792xf32, #tpu.memory_space<vmem>>, vector<4x14xf32>,
    %282 = vector.extract_strided_slice %278 {offsets = [0, 1], sizes = [4, 14], strides = [1, 1]} : vector<4x16xbf16> to vector<4x14xbf16>
    %283 = arith.extf %282 : vector<4x14xbf16> to vector<4x14xf32>
    %c16_234 = arith.constant 16 : index
    %c1024_235 = arith.constant 1024 : index
    %284 = vector.load %arg5[%c16_234, %c1024_235] : memref<36x1792xf32, #tpu.memory_space<vmem>>, vector<4x14xf32>
    tpu.vector_store %arg5[%c16_234, %c1024_235], %283 {strides = array<i32>} : memref<36x1792xf32, #tpu.memory_space<vmem>>, vector<4x14xf32>,
    %285 = vector.extract_strided_slice %278 {offsets = [0, 2], sizes = [4, 14], strides = [1, 1]} : vector<4x16xbf16> to vector<4x14xbf16>
    %286 = arith.extf %285 : vector<4x14xbf16> to vector<4x14xf32>
    %c20_236 = arith.constant 20 : index
    %c1024_237 = arith.constant 1024 : index
    %287 = vector.load %arg5[%c20_236, %c1024_237] : memref<36x1792xf32, #tpu.memory_space<vmem>>, vector<4x14xf32>
    tpu.vector_store %arg5[%c20_236, %c1024_237], %286 {strides = array<i32>} : memref<36x1792xf32, #tpu.memory_space<vmem>>, vector<4x14xf32>,
    %c0_238 = arith.constant 0 : index
    %c10 = arith.constant 10 : index
    %c0_239 = arith.constant 0 : index
    %c0_240 = arith.constant 0 : index
    %288 = vector.load %arg1[%c0_238, %c10, %c0_239, %c0_240] : memref<1x16x4x16xbf16, #tpu.memory_space<vmem>>, vector<1x1x4x16xbf16>
    %289 = vector.shape_cast %288 : vector<1x1x4x16xbf16> to vector<4x16xbf16>
    %290 = vector.extract_strided_slice %289 {offsets = [0, 0], sizes = [4, 14], strides = [1, 1]} : vector<4x16xbf16> to vector<4x14xbf16>
    %291 = arith.extf %290 : vector<4x14xbf16> to vector<4x14xf32>
    %c24_241 = arith.constant 24 : index
    %c1024_242 = arith.constant 1024 : index
    %292 = vector.load %arg5[%c24_241, %c1024_242] : memref<36x1792xf32, #tpu.memory_space<vmem>>, vector<4x14xf32>
    tpu.vector_store %arg5[%c24_241, %c1024_242], %291 {strides = array<i32>} : memref<36x1792xf32, #tpu.memory_space<vmem>>, vector<4x14xf32>,
    %293 = vector.extract_strided_slice %289 {offsets = [0, 1], sizes = [4, 14], strides = [1, 1]} : vector<4x16xbf16> to vector<4x14xbf16>
    %294 = arith.extf %293 : vector<4x14xbf16> to vector<4x14xf32>
    %c28_243 = arith.constant 28 : index
    %c1024_244 = arith.constant 1024 : index
    %295 = vector.load %arg5[%c28_243, %c1024_244] : memref<36x1792xf32, #tpu.memory_space<vmem>>, vector<4x14xf32>
    tpu.vector_store %arg5[%c28_243, %c1024_244], %294 {strides = array<i32>} : memref<36x1792xf32, #tpu.memory_space<vmem>>, vector<4x14xf32>,
    %296 = vector.extract_strided_slice %289 {offsets = [0, 2], sizes = [4, 14], strides = [1, 1]} : vector<4x16xbf16> to vector<4x14xbf16>
    %297 = arith.extf %296 : vector<4x14xbf16> to vector<4x14xf32>
    %c32_245 = arith.constant 32 : index
    %c1024_246 = arith.constant 1024 : index
    %298 = vector.load %arg5[%c32_245, %c1024_246] : memref<36x1792xf32, #tpu.memory_space<vmem>>, vector<4x14xf32>
    tpu.vector_store %arg5[%c32_245, %c1024_246], %297 {strides = array<i32>} : memref<36x1792xf32, #tpu.memory_space<vmem>>, vector<4x14xf32>,
    %c0_247 = arith.constant 0 : index
    %c9_248 = arith.constant 9 : index
    %c0_249 = arith.constant 0 : index
    %c0_250 = arith.constant 0 : index
    %299 = vector.load %arg1[%c0_247, %c9_248, %c0_249, %c0_250] : memref<1x16x4x16xbf16, #tpu.memory_space<vmem>>, vector<1x1x4x16xbf16>
    %300 = vector.shape_cast %299 : vector<1x1x4x16xbf16> to vector<4x16xbf16>
    %301 = vector.extract_strided_slice %300 {offsets = [0, 0], sizes = [4, 14], strides = [1, 1]} : vector<4x16xbf16> to vector<4x14xbf16>
    %302 = arith.extf %301 : vector<4x14xbf16> to vector<4x14xf32>
    %c0_251 = arith.constant 0 : index
    %c1152 = arith.constant 1152 : index
    %303 = vector.load %arg5[%c0_251, %c1152] : memref<36x1792xf32, #tpu.memory_space<vmem>>, vector<4x14xf32>
    tpu.vector_store %arg5[%c0_251, %c1152], %302 {strides = array<i32>} : memref<36x1792xf32, #tpu.memory_space<vmem>>, vector<4x14xf32>,
    %304 = vector.extract_strided_slice %300 {offsets = [0, 1], sizes = [4, 14], strides = [1, 1]} : vector<4x16xbf16> to vector<4x14xbf16>
    %305 = arith.extf %304 : vector<4x14xbf16> to vector<4x14xf32>
    %c4_252 = arith.constant 4 : index
    %c1152_253 = arith.constant 1152 : index
    %306 = vector.load %arg5[%c4_252, %c1152_253] : memref<36x1792xf32, #tpu.memory_space<vmem>>, vector<4x14xf32>
    tpu.vector_store %arg5[%c4_252, %c1152_253], %305 {strides = array<i32>} : memref<36x1792xf32, #tpu.memory_space<vmem>>, vector<4x14xf32>,
    %307 = vector.extract_strided_slice %300 {offsets = [0, 2], sizes = [4, 14], strides = [1, 1]} : vector<4x16xbf16> to vector<4x14xbf16>
    %308 = arith.extf %307 : vector<4x14xbf16> to vector<4x14xf32>
    %c8_254 = arith.constant 8 : index
    %c1152_255 = arith.constant 1152 : index
    %309 = vector.load %arg5[%c8_254, %c1152_255] : memref<36x1792xf32, #tpu.memory_space<vmem>>, vector<4x14xf32>
    tpu.vector_store %arg5[%c8_254, %c1152_255], %308 {strides = array<i32>} : memref<36x1792xf32, #tpu.memory_space<vmem>>, vector<4x14xf32>,
    %c0_256 = arith.constant 0 : index
    %c10_257 = arith.constant 10 : index
    %c0_258 = arith.constant 0 : index
    %c0_259 = arith.constant 0 : index
    %310 = vector.load %arg1[%c0_256, %c10_257, %c0_258, %c0_259] : memref<1x16x4x16xbf16, #tpu.memory_space<vmem>>, vector<1x1x4x16xbf16>
    %311 = vector.shape_cast %310 : vector<1x1x4x16xbf16> to vector<4x16xbf16>
    %312 = vector.extract_strided_slice %311 {offsets = [0, 0], sizes = [4, 14], strides = [1, 1]} : vector<4x16xbf16> to vector<4x14xbf16>
    %313 = arith.extf %312 : vector<4x14xbf16> to vector<4x14xf32>
    %c12_260 = arith.constant 12 : index
    %c1152_261 = arith.constant 1152 : index
    %314 = vector.load %arg5[%c12_260, %c1152_261] : memref<36x1792xf32, #tpu.memory_space<vmem>>, vector<4x14xf32>
    tpu.vector_store %arg5[%c12_260, %c1152_261], %313 {strides = array<i32>} : memref<36x1792xf32, #tpu.memory_space<vmem>>, vector<4x14xf32>,
    %315 = vector.extract_strided_slice %311 {offsets = [0, 1], sizes = [4, 14], strides = [1, 1]} : vector<4x16xbf16> to vector<4x14xbf16>
    %316 = arith.extf %315 : vector<4x14xbf16> to vector<4x14xf32>
    %c16_262 = arith.constant 16 : index
    %c1152_263 = arith.constant 1152 : index
    %317 = vector.load %arg5[%c16_262, %c1152_263] : memref<36x1792xf32, #tpu.memory_space<vmem>>, vector<4x14xf32>
    tpu.vector_store %arg5[%c16_262, %c1152_263], %316 {strides = array<i32>} : memref<36x1792xf32, #tpu.memory_space<vmem>>, vector<4x14xf32>,
    %318 = vector.extract_strided_slice %311 {offsets = [0, 2], sizes = [4, 14], strides = [1, 1]} : vector<4x16xbf16> to vector<4x14xbf16>
    %319 = arith.extf %318 : vector<4x14xbf16> to vector<4x14xf32>
    %c20_264 = arith.constant 20 : index
    %c1152_265 = arith.constant 1152 : index
    %320 = vector.load %arg5[%c20_264, %c1152_265] : memref<36x1792xf32, #tpu.memory_space<vmem>>, vector<4x14xf32>
    tpu.vector_store %arg5[%c20_264, %c1152_265], %319 {strides = array<i32>} : memref<36x1792xf32, #tpu.memory_space<vmem>>, vector<4x14xf32>,
    %c0_266 = arith.constant 0 : index
    %c11 = arith.constant 11 : index
    %c0_267 = arith.constant 0 : index
    %c0_268 = arith.constant 0 : index
    %321 = vector.load %arg1[%c0_266, %c11, %c0_267, %c0_268] : memref<1x16x4x16xbf16, #tpu.memory_space<vmem>>, vector<1x1x4x16xbf16>
    %322 = vector.shape_cast %321 : vector<1x1x4x16xbf16> to vector<4x16xbf16>
    %323 = vector.extract_strided_slice %322 {offsets = [0, 0], sizes = [4, 14], strides = [1, 1]} : vector<4x16xbf16> to vector<4x14xbf16>
    %324 = arith.extf %323 : vector<4x14xbf16> to vector<4x14xf32>
    %c24_269 = arith.constant 24 : index
    %c1152_270 = arith.constant 1152 : index
    %325 = vector.load %arg5[%c24_269, %c1152_270] : memref<36x1792xf32, #tpu.memory_space<vmem>>, vector<4x14xf32>
    tpu.vector_store %arg5[%c24_269, %c1152_270], %324 {strides = array<i32>} : memref<36x1792xf32, #tpu.memory_space<vmem>>, vector<4x14xf32>,
    %326 = vector.extract_strided_slice %322 {offsets = [0, 1], sizes = [4, 14], strides = [1, 1]} : vector<4x16xbf16> to vector<4x14xbf16>
    %327 = arith.extf %326 : vector<4x14xbf16> to vector<4x14xf32>
    %c28_271 = arith.constant 28 : index
    %c1152_272 = arith.constant 1152 : index
    %328 = vector.load %arg5[%c28_271, %c1152_272] : memref<36x1792xf32, #tpu.memory_space<vmem>>, vector<4x14xf32>
    tpu.vector_store %arg5[%c28_271, %c1152_272], %327 {strides = array<i32>} : memref<36x1792xf32, #tpu.memory_space<vmem>>, vector<4x14xf32>,
    %329 = vector.extract_strided_slice %322 {offsets = [0, 2], sizes = [4, 14], strides = [1, 1]} : vector<4x16xbf16> to vector<4x14xbf16>
    %330 = arith.extf %329 : vector<4x14xbf16> to vector<4x14xf32>
    %c32_273 = arith.constant 32 : index
    %c1152_274 = arith.constant 1152 : index
    %331 = vector.load %arg5[%c32_273, %c1152_274] : memref<36x1792xf32, #tpu.memory_space<vmem>>, vector<4x14xf32>
    tpu.vector_store %arg5[%c32_273, %c1152_274], %330 {strides = array<i32>} : memref<36x1792xf32, #tpu.memory_space<vmem>>, vector<4x14xf32>,
    %c0_275 = arith.constant 0 : index
    %c10_276 = arith.constant 10 : index
    %c0_277 = arith.constant 0 : index
    %c0_278 = arith.constant 0 : index
    %332 = vector.load %arg1[%c0_275, %c10_276, %c0_277, %c0_278] : memref<1x16x4x16xbf16, #tpu.memory_space<vmem>>, vector<1x1x4x16xbf16>
    %333 = vector.shape_cast %332 : vector<1x1x4x16xbf16> to vector<4x16xbf16>
    %334 = vector.extract_strided_slice %333 {offsets = [0, 0], sizes = [4, 14], strides = [1, 1]} : vector<4x16xbf16> to vector<4x14xbf16>
    %335 = arith.extf %334 : vector<4x14xbf16> to vector<4x14xf32>
    %c0_279 = arith.constant 0 : index
    %c1280 = arith.constant 1280 : index
    %336 = vector.load %arg5[%c0_279, %c1280] : memref<36x1792xf32, #tpu.memory_space<vmem>>, vector<4x14xf32>
    tpu.vector_store %arg5[%c0_279, %c1280], %335 {strides = array<i32>} : memref<36x1792xf32, #tpu.memory_space<vmem>>, vector<4x14xf32>,
    %337 = vector.extract_strided_slice %333 {offsets = [0, 1], sizes = [4, 14], strides = [1, 1]} : vector<4x16xbf16> to vector<4x14xbf16>
    %338 = arith.extf %337 : vector<4x14xbf16> to vector<4x14xf32>
    %c4_280 = arith.constant 4 : index
    %c1280_281 = arith.constant 1280 : index
    %339 = vector.load %arg5[%c4_280, %c1280_281] : memref<36x1792xf32, #tpu.memory_space<vmem>>, vector<4x14xf32>
    tpu.vector_store %arg5[%c4_280, %c1280_281], %338 {strides = array<i32>} : memref<36x1792xf32, #tpu.memory_space<vmem>>, vector<4x14xf32>,
    %340 = vector.extract_strided_slice %333 {offsets = [0, 2], sizes = [4, 14], strides = [1, 1]} : vector<4x16xbf16> to vector<4x14xbf16>
    %341 = arith.extf %340 : vector<4x14xbf16> to vector<4x14xf32>
    %c8_282 = arith.constant 8 : index
    %c1280_283 = arith.constant 1280 : index
    %342 = vector.load %arg5[%c8_282, %c1280_283] : memref<36x1792xf32, #tpu.memory_space<vmem>>, vector<4x14xf32>
    tpu.vector_store %arg5[%c8_282, %c1280_283], %341 {strides = array<i32>} : memref<36x1792xf32, #tpu.memory_space<vmem>>, vector<4x14xf32>,
    %c0_284 = arith.constant 0 : index
    %c11_285 = arith.constant 11 : index
    %c0_286 = arith.constant 0 : index
    %c0_287 = arith.constant 0 : index
    %343 = vector.load %arg1[%c0_284, %c11_285, %c0_286, %c0_287] : memref<1x16x4x16xbf16, #tpu.memory_space<vmem>>, vector<1x1x4x16xbf16>
    %344 = vector.shape_cast %343 : vector<1x1x4x16xbf16> to vector<4x16xbf16>
    %345 = vector.extract_strided_slice %344 {offsets = [0, 0], sizes = [4, 14], strides = [1, 1]} : vector<4x16xbf16> to vector<4x14xbf16>
    %346 = arith.extf %345 : vector<4x14xbf16> to vector<4x14xf32>
    %c12_288 = arith.constant 12 : index
    %c1280_289 = arith.constant 1280 : index
    %347 = vector.load %arg5[%c12_288, %c1280_289] : memref<36x1792xf32, #tpu.memory_space<vmem>>, vector<4x14xf32>
    tpu.vector_store %arg5[%c12_288, %c1280_289], %346 {strides = array<i32>} : memref<36x1792xf32, #tpu.memory_space<vmem>>, vector<4x14xf32>,
    %348 = vector.extract_strided_slice %344 {offsets = [0, 1], sizes = [4, 14], strides = [1, 1]} : vector<4x16xbf16> to vector<4x14xbf16>
    %349 = arith.extf %348 : vector<4x14xbf16> to vector<4x14xf32>
    %c16_290 = arith.constant 16 : index
    %c1280_291 = arith.constant 1280 : index
    %350 = vector.load %arg5[%c16_290, %c1280_291] : memref<36x1792xf32, #tpu.memory_space<vmem>>, vector<4x14xf32>
    tpu.vector_store %arg5[%c16_290, %c1280_291], %349 {strides = array<i32>} : memref<36x1792xf32, #tpu.memory_space<vmem>>, vector<4x14xf32>,
    %351 = vector.extract_strided_slice %344 {offsets = [0, 2], sizes = [4, 14], strides = [1, 1]} : vector<4x16xbf16> to vector<4x14xbf16>
    %352 = arith.extf %351 : vector<4x14xbf16> to vector<4x14xf32>
    %c20_292 = arith.constant 20 : index
    %c1280_293 = arith.constant 1280 : index
    %353 = vector.load %arg5[%c20_292, %c1280_293] : memref<36x1792xf32, #tpu.memory_space<vmem>>, vector<4x14xf32>
    tpu.vector_store %arg5[%c20_292, %c1280_293], %352 {strides = array<i32>} : memref<36x1792xf32, #tpu.memory_space<vmem>>, vector<4x14xf32>,
    %c0_294 = arith.constant 0 : index
    %c12_295 = arith.constant 12 : index
    %c0_296 = arith.constant 0 : index
    %c0_297 = arith.constant 0 : index
    %354 = vector.load %arg1[%c0_294, %c12_295, %c0_296, %c0_297] : memref<1x16x4x16xbf16, #tpu.memory_space<vmem>>, vector<1x1x4x16xbf16>
    %355 = vector.shape_cast %354 : vector<1x1x4x16xbf16> to vector<4x16xbf16>
    %356 = vector.extract_strided_slice %355 {offsets = [0, 0], sizes = [4, 14], strides = [1, 1]} : vector<4x16xbf16> to vector<4x14xbf16>
    %357 = arith.extf %356 : vector<4x14xbf16> to vector<4x14xf32>
    %c24_298 = arith.constant 24 : index
    %c1280_299 = arith.constant 1280 : index
    %358 = vector.load %arg5[%c24_298, %c1280_299] : memref<36x1792xf32, #tpu.memory_space<vmem>>, vector<4x14xf32>
    tpu.vector_store %arg5[%c24_298, %c1280_299], %357 {strides = array<i32>} : memref<36x1792xf32, #tpu.memory_space<vmem>>, vector<4x14xf32>,
    %359 = vector.extract_strided_slice %355 {offsets = [0, 1], sizes = [4, 14], strides = [1, 1]} : vector<4x16xbf16> to vector<4x14xbf16>
    %360 = arith.extf %359 : vector<4x14xbf16> to vector<4x14xf32>
    %c28_300 = arith.constant 28 : index
    %c1280_301 = arith.constant 1280 : index
    %361 = vector.load %arg5[%c28_300, %c1280_301] : memref<36x1792xf32, #tpu.memory_space<vmem>>, vector<4x14xf32>
    tpu.vector_store %arg5[%c28_300, %c1280_301], %360 {strides = array<i32>} : memref<36x1792xf32, #tpu.memory_space<vmem>>, vector<4x14xf32>,
    %362 = vector.extract_strided_slice %355 {offsets = [0, 2], sizes = [4, 14], strides = [1, 1]} : vector<4x16xbf16> to vector<4x14xbf16>
    %363 = arith.extf %362 : vector<4x14xbf16> to vector<4x14xf32>
    %c32_302 = arith.constant 32 : index
    %c1280_303 = arith.constant 1280 : index
    %364 = vector.load %arg5[%c32_302, %c1280_303] : memref<36x1792xf32, #tpu.memory_space<vmem>>, vector<4x14xf32>
    tpu.vector_store %arg5[%c32_302, %c1280_303], %363 {strides = array<i32>} : memref<36x1792xf32, #tpu.memory_space<vmem>>, vector<4x14xf32>,
    %c0_304 = arith.constant 0 : index
    %c11_305 = arith.constant 11 : index
    %c0_306 = arith.constant 0 : index
    %c0_307 = arith.constant 0 : index
    %365 = vector.load %arg1[%c0_304, %c11_305, %c0_306, %c0_307] : memref<1x16x4x16xbf16, #tpu.memory_space<vmem>>, vector<1x1x4x16xbf16>
    %366 = vector.shape_cast %365 : vector<1x1x4x16xbf16> to vector<4x16xbf16>
    %367 = vector.extract_strided_slice %366 {offsets = [0, 0], sizes = [4, 14], strides = [1, 1]} : vector<4x16xbf16> to vector<4x14xbf16>
    %368 = arith.extf %367 : vector<4x14xbf16> to vector<4x14xf32>
    %c0_308 = arith.constant 0 : index
    %c1408 = arith.constant 1408 : index
    %369 = vector.load %arg5[%c0_308, %c1408] : memref<36x1792xf32, #tpu.memory_space<vmem>>, vector<4x14xf32>
    tpu.vector_store %arg5[%c0_308, %c1408], %368 {strides = array<i32>} : memref<36x1792xf32, #tpu.memory_space<vmem>>, vector<4x14xf32>,
    %370 = vector.extract_strided_slice %366 {offsets = [0, 1], sizes = [4, 14], strides = [1, 1]} : vector<4x16xbf16> to vector<4x14xbf16>
    %371 = arith.extf %370 : vector<4x14xbf16> to vector<4x14xf32>
    %c4_309 = arith.constant 4 : index
    %c1408_310 = arith.constant 1408 : index
    %372 = vector.load %arg5[%c4_309, %c1408_310] : memref<36x1792xf32, #tpu.memory_space<vmem>>, vector<4x14xf32>
    tpu.vector_store %arg5[%c4_309, %c1408_310], %371 {strides = array<i32>} : memref<36x1792xf32, #tpu.memory_space<vmem>>, vector<4x14xf32>,
    %373 = vector.extract_strided_slice %366 {offsets = [0, 2], sizes = [4, 14], strides = [1, 1]} : vector<4x16xbf16> to vector<4x14xbf16>
    %374 = arith.extf %373 : vector<4x14xbf16> to vector<4x14xf32>
    %c8_311 = arith.constant 8 : index
    %c1408_312 = arith.constant 1408 : index
    %375 = vector.load %arg5[%c8_311, %c1408_312] : memref<36x1792xf32, #tpu.memory_space<vmem>>, vector<4x14xf32>
    tpu.vector_store %arg5[%c8_311, %c1408_312], %374 {strides = array<i32>} : memref<36x1792xf32, #tpu.memory_space<vmem>>, vector<4x14xf32>,
    %c0_313 = arith.constant 0 : index
    %c12_314 = arith.constant 12 : index
    %c0_315 = arith.constant 0 : index
    %c0_316 = arith.constant 0 : index
    %376 = vector.load %arg1[%c0_313, %c12_314, %c0_315, %c0_316] : memref<1x16x4x16xbf16, #tpu.memory_space<vmem>>, vector<1x1x4x16xbf16>
    %377 = vector.shape_cast %376 : vector<1x1x4x16xbf16> to vector<4x16xbf16>
    %378 = vector.extract_strided_slice %377 {offsets = [0, 0], sizes = [4, 14], strides = [1, 1]} : vector<4x16xbf16> to vector<4x14xbf16>
    %379 = arith.extf %378 : vector<4x14xbf16> to vector<4x14xf32>
    %c12_317 = arith.constant 12 : index
    %c1408_318 = arith.constant 1408 : index
    %380 = vector.load %arg5[%c12_317, %c1408_318] : memref<36x1792xf32, #tpu.memory_space<vmem>>, vector<4x14xf32>
    tpu.vector_store %arg5[%c12_317, %c1408_318], %379 {strides = array<i32>} : memref<36x1792xf32, #tpu.memory_space<vmem>>, vector<4x14xf32>,
    %381 = vector.extract_strided_slice %377 {offsets = [0, 1], sizes = [4, 14], strides = [1, 1]} : vector<4x16xbf16> to vector<4x14xbf16>
    %382 = arith.extf %381 : vector<4x14xbf16> to vector<4x14xf32>
    %c16_319 = arith.constant 16 : index
    %c1408_320 = arith.constant 1408 : index
    %383 = vector.load %arg5[%c16_319, %c1408_320] : memref<36x1792xf32, #tpu.memory_space<vmem>>, vector<4x14xf32>
    tpu.vector_store %arg5[%c16_319, %c1408_320], %382 {strides = array<i32>} : memref<36x1792xf32, #tpu.memory_space<vmem>>, vector<4x14xf32>,
    %384 = vector.extract_strided_slice %377 {offsets = [0, 2], sizes = [4, 14], strides = [1, 1]} : vector<4x16xbf16> to vector<4x14xbf16>
    %385 = arith.extf %384 : vector<4x14xbf16> to vector<4x14xf32>
    %c20_321 = arith.constant 20 : index
    %c1408_322 = arith.constant 1408 : index
    %386 = vector.load %arg5[%c20_321, %c1408_322] : memref<36x1792xf32, #tpu.memory_space<vmem>>, vector<4x14xf32>
    tpu.vector_store %arg5[%c20_321, %c1408_322], %385 {strides = array<i32>} : memref<36x1792xf32, #tpu.memory_space<vmem>>, vector<4x14xf32>,
    %c0_323 = arith.constant 0 : index
    %c13 = arith.constant 13 : index
    %c0_324 = arith.constant 0 : index
    %c0_325 = arith.constant 0 : index
    %387 = vector.load %arg1[%c0_323, %c13, %c0_324, %c0_325] : memref<1x16x4x16xbf16, #tpu.memory_space<vmem>>, vector<1x1x4x16xbf16>
    %388 = vector.shape_cast %387 : vector<1x1x4x16xbf16> to vector<4x16xbf16>
    %389 = vector.extract_strided_slice %388 {offsets = [0, 0], sizes = [4, 14], strides = [1, 1]} : vector<4x16xbf16> to vector<4x14xbf16>
    %390 = arith.extf %389 : vector<4x14xbf16> to vector<4x14xf32>
    %c24_326 = arith.constant 24 : index
    %c1408_327 = arith.constant 1408 : index
    %391 = vector.load %arg5[%c24_326, %c1408_327] : memref<36x1792xf32, #tpu.memory_space<vmem>>, vector<4x14xf32>
    tpu.vector_store %arg5[%c24_326, %c1408_327], %390 {strides = array<i32>} : memref<36x1792xf32, #tpu.memory_space<vmem>>, vector<4x14xf32>,
    %392 = vector.extract_strided_slice %388 {offsets = [0, 1], sizes = [4, 14], strides = [1, 1]} : vector<4x16xbf16> to vector<4x14xbf16>
    %393 = arith.extf %392 : vector<4x14xbf16> to vector<4x14xf32>
    %c28_328 = arith.constant 28 : index
    %c1408_329 = arith.constant 1408 : index
    %394 = vector.load %arg5[%c28_328, %c1408_329] : memref<36x1792xf32, #tpu.memory_space<vmem>>, vector<4x14xf32>
    tpu.vector_store %arg5[%c28_328, %c1408_329], %393 {strides = array<i32>} : memref<36x1792xf32, #tpu.memory_space<vmem>>, vector<4x14xf32>,
    %395 = vector.extract_strided_slice %388 {offsets = [0, 2], sizes = [4, 14], strides = [1, 1]} : vector<4x16xbf16> to vector<4x14xbf16>
    %396 = arith.extf %395 : vector<4x14xbf16> to vector<4x14xf32>
    %c32_330 = arith.constant 32 : index
    %c1408_331 = arith.constant 1408 : index
    %397 = vector.load %arg5[%c32_330, %c1408_331] : memref<36x1792xf32, #tpu.memory_space<vmem>>, vector<4x14xf32>
    tpu.vector_store %arg5[%c32_330, %c1408_331], %396 {strides = array<i32>} : memref<36x1792xf32, #tpu.memory_space<vmem>>, vector<4x14xf32>,
    %c0_332 = arith.constant 0 : index
    %c12_333 = arith.constant 12 : index
    %c0_334 = arith.constant 0 : index
    %c0_335 = arith.constant 0 : index
    %398 = vector.load %arg1[%c0_332, %c12_333, %c0_334, %c0_335] : memref<1x16x4x16xbf16, #tpu.memory_space<vmem>>, vector<1x1x4x16xbf16>
    %399 = vector.shape_cast %398 : vector<1x1x4x16xbf16> to vector<4x16xbf16>
    %400 = vector.extract_strided_slice %399 {offsets = [0, 0], sizes = [4, 14], strides = [1, 1]} : vector<4x16xbf16> to vector<4x14xbf16>
    %401 = arith.extf %400 : vector<4x14xbf16> to vector<4x14xf32>
    %c0_336 = arith.constant 0 : index
    %c1536 = arith.constant 1536 : index
    %402 = vector.load %arg5[%c0_336, %c1536] : memref<36x1792xf32, #tpu.memory_space<vmem>>, vector<4x14xf32>
    tpu.vector_store %arg5[%c0_336, %c1536], %401 {strides = array<i32>} : memref<36x1792xf32, #tpu.memory_space<vmem>>, vector<4x14xf32>,
    %403 = vector.extract_strided_slice %399 {offsets = [0, 1], sizes = [4, 14], strides = [1, 1]} : vector<4x16xbf16> to vector<4x14xbf16>
    %404 = arith.extf %403 : vector<4x14xbf16> to vector<4x14xf32>
    %c4_337 = arith.constant 4 : index
    %c1536_338 = arith.constant 1536 : index
    %405 = vector.load %arg5[%c4_337, %c1536_338] : memref<36x1792xf32, #tpu.memory_space<vmem>>, vector<4x14xf32>
    tpu.vector_store %arg5[%c4_337, %c1536_338], %404 {strides = array<i32>} : memref<36x1792xf32, #tpu.memory_space<vmem>>, vector<4x14xf32>,
    %406 = vector.extract_strided_slice %399 {offsets = [0, 2], sizes = [4, 14], strides = [1, 1]} : vector<4x16xbf16> to vector<4x14xbf16>
    %407 = arith.extf %406 : vector<4x14xbf16> to vector<4x14xf32>
    %c8_339 = arith.constant 8 : index
    %c1536_340 = arith.constant 1536 : index
    %408 = vector.load %arg5[%c8_339, %c1536_340] : memref<36x1792xf32, #tpu.memory_space<vmem>>, vector<4x14xf32>
    tpu.vector_store %arg5[%c8_339, %c1536_340], %407 {strides = array<i32>} : memref<36x1792xf32, #tpu.memory_space<vmem>>, vector<4x14xf32>,
    %c0_341 = arith.constant 0 : index
    %c13_342 = arith.constant 13 : index
    %c0_343 = arith.constant 0 : index
    %c0_344 = arith.constant 0 : index
    %409 = vector.load %arg1[%c0_341, %c13_342, %c0_343, %c0_344] : memref<1x16x4x16xbf16, #tpu.memory_space<vmem>>, vector<1x1x4x16xbf16>
    %410 = vector.shape_cast %409 : vector<1x1x4x16xbf16> to vector<4x16xbf16>
    %411 = vector.extract_strided_slice %410 {offsets = [0, 0], sizes = [4, 14], strides = [1, 1]} : vector<4x16xbf16> to vector<4x14xbf16>
    %412 = arith.extf %411 : vector<4x14xbf16> to vector<4x14xf32>
    %c12_345 = arith.constant 12 : index
    %c1536_346 = arith.constant 1536 : index
    %413 = vector.load %arg5[%c12_345, %c1536_346] : memref<36x1792xf32, #tpu.memory_space<vmem>>, vector<4x14xf32>
    tpu.vector_store %arg5[%c12_345, %c1536_346], %412 {strides = array<i32>} : memref<36x1792xf32, #tpu.memory_space<vmem>>, vector<4x14xf32>,
    %414 = vector.extract_strided_slice %410 {offsets = [0, 1], sizes = [4, 14], strides = [1, 1]} : vector<4x16xbf16> to vector<4x14xbf16>
    %415 = arith.extf %414 : vector<4x14xbf16> to vector<4x14xf32>
    %c16_347 = arith.constant 16 : index
    %c1536_348 = arith.constant 1536 : index
    %416 = vector.load %arg5[%c16_347, %c1536_348] : memref<36x1792xf32, #tpu.memory_space<vmem>>, vector<4x14xf32>
    tpu.vector_store %arg5[%c16_347, %c1536_348], %415 {strides = array<i32>} : memref<36x1792xf32, #tpu.memory_space<vmem>>, vector<4x14xf32>,
    %417 = vector.extract_strided_slice %410 {offsets = [0, 2], sizes = [4, 14], strides = [1, 1]} : vector<4x16xbf16> to vector<4x14xbf16>
    %418 = arith.extf %417 : vector<4x14xbf16> to vector<4x14xf32>
    %c20_349 = arith.constant 20 : index
    %c1536_350 = arith.constant 1536 : index
    %419 = vector.load %arg5[%c20_349, %c1536_350] : memref<36x1792xf32, #tpu.memory_space<vmem>>, vector<4x14xf32>
    tpu.vector_store %arg5[%c20_349, %c1536_350], %418 {strides = array<i32>} : memref<36x1792xf32, #tpu.memory_space<vmem>>, vector<4x14xf32>,
    %c0_351 = arith.constant 0 : index
    %c14 = arith.constant 14 : index
    %c0_352 = arith.constant 0 : index
    %c0_353 = arith.constant 0 : index
    %420 = vector.load %arg1[%c0_351, %c14, %c0_352, %c0_353] : memref<1x16x4x16xbf16, #tpu.memory_space<vmem>>, vector<1x1x4x16xbf16>
    %421 = vector.shape_cast %420 : vector<1x1x4x16xbf16> to vector<4x16xbf16>
    %422 = vector.extract_strided_slice %421 {offsets = [0, 0], sizes = [4, 14], strides = [1, 1]} : vector<4x16xbf16> to vector<4x14xbf16>
    %423 = arith.extf %422 : vector<4x14xbf16> to vector<4x14xf32>
    %c24_354 = arith.constant 24 : index
    %c1536_355 = arith.constant 1536 : index
    %424 = vector.load %arg5[%c24_354, %c1536_355] : memref<36x1792xf32, #tpu.memory_space<vmem>>, vector<4x14xf32>
    tpu.vector_store %arg5[%c24_354, %c1536_355], %423 {strides = array<i32>} : memref<36x1792xf32, #tpu.memory_space<vmem>>, vector<4x14xf32>,
    %425 = vector.extract_strided_slice %421 {offsets = [0, 1], sizes = [4, 14], strides = [1, 1]} : vector<4x16xbf16> to vector<4x14xbf16>
    %426 = arith.extf %425 : vector<4x14xbf16> to vector<4x14xf32>
    %c28_356 = arith.constant 28 : index
    %c1536_357 = arith.constant 1536 : index
    %427 = vector.load %arg5[%c28_356, %c1536_357] : memref<36x1792xf32, #tpu.memory_space<vmem>>, vector<4x14xf32>
    tpu.vector_store %arg5[%c28_356, %c1536_357], %426 {strides = array<i32>} : memref<36x1792xf32, #tpu.memory_space<vmem>>, vector<4x14xf32>,
    %428 = vector.extract_strided_slice %421 {offsets = [0, 2], sizes = [4, 14], strides = [1, 1]} : vector<4x16xbf16> to vector<4x14xbf16>
    %429 = arith.extf %428 : vector<4x14xbf16> to vector<4x14xf32>
    %c32_358 = arith.constant 32 : index
    %c1536_359 = arith.constant 1536 : index
    %430 = vector.load %arg5[%c32_358, %c1536_359] : memref<36x1792xf32, #tpu.memory_space<vmem>>, vector<4x14xf32>
    tpu.vector_store %arg5[%c32_358, %c1536_359], %429 {strides = array<i32>} : memref<36x1792xf32, #tpu.memory_space<vmem>>, vector<4x14xf32>,
    %c0_360 = arith.constant 0 : index
    %c13_361 = arith.constant 13 : index
    %c0_362 = arith.constant 0 : index
    %c0_363 = arith.constant 0 : index
    %431 = vector.load %arg1[%c0_360, %c13_361, %c0_362, %c0_363] : memref<1x16x4x16xbf16, #tpu.memory_space<vmem>>, vector<1x1x4x16xbf16>
    %432 = vector.shape_cast %431 : vector<1x1x4x16xbf16> to vector<4x16xbf16>
    %433 = vector.extract_strided_slice %432 {offsets = [0, 0], sizes = [4, 14], strides = [1, 1]} : vector<4x16xbf16> to vector<4x14xbf16>
    %434 = arith.extf %433 : vector<4x14xbf16> to vector<4x14xf32>
    %c0_364 = arith.constant 0 : index
    %c1664 = arith.constant 1664 : index
    %435 = vector.load %arg5[%c0_364, %c1664] : memref<36x1792xf32, #tpu.memory_space<vmem>>, vector<4x14xf32>
    tpu.vector_store %arg5[%c0_364, %c1664], %434 {strides = array<i32>} : memref<36x1792xf32, #tpu.memory_space<vmem>>, vector<4x14xf32>,
    %436 = vector.extract_strided_slice %432 {offsets = [0, 1], sizes = [4, 14], strides = [1, 1]} : vector<4x16xbf16> to vector<4x14xbf16>
    %437 = arith.extf %436 : vector<4x14xbf16> to vector<4x14xf32>
    %c4_365 = arith.constant 4 : index
    %c1664_366 = arith.constant 1664 : index
    %438 = vector.load %arg5[%c4_365, %c1664_366] : memref<36x1792xf32, #tpu.memory_space<vmem>>, vector<4x14xf32>
    tpu.vector_store %arg5[%c4_365, %c1664_366], %437 {strides = array<i32>} : memref<36x1792xf32, #tpu.memory_space<vmem>>, vector<4x14xf32>,
    %439 = vector.extract_strided_slice %432 {offsets = [0, 2], sizes = [4, 14], strides = [1, 1]} : vector<4x16xbf16> to vector<4x14xbf16>
    %440 = arith.extf %439 : vector<4x14xbf16> to vector<4x14xf32>
    %c8_367 = arith.constant 8 : index
    %c1664_368 = arith.constant 1664 : index
    %441 = vector.load %arg5[%c8_367, %c1664_368] : memref<36x1792xf32, #tpu.memory_space<vmem>>, vector<4x14xf32>
    tpu.vector_store %arg5[%c8_367, %c1664_368], %440 {strides = array<i32>} : memref<36x1792xf32, #tpu.memory_space<vmem>>, vector<4x14xf32>,
    %c0_369 = arith.constant 0 : index
    %c14_370 = arith.constant 14 : index
    %c0_371 = arith.constant 0 : index
    %c0_372 = arith.constant 0 : index
    %442 = vector.load %arg1[%c0_369, %c14_370, %c0_371, %c0_372] : memref<1x16x4x16xbf16, #tpu.memory_space<vmem>>, vector<1x1x4x16xbf16>
    %443 = vector.shape_cast %442 : vector<1x1x4x16xbf16> to vector<4x16xbf16>
    %444 = vector.extract_strided_slice %443 {offsets = [0, 0], sizes = [4, 14], strides = [1, 1]} : vector<4x16xbf16> to vector<4x14xbf16>
    %445 = arith.extf %444 : vector<4x14xbf16> to vector<4x14xf32>
    %c12_373 = arith.constant 12 : index
    %c1664_374 = arith.constant 1664 : index
    %446 = vector.load %arg5[%c12_373, %c1664_374] : memref<36x1792xf32, #tpu.memory_space<vmem>>, vector<4x14xf32>
    tpu.vector_store %arg5[%c12_373, %c1664_374], %445 {strides = array<i32>} : memref<36x1792xf32, #tpu.memory_space<vmem>>, vector<4x14xf32>,
    %447 = vector.extract_strided_slice %443 {offsets = [0, 1], sizes = [4, 14], strides = [1, 1]} : vector<4x16xbf16> to vector<4x14xbf16>
    %448 = arith.extf %447 : vector<4x14xbf16> to vector<4x14xf32>
    %c16_375 = arith.constant 16 : index
    %c1664_376 = arith.constant 1664 : index
    %449 = vector.load %arg5[%c16_375, %c1664_376] : memref<36x1792xf32, #tpu.memory_space<vmem>>, vector<4x14xf32>
    tpu.vector_store %arg5[%c16_375, %c1664_376], %448 {strides = array<i32>} : memref<36x1792xf32, #tpu.memory_space<vmem>>, vector<4x14xf32>,
    %450 = vector.extract_strided_slice %443 {offsets = [0, 2], sizes = [4, 14], strides = [1, 1]} : vector<4x16xbf16> to vector<4x14xbf16>
    %451 = arith.extf %450 : vector<4x14xbf16> to vector<4x14xf32>
    %c20_377 = arith.constant 20 : index
    %c1664_378 = arith.constant 1664 : index
    %452 = vector.load %arg5[%c20_377, %c1664_378] : memref<36x1792xf32, #tpu.memory_space<vmem>>, vector<4x14xf32>
    tpu.vector_store %arg5[%c20_377, %c1664_378], %451 {strides = array<i32>} : memref<36x1792xf32, #tpu.memory_space<vmem>>, vector<4x14xf32>,
    %c0_379 = arith.constant 0 : index
    %c15 = arith.constant 15 : index
    %c0_380 = arith.constant 0 : index
    %c0_381 = arith.constant 0 : index
    %453 = vector.load %arg1[%c0_379, %c15, %c0_380, %c0_381] : memref<1x16x4x16xbf16, #tpu.memory_space<vmem>>, vector<1x1x4x16xbf16>
    %454 = vector.shape_cast %453 : vector<1x1x4x16xbf16> to vector<4x16xbf16>
    %455 = vector.extract_strided_slice %454 {offsets = [0, 0], sizes = [4, 14], strides = [1, 1]} : vector<4x16xbf16> to vector<4x14xbf16>
    %456 = arith.extf %455 : vector<4x14xbf16> to vector<4x14xf32>
    %c24_382 = arith.constant 24 : index
    %c1664_383 = arith.constant 1664 : index
    %457 = vector.load %arg5[%c24_382, %c1664_383] : memref<36x1792xf32, #tpu.memory_space<vmem>>, vector<4x14xf32>
    tpu.vector_store %arg5[%c24_382, %c1664_383], %456 {strides = array<i32>} : memref<36x1792xf32, #tpu.memory_space<vmem>>, vector<4x14xf32>,
    %458 = vector.extract_strided_slice %454 {offsets = [0, 1], sizes = [4, 14], strides = [1, 1]} : vector<4x16xbf16> to vector<4x14xbf16>
    %459 = arith.extf %458 : vector<4x14xbf16> to vector<4x14xf32>
    %c28_384 = arith.constant 28 : index
    %c1664_385 = arith.constant 1664 : index
    %460 = vector.load %arg5[%c28_384, %c1664_385] : memref<36x1792xf32, #tpu.memory_space<vmem>>, vector<4x14xf32>
    tpu.vector_store %arg5[%c28_384, %c1664_385], %459 {strides = array<i32>} : memref<36x1792xf32, #tpu.memory_space<vmem>>, vector<4x14xf32>,
    %461 = vector.extract_strided_slice %454 {offsets = [0, 2], sizes = [4, 14], strides = [1, 1]} : vector<4x16xbf16> to vector<4x14xbf16>
    %462 = arith.extf %461 : vector<4x14xbf16> to vector<4x14xf32>
    %c32_386 = arith.constant 32 : index
    %c1664_387 = arith.constant 1664 : index
    %463 = vector.load %arg5[%c32_386, %c1664_387] : memref<36x1792xf32, #tpu.memory_space<vmem>>, vector<4x14xf32>
    tpu.vector_store %arg5[%c32_386, %c1664_387], %462 {strides = array<i32>} : memref<36x1792xf32, #tpu.memory_space<vmem>>, vector<4x14xf32>,
    %c0_388 = arith.constant 0 : index
    %c0_389 = arith.constant 0 : index
    %464 = vector.load %arg2[%c0_388, %c0_389] : memref<8x36xbf16, #tpu.memory_space<vmem>>, vector<8x36xbf16>
    %c0_390 = arith.constant 0 : index
    %c0_391 = arith.constant 0 : index
    %465 = vector.load %arg5[%c0_390, %c0_391] : memref<36x1792xf32, #tpu.memory_space<vmem>>, vector<36x1792xf32>
    %466 = arith.truncf %465 : vector<36x1792xf32> to vector<36x1792xbf16>
    %cst_392 = arith.constant dense<0.000000e+00> : vector<8x1792xf32>
    %467 = tpu.matmul %464, %466, %cst_392 {dimension_numbers = #tpu.dot_dimension_numbers<[1], [0], [0], [1], [0, 0, 1, 1], [], []>} : vector<8x36xbf16>, vector<36x1792xbf16>, vector<8x1792xf32> -> vector<8x1792xf32>
    %c0_393 = arith.constant 0 : index
    %c0_394 = arith.constant 0 : index
    %468 = vector.load %arg3[%c0_393, %c0_394] : memref<8x1xf32, #tpu.memory_space<vmem>>, vector<8x1xf32>
    %469 = vector.broadcast %468 : vector<8x1xf32> to vector<8x1792xf32>
    %470 = arith.addf %467, %469 : vector<8x1792xf32>
    %c0_395 = arith.constant 0 : index
    %c0_396 = arith.constant 0 : index
    %c0_397 = arith.constant 0 : index
    %471 = vector.load %arg4[%c0_395, %c0_396, %c0_397] : memref<1x8x1792xf32, #tpu.memory_space<vmem>>, vector<1x8x1792xf32>
    %472 = vector.shape_cast %471 : vector<1x8x1792xf32> to vector<8x1792xf32>
    %473 = vector.shape_cast %470 : vector<8x1792xf32> to vector<1x8x1792xf32>
    tpu.vector_store %arg4[%c0_395, %c0_396, %c0_397], %473 {strides = array<i32>} : memref<1x8x1792xf32, #tpu.memory_space<vmem>>, vector<1x8x1792xf32>,
    return
  }
  func.func @transform_0(%arg0: i32) -> (i32, i32, i32, i32) {
    %c0_i32 = arith.constant 0 : i32
    %c0_i32_0 = arith.constant 0 : i32
    %c0_i32_1 = arith.constant 0 : i32
    %c0_i32_2 = arith.constant 0 : i32
    return %arg0, %c0_i32, %c0_i32_0, %c0_i32_1 : i32, i32, i32, i32
  }
  func.func @transform_1(%arg0: i32) -> (i32, i32) {
    %c0_i32 = arith.constant 0 : i32
    %c0_i32_0 = arith.constant 0 : i32
    %c0_i32_1 = arith.constant 0 : i32
    return %c0_i32, %c0_i32_0 : i32, i32
  }
  func.func @transform_2(%arg0: i32) -> (i32, i32) {
    %c0_i32 = arith.constant 0 : i32
    %c0_i32_0 = arith.constant 0 : i32
    %c0_i32_1 = arith.constant 0 : i32
    return %c0_i32, %c0_i32_0 : i32, i32
  }
  func.func @transform_3(%arg0: i32) -> (i32, i32, i32) {
    %c0_i32 = arith.constant 0 : i32
    %c0_i32_0 = arith.constant 0 : i32
    %c0_i32_1 = arith.constant 0 : i32
    return %arg0, %c0_i32, %c0_i32_0 : i32, i32, i32
  }
}

</mosaic_0001>

<bundles_post_ra>
// kernel: conv2d_pallas.1
= control target key start
LH: loop header
LB: loop body
LE: loop exit
PB: predicated region body
PF: predicated region fallthrough
CT: control target
= control target key end

     0   :  { %8 = vsyncpa [#allocation4], 0  ;;  %s2469_s0 = inlined_call_operand.vmem [shape: bf16[2,16,4,16], index: 0, kind: input, shape index: {}]   ;;  %s2470_s1 = inlined_call_operand.vmem [shape: bf16[8,36], index: 1, kind: input, shape index: {}]   ;;  %s2471_s2 = inlined_call_operand.vmem [shape: f32[8,1], index: 2, kind: input, shape index: {}]   ;;  %s2472_s3 = inlined_call_operand.hbm [shape: f32[2,8,1792], index: 3, kind: output, shape index: {}]  }
   0x1   :  { %10 = vsyncpa [#allocation4 + $0x1], 0  ;;  %s1768_s12 = smov 0   ;;  %s1770_s13 = smov 0  }
   0x2   :  { %s1772_s14 = smov 0   ;;  %s1774_s15 = smov 0  }
   0x3 LB: > { %s1789_s16 = sadd.s32 4294967295, %s1741_s15   ;;  %s1358_s17 = sadd.s32 4294967294, %s1741_s15   ;;  %s1741_s15 = sphi %s1774_s15, %s2478_s15   ;;  %s1737_s14 = sphi %s1772_s14, %s2477_s14   ;;  %s1733_s13 = sphi %s1770_s13, %s2476_s13   ;;  %s1729_s12 = sphi %s1768_s12, %s2475_s12  }
   0x4   : > { %s1793_s18 = sadd.s32 1, %s1741_s15   ;;  %s91_s19 = sadd.s32 1, %s1737_s14 }
   0x5   : > { %s88_s20 = ssub.s32 %s1741_s15, %s1793_s18  ;;  %p101_p0 = scmp.ne.s32.totalorder %s1737_s14, %s1733_s13 }
   0x6   : > { %p89_p1 = scmp.eq.s32.totalorder %s88_s20, 0  ;;  %p102_p2 = scmp.eq.s32.totalorder %s1789_s16, 1 }
   0x7   : > { %p107_p3 = scmp.ne.s32.totalorder %s1733_s13, %s1729_s12  ;;  %p108_p4 = scmp.eq.s32.totalorder %s1358_s17, 1 }
   0x8   : > { %s1804_s21 = scalar_select %p89_p1, %s1737_s14, %s91_s19  }
   0x9   : > { %p1806_p5 = por %p102_p2, %p101_p0  ;;  %p1810_p6 = por %p108_p4, %p107_p3 }
   0xa   : > { %p1361_p7 = scmp.ge.s32.totalorder %s1741_s15, 1  ;;  %p140_p8 = scmp.lt.s32.totalorder %s1741_s15, 3 }
   0xc   : > { %p141_p9 = pnand %p1361_p7, %p140_p8 }
   0xd   : > { %p164_p10 = scmp.lt.s32.totalorder (!%p141_p9), %s1789_s16, 1  ;;  %v1743_v0 = vmov (!%p141_p9), 0.0   ;;  %vm242_vm0 = vcmask (!%p141_p9), 109568   ;;  %vm249_vm1 = vcmask (!%p141_p9), 113668   ;;  %s1744_s29 = smov (!%p141_p9), 126   ;;  %vm940_vm2 = vcmask (!%p141_p9), 1041408  }
   0xe   : > { %144 = sbr.rel (%p141_p9) target bundleno = 476 (0x1dc), region = 32  ;;  %226 = vst [vmem:[#allocation2 + $0x1c0] sm:$0xf] (!%p141_p9), %v1743_v0  ;;  %227 = vst [vmem:[#allocation2 + $0x1c8] sm:$0xf] (!%p141_p9), %v1743_v0  ;;  %s1745_s30 = smov (!%p141_p9), 127  }
   0xf   : > { %170 = vst [vmem:[#allocation2] sm:$0xff] (!%p141_p9), %v1743_v0  ;;  %171 = vst [vmem:[#allocation2 + $0x8] sm:$0xff] (!%p141_p9), %v1743_v0  ;;  %vm936_vm3 = vcmask (!%p141_p9), 293888   ;;  %s161_s8 = sand.u32 (!%p141_p9), 1, %s1733_s13   ;;  %s1424_s11 = smul.u32 (!%p141_p9), 1792, %s1789_s16 }
  0x10   : > { %172 = vst [vmem:[#allocation2 + $0x10] sm:$0xff] (!%p141_p9), %v1743_v0  ;;  %173 = vst [vmem:[#allocation2 + $0x18] sm:$0xff] (!%p141_p9), %v1743_v0  ;;  %s1423_s9 = smul.u32 (!%p141_p9), 112, %s161_s8  ;;  %s1747_s26 = smov (!%p141_p9), [#allocation3]  }
  0x11   : > { %174 = vst [vmem:[#allocation2 + $0x20] sm:$0xff] (!%p141_p9), %v1743_v0  ;;  %175 = vst [vmem:[#allocation2 + $0x28] sm:$0xff] (!%p141_p9), %v1743_v0  ;;  %s2422_s20 = scalar_lea.hbm (!%p141_p9), %s2472_s3, %s1424_s11  ;;  %s1683_s27 = sshll.u32 (!%p141_p9), %s1747_s26, 4  ;;  %s1684_s27 = int_to_ptr.vmem [resolvable:$false] %s1683_s27 }
  0x12   : > { %176 = vst [vmem:[#allocation2 + $0x30] sm:$0xff] (!%p141_p9), %v1743_v0  ;;  %177 = vst [vmem:[#allocation2 + $0x38] sm:$0xff] (!%p141_p9), %v1743_v0  ;;  %s2404_s10 = scalar_lea.vmem (!%p141_p9), [#allocation3], %s1423_s9 }
  0x13   : > { %178 = vst [vmem:[#allocation2 + $0x40] sm:$0xff] (!%p141_p9), %v1743_v0  ;;  %179 = vst [vmem:[#allocation2 + $0x48] sm:$0xff] (!%p141_p9), %v1743_v0  ;;  %s1299_s17 = sshll.u32 (!%p141_p9), %s2404_s10, 4  ;;  %s2424_s17 = int_to_ptr.vmem [resolvable:$true] %s1299_s17 }
  0x14   : > { %180 = vst [vmem:[#allocation2 + $0x50] sm:$0xff] (!%p141_p9), %v1743_v0  ;;  %181 = vst [vmem:[#allocation2 + $0x58] sm:$0xff] (!%p141_p9), %v1743_v0  ;;  %p1686_p0 = scmp.lt.s32.totalorder (!%p141_p9), %s2424_s17, %s1684_s27 }
  0x15   : > { %182 = vst [vmem:[#allocation2 + $0x60] sm:$0xff] %v1743_v0  ;;  %183 = vst [vmem:[#allocation2 + $0x68] sm:$0xff] %v1743_v0  ;;  %s165_s24 = scalar_select %p164_p10, %s1789_s16, 1 }
  0x16   : > { %184 = vst [vmem:[#allocation2 + $0x70] sm:$0xff] %v1743_v0  ;;  %185 = vst [vmem:[#allocation2 + $0x78] sm:$0xff] %v1743_v0 }
  0x17   : > { %186 = vst [vmem:[#allocation2 + $0x80] sm:$0xff] %v1743_v0  ;;  %187 = vst [vmem:[#allocation2 + $0x88] sm:$0xff] %v1743_v0  ;;  %s1422_s25 = sshll.u32 %s165_s24, 5  ;;  %s1285_s24 = scalar_lea.sflag [#allocation4], %s161_s8 }
  0x18   : > { %188 = vst [vmem:[#allocation2 + $0x90] sm:$0xff] %v1743_v0  ;;  %189 = vst [vmem:[#allocation2 + $0x98] sm:$0xff] %v1743_v0  ;;  %s1893_s28 = scalar_lea.vmem %s2469_s0, %s1422_s25  ;;  %s1679_s25 = scalar_lea.vmem %s2424_s17, 1792 }
  0x19   : > { %190 = vst [vmem:[#allocation2 + $0xa0] sm:$0xff] %v1743_v0  ;;  %191 = vst [vmem:[#allocation2 + $0xa8] sm:$0xff] %v1743_v0  ;;  %v1365_v1 = vld [vmem:[%s1893_s28 + $0x4] sm:$0x3]  ;;  %v1368_v2 = vld [vmem:[%s1893_s28 + $0x6] sm:$0x3]  ;;  %p1680_p11 = scmp.ne.s32.totalorder %s2424_s17, %s1679_s25 }
  0x1a   : > { %192 = vst [vmem:[#allocation2 + $0xb0] sm:$0xff] %v1743_v0  ;;  %193 = vst [vmem:[#allocation2 + $0xb8] sm:$0xff] %v1743_v0  ;;  %v240_v3 = vld [vmem:[%s1893_s28] sm:$0x3]  ;;  %v272_v4 = vunpack.c.l.bf16 %v1365_v1  ;;  %v313_v5 = vunpack.c.l.bf16 %v1368_v2  ;;  %v1366_v7 = vld [vmem:[%s1893_s28 + $0x2] sm:$0x3] }
  0x1b   : > { %194 = vst [vmem:[#allocation2 + $0xc0] sm:$0xff] %v1743_v0  ;;  %195 = vst [vmem:[#allocation2 + $0xc8] sm:$0xff] %v1743_v0  ;;  %v241_v6 = vunpack.c.l.bf16 %v240_v3  ;;  %v1367_v8 = vld [vmem:[%s1893_s28 + $0x4] sm:$0x3]  ;;  %v1364_v9 = vld [vmem:[%s1893_s28 + $0x2] sm:$0x3]  ;;  %v285_v10 = vunpack.c.l.bf16 %v1366_v7  ;;  %p1681_p12 = pnand %p1680_p11, %p1806_p5 }
  0x1c   : > { %196 = vst [vmem:[#allocation2 + $0xd0] sm:$0xff] %v1743_v0  ;;  %197 = vst [vmem:[#allocation2 + $0xd8] sm:$0xff] %v1743_v0  ;;  %v298_v11 = vunpack.c.l.bf16 %v1367_v8  ;;  %v257_v12 = vunpack.c.l.bf16 %v1364_v9  ;;  %v1372_v13 = vld [vmem:[%s1893_s28 + $0x6] sm:$0x3]  ;;  %v1378_v14 = vld [vmem:[%s1893_s28 + $0xa] sm:$0x3]  ;;  %v1473_v15 = vpack.i.bf16 %v313_v5, %v272_v4  ;;  %v316_v16 = vcombine.low %v313_v5, %v313_v5 }
  0x1d   : > { %198 = vst [vmem:[#allocation2 + $0xe0] sm:$0xff] %v1743_v0  ;;  %199 = vst [vmem:[#allocation2 + $0xe8] sm:$0xff] %v1743_v0  ;;  %v245_v17 = vcombine.low %v241_v6, %v241_v6  ;;  %v275_v18 = vcombine.low %v272_v4, %v272_v4  ;;  %v1369_v19 = vld [vmem:[%s1893_s28 + $0x4] sm:$0x3]  ;;  %v1375_v20 = vld [vmem:[%s1893_s28 + $0x8] sm:$0x3]  ;;  %v1468_v21 = vpack.i.bf16 %v241_v6, %v285_v10  ;;  %v1911_v27 = vunpack.c.l.bf16 %v1372_v13  ;;  %p1682_p13 = pneg %p1681_p12 }
  0x1e   : > { %200 = vst [vmem:[#allocation2 + $0xf0] sm:$0xff] %v1743_v0  ;;  %201 = vst [vmem:[#allocation2 + $0xf8] sm:$0xff] %v1743_v0  ;;  %v288_v22 = vcombine.low %v285_v10, %v285_v10  ;;  %v259_v23 = vcombine.low %v257_v12, %v257_v12  ;;  %v300_v24 = vcombine.low %v298_v11, %v298_v11  ;;  %v1373_v25 = vld [vmem:[%s1893_s28 + $0x8] sm:$0x3]  ;;  %1474 = vrot.lane.b32.xlu1 %v1473_v15, %s1744_s29  ;;  %v1379_v29 = vld [vmem:[%s1893_s28 + $0xc] sm:$0x3] }
  0x1f   : > { %202 = vst [vmem:[#allocation2 + $0x100] sm:$0xff] %v1743_v0  ;;  %203 = vst [vmem:[#allocation2 + $0x108] sm:$0xff] %v1743_v0  ;;  %v1483_v26 = vpack.i.bf16 %v316_v16, %v298_v11  ;;  %v1913_v28 = vunpack.c.l.bf16 %v1378_v14  ;;  %1469 = vrot.lane.b32.xlu0 %v1468_v21, %s1744_s29  ;;  %v1917_v31 = vunpack.c.l.bf16 %v1369_v19  ;;  %v1919_v32 = vunpack.c.l.bf16 %v1375_v20  ;;  %v1374_v33 = vld [vmem:[%s1893_s28 + $0xa] sm:$0x3]  ;;  %v1370_v34 = vld [vmem:[%s1893_s28 + $0x6] sm:$0x3] }
  0x20   : > { %204 = vst [vmem:[#allocation2 + $0x110] sm:$0xff] %v1743_v0  ;;  %205 = vst [vmem:[#allocation2 + $0x118] sm:$0xff] %v1743_v0  ;;  %v1478_v30 = vpack.i.bf16 %v245_v17, %v288_v22  ;;  %v1925_v35 = vunpack.c.l.bf16 %v1373_v25  ;;  %v1371_v36 = vld [vmem:[%s1893_s28 + $0x8] sm:$0x3]  ;;  %v1380_v37 = vld [vmem:[%s1893_s28 + $0xe] sm:$0x3]  ;;  %v1488_v38 = vpack.i.bf16 %v259_v23, %v300_v24  ;;  %v1493_v39 = vpack.i.bf16 %v275_v18, %v257_v12 }
  0x21   : > { %206 = vst [vmem:[#allocation2 + $0x120] sm:$0xff] %v1743_v0  ;;  %207 = vst [vmem:[#allocation2 + $0x128] sm:$0xff] %v1743_v0  ;;  %v1933_v40 = vunpack.c.l.bf16 %v1379_v29  ;;  %v1376_v41 = vld [vmem:[%s1893_s28 + $0xa] sm:$0x3]  ;;  %v1377_v42 = vld [vmem:[%s1893_s28 + $0xc] sm:$0x3]  ;;  %v370_v43 = vcombine.low %v1911_v27, %v1911_v27  ;;  %v1948_v45 = vunpack.c.l.bf16 %v1374_v33  ;;  %v1950_v46 = vunpack.c.l.bf16 %v1370_v34 }
  0x22   : > { %208 = vst [vmem:[#allocation2 + $0x130] sm:$0xff] %v1743_v0  ;;  %209 = vst [vmem:[#allocation2 + $0x138] sm:$0xff] %v1743_v0  ;;  %1484 = vrot.lane.b32.xlu1 %v1483_v26, %s1745_s30  ;;  %v1946_v44 = vcombine.low %v1925_v35, %v1925_v35  ;;  %v452_v47 = vcombine.low %v1913_v28, %v1913_v28  ;;  %v1959_v49 = vunpack.c.l.bf16 %v1371_v36  ;;  %v1961_v50 = vunpack.c.l.bf16 %v1380_v37  ;;  %v1384_v54 = vld [vmem:[%s1893_s28 + $0xe] sm:$0x3]  ;;  %v1390_v55 = vld [vmem:[%s1893_s28 + $0x12] sm:$0x3] }
  0x23   : > { %210 = vst [vmem:[#allocation2 + $0x140] sm:$0xff] %v1743_v0  ;;  %211 = vst [vmem:[#allocation2 + $0x148] sm:$0xff] %v1743_v0  ;;  %1479 = vrot.lane.b32.xlu0 %v1478_v30, %s1745_s30  ;;  %v1957_v48 = vcombine.low %v1933_v40, %v1933_v40  ;;  %v1963_v51 = vunpack.c.l.bf16 %v1376_v41  ;;  %v1965_v52 = vunpack.c.l.bf16 %v1377_v42  ;;  %v1969_v53 = vcombine.low %v1950_v46, %v1950_v46  ;;  %v1381_v56 = vld [vmem:[%s1893_s28 + $0xc] sm:$0x3]  ;;  %v1387_v57 = vld [vmem:[%s1893_s28 + $0x10] sm:$0x3] }
  0x24   : > { %212 = vst [vmem:[#allocation2 + $0x150] sm:$0xff] %v1743_v0  ;;  %213 = vst [vmem:[#allocation2 + $0x158] sm:$0xff] %v1743_v0  ;;  %v1503_v58 = vpack.i.bf16 %v1913_v28, %v1911_v27  ;;  %v329_v59 = vcombine.low %v1917_v31, %v1917_v31  ;;  %v411_v60 = vcombine.low %v1919_v32, %v1919_v32  ;;  %v1385_v62 = vld [vmem:[%s1893_s28 + $0x10] sm:$0x3]  ;;  %v2004_v1 = vunpack.c.l.bf16 %v1390_v55  ;;  %v1391_v2 = vld [vmem:[%s1893_s28 + $0x14] sm:$0x3] }
  0x25   : > { %214 = vst [vmem:[#allocation2 + $0x160] sm:$0xff] %v1743_v0  ;;  %215 = vst [vmem:[#allocation2 + $0x168] sm:$0xff] %v1743_v0  ;;  %v1994_v61 = vcombine.low %v1963_v51, %v1963_v51  ;;  %v1498_v63 = vpack.i.bf16 %v452_v47, %v370_v43  ;;  %v2007_v3 = vunpack.c.l.bf16 %v1381_v56  ;;  %v2015_v7 = vunpack.c.l.bf16 %v1385_v62  ;;  %v1383_v8 = vld [vmem:[%s1893_s28 + $0x10] sm:$0x3]  ;;  %v1392_v9 = vld [vmem:[%s1893_s28 + $0x16] sm:$0x3] }
  0x26   : > { %216 = vst [vmem:[#allocation2 + $0x170] sm:$0xff] %v1743_v0  ;;  %217 = vst [vmem:[#allocation2 + $0x178] sm:$0xff] %v1743_v0  ;;  %1489 = vrot.lane.b32.xlu1 %v1488_v38, %s1744_s29  ;;  %v1508_v11 = vpack.i.bf16 %v411_v60, %v329_v59  ;;  %v2026_v12 = vunpack.c.l.bf16 %v1391_v2  ;;  %v1388_v13 = vld [vmem:[%s1893_s28 + $0x12] sm:$0x3]  ;;  %v1389_v14 = vld [vmem:[%s1893_s28 + $0x14] sm:$0x3]  ;;  %v398_v15 = vcombine.low %v1948_v45, %v1948_v45  ;;  %v2049_v20 = vunpack.c.l.bf16 %v1383_v8 }
  0x27   : > { %218 = vst [vmem:[#allocation2 + $0x180] sm:$0xff] %v1743_v0  ;;  %219 = vst [vmem:[#allocation2 + $0x188] sm:$0xff] %v1743_v0  ;;  %1494 = vrot.lane.b32.xlu0 %v1493_v39, %s1745_s30  ;;  %v2039_v16 = vcombine.low %v2015_v7, %v2015_v7  ;;  %v2051_v21 = vunpack.c.l.bf16 %v1392_v9  ;;  %v2053_v22 = vunpack.c.l.bf16 %v1388_v13  ;;  %v1396_v25 = vld [vmem:[%s1893_s28 + $0x16] sm:$0x3]  ;;  %v1402_v26 = vld [vmem:[%s1893_s28 + $0x1a] sm:$0x3]  ;;  %v1538_v9 = vpack.i.bf16 %v1994_v61, %v1969_v53 }
  0x28   : > { %220 = vst [vmem:[#allocation2 + $0x190] sm:$0xff] %v1743_v0  ;;  %221 = vst [vmem:[#allocation2 + $0x198] sm:$0xff] %v1743_v0  ;;  %v2047_v19 = vcombine.low %v2026_v12, %v2026_v12  ;;  %v1393_v29 = vld [vmem:[%s1893_s28 + $0x14] sm:$0x3]  ;;  %v1399_v30 = vld [vmem:[%s1893_s28 + $0x18] sm:$0x3]  ;;  %v2093_v36 = vunpack.c.l.bf16 %v1396_v25  ;;  %v2095_v37 = vunpack.c.l.bf16 %v1402_v26  ;;  %v616_v13 = vcombine.low %v2004_v1, %v2004_v1 }
  0x29   : > { %222 = vst [vmem:[#allocation2 + $0x1a0] sm:$0xff] %v1743_v0  ;;  %223 = vst [vmem:[#allocation2 + $0x1a8] sm:$0xff] %v1743_v0  ;;  %v2086_v33 = vcombine.low %v2053_v22, %v2053_v22  ;;  %v1397_v34 = vld [vmem:[%s1893_s28 + $0x18] sm:$0x3]  ;;  %v2098_v38 = vunpack.c.l.bf16 %v1393_v29  ;;  %v2100_v39 = vunpack.c.l.bf16 %v1399_v30  ;;  %v1398_v41 = vld [vmem:[%s1893_s28 + $0x1a] sm:$0x3]  ;;  %v521_v25 = vcombine.low %v2049_v20, %v2049_v20 }
  0x2a   : > { %224 = vst [vmem:[#allocation2 + $0x1b0] sm:$0xff] %v1743_v0  ;;  %225 = vst [vmem:[#allocation2 + $0x1b8] sm:$0xff] %v1743_v0  ;;  %1504 = vrot.lane.b32.xlu1 %v1503_v58, %s1744_s29  ;;  %v1394_v42 = vld [vmem:[%s1893_s28 + $0x16] sm:$0x3]  ;;  %v2110_v47 = vunpack.c.l.bf16 %v1397_v34  ;;  %v2132_v59 = vunpack.c.l.bf16 %v1398_v41 }
  0x2b   : > { %228 = vst [vmem:[#allocation2 + $0x1d0] sm:$0xf] %v1743_v0  ;;  %229 = vst [vmem:[#allocation2 + $0x1d8] sm:$0xf] %v1743_v0  ;;  %1499 = vrot.lane.b32.xlu0 %v1498_v63, %s1745_s30  ;;  %v2134_v60 = vunpack.c.l.bf16 %v1394_v42 }
  0x2c   : > { %230 = vst [vmem:[#allocation2 + $0x1e0] sm:$0xf] %v1743_v0  ;;  %231 = vst [vmem:[#allocation2 + $0x1e8] sm:$0xf] %v1743_v0  ;;  %v2130_v58 = vcombine.low %v2110_v47, %v2110_v47  ;;  %v726_v30 = vcombine.low %v2132_v59, %v2132_v59 }
  0x2d   : > { %232 = vst [vmem:[#allocation2 + $0x1f0] sm:$0xf] %v1743_v0  ;;  %233 = vst [vmem:[#allocation2 + $0x1f8] sm:$0xf] %v1743_v0  ;;  %v2152_v8 = vcombine.low %v2134_v60, %v2134_v60 }
  0x2e   : > { %234 = vst [vmem:[#allocation2 + $0x200] sm:$0xf] %v1743_v0  ;;  %235 = vst [vmem:[#allocation2 + $0x208] sm:$0xf] %v1743_v0 }
  0x2f   : > { %236 = vst [vmem:[#allocation2 + $0x210] sm:$0xf] %v1743_v0  ;;  %237 = vst [vmem:[#allocation2 + $0x218] sm:$0xf] %v1743_v0  ;;  %1509 = vrot.lane.b32.xlu0 %v1508_v11, %s1745_s30 }
  0x30   : > { %238 = vst [vmem:[#allocation2 + $0x220] sm:$0xf] %v1743_v0  ;;  %239 = vst [vmem:[#allocation2 + $0x228] sm:$0xf] %v1743_v0  ;;  %v2002_v0 = vunpack.c.l.bf16 %v1384_v54  ;;  %v1404_v54 = vld [vmem:[%s1893_s28 + $0x1e] sm:$0x3] }
  0x31   : > { %243 = vst.msk [vmem:[#allocation2] sm:$0xf] %vm242_vm0, %v241_v6  ;;  %273 = vst.msk [vmem:[#allocation2 + $0x150] sm:$0xf] %vm242_vm0, %v272_v4  ;;  %v2009_v4 = vunpack.c.l.bf16 %v1387_v57  ;;  %v1382_v6 = vld [vmem:[%s1893_s28 + $0xe] sm:$0x3]  ;;  %v2142_v63 = vunpack.c.l.bf16 %v1404_v54 }
  0x32   : > { %314 = vst.msk [vmem:[#allocation2 + $0x158] sm:$0xf] %vm242_vm0, %v313_v5  ;;  %286 = vst.msk [vmem:[#allocation2 + $0x8] sm:$0xf] %vm242_vm0, %v285_v10  ;;  %v1386_v5 = vld [vmem:[%s1893_s28 + $0x12] sm:$0x3]  ;;  %v1513_v10 = vpack.i.bf16 %v1919_v32, %v1917_v31  ;;  %v2043_v18 = vunpack.c.l.bf16 %v1382_v6  ;;  %v534_v11 = vcombine.low %v2002_v0, %v2002_v0 }
  0x33   : > { %261 = vst.msk [vmem:[#allocation2 + $0x70] sm:$0xf0] %vm249_vm1, %v259_v23  ;;  %302 = vst.msk [vmem:[#allocation2 + $0x78] sm:$0xf0] %vm249_vm1, %v300_v24  ;;  %v2041_v17 = vunpack.c.l.bf16 %v1386_v5  ;;  %v2055_v23 = vunpack.c.l.bf16 %v1389_v14  ;;  %v1401_v57 = vld [vmem:[%s1893_s28 + $0x1c] sm:$0x3]  ;;  %v1573_v14 = vpack.i.bf16 %v2009_v4, %v2007_v3  ;;  %v808_v34 = vcombine.low %v2142_v63, %v2142_v63 }
  0x34   : > { %368 = vst.msk [vmem:[#allocation2 + $0x18] sm:$0xf] %vm242_vm0, %v1911_v27  ;;  %450 = vst.msk [vmem:[#allocation2 + $0x28] sm:$0xf] %vm242_vm0, %v1913_v28  ;;  %v2059_v24 = vcombine.low %v2043_v18, %v2043_v18  ;;  %1514 = vrot.lane.b32.xlu1 %v1513_v10, %s1744_s29  ;;  %v1523_v27 = vpack.i.bf16 %v1957_v48, %v1946_v44  ;;  %v357_v28 = vcombine.low %v1959_v49, %v1959_v49 }
  0x35   : > { %327 = vst.msk [vmem:[#allocation2 + $0x10] sm:$0xf] %vm242_vm0, %v1917_v31  ;;  %409 = vst.msk [vmem:[#allocation2 + $0x20] sm:$0xf] %vm242_vm0, %v1919_v32  ;;  %v1518_v31 = vpack.i.bf16 %v398_v15, %v1925_v35  ;;  %v480_v32 = vcombine.low %v1961_v50, %v1961_v50  ;;  %v1403_v35 = vld [vmem:[%s1893_s28 + $0x1c] sm:$0x3]  ;;  %v2148_v6 = vunpack.c.l.bf16 %v1401_v57  ;;  %v1548_v10 = vpack.i.bf16 %v1948_v45, %v1959_v49 }
  0x36   : > { %384 = vst.msk [vmem:[#allocation2 + $0x88] sm:$0xf0] %vm249_vm1, %v1946_v44  ;;  %466 = vst.msk [vmem:[#allocation2 + $0x98] sm:$0xf0] %vm249_vm1, %v1957_v48  ;;  %v1533_v43 = vpack.i.bf16 %v357_v28, %v1950_v46  ;;  %v439_v44 = vcombine.low %v1965_v52, %v1965_v52  ;;  %v1395_v48 = vld [vmem:[%s1893_s28 + $0x18] sm:$0x3]  ;;  %v2120_v56 = vunpack.c.l.bf16 %v1403_v35  ;;  %v1608_v28 = vpack.i.bf16 %v2041_v17, %v2049_v20 }
  0x37   : > { %396 = vst.msk [vmem:[#allocation2 + $0x168] sm:$0xf] %vm242_vm0, %v1948_v45  ;;  %355 = vst.msk [vmem:[#allocation2 + $0x160] sm:$0xf] %vm242_vm0, %v1959_v49  ;;  %1519 = vrot.lane.b32.xlu0 %v1518_v31, %s1745_s30  ;;  %v1528_v55 = vpack.i.bf16 %v480_v32, %v1933_v40  ;;  %v1400_v46 = vld [vmem:[%s1893_s28 + $0x1a] sm:$0x3]  ;;  %v2140_v62 = vunpack.c.l.bf16 %v1395_v48  ;;  %v493_v45 = vcombine.low %v2007_v3, %v2007_v3 }
  0x38   : > { %478 = vst.msk [vmem:[#allocation2 + $0x178] sm:$0xf] %vm242_vm0, %v1961_v50  ;;  %437 = vst.msk [vmem:[#allocation2 + $0x170] sm:$0xf] %vm242_vm0, %v1965_v52  ;;  %1524 = vrot.lane.b32.xlu1 %v1523_v27, %s1744_s29  ;;  %v2138_v40 = vcombine.low %v2120_v56, %v2120_v56  ;;  %v1543_v2 = vpack.i.bf16 %v439_v44, %v1963_v51  ;;  %v2146_v5 = vunpack.c.l.bf16 %v1400_v46  ;;  %s1685_s28 = scalar_lea.vmem %s1684_s27, 3584 }
  0x39   : > { %343 = vst.msk [vmem:[#allocation2 + $0x80] sm:$0xf0] %vm249_vm1, %v1969_v53  ;;  %425 = vst.msk [vmem:[#allocation2 + $0x90] sm:$0xf0] %vm249_vm1, %v1994_v61  ;;  %v1553_v53 = vpack.i.bf16 %v1961_v50, %v1965_v52  ;;  %v1746_v61 = vmov 0   ;;  %v1563_v50 = vpack.i.bf16 %v2004_v1, %v2002_v0  ;;  %v1558_v52 = vpack.i.bf16 %v616_v13, %v534_v11  ;;  %p1687_p1 = scmp.lt.s32.totalorder %s1685_s28, %s1679_s25 }
  0x3a   : > { %532 = vst.msk [vmem:[#allocation2 + $0x38] sm:$0xf] %vm242_vm0, %v2002_v0  ;;  %614 = vst.msk [vmem:[#allocation2 + $0x48] sm:$0xf] %vm242_vm0, %v2004_v1  ;;  %v2169_v51 = vcombine.low %v2146_v5, %v2146_v5  ;;  %1015 = vmatprep.mubr.bf16.mxu0 %v1746_v61  ;;  %1056 = vmatprep.mubr.bf16.mxu1 %v1746_v61  ;;  %v575_v49 = vcombine.low %v2009_v4, %v2009_v4 }
  0x3b   : > { %491 = vst.msk [vmem:[#allocation2 + $0x30] sm:$0xf] %vm242_vm0, %v2007_v3  ;;  %573 = vst.msk [vmem:[#allocation2 + $0x40] sm:$0xf] %vm242_vm0, %v2009_v4  ;;  %1529 = vrot.lane.b32.xlu0 %v1528_v55, %s1745_s30  ;;  %v562_v0 = vcombine.low %v2041_v17, %v2041_v17  ;;  %v1583_v1 = vpack.i.bf16 %v2047_v19, %v2039_v16  ;;  %v644_v3 = vcombine.low %v2051_v21, %v2051_v21  ;;  %p1688_p2 = por %p1687_p1, %p1686_p0 }
  0x3c   : > { %548 = vst.msk [vmem:[#allocation2 + $0xa8] sm:$0xf0] %vm249_vm1, %v2039_v16  ;;  %630 = vst.msk [vmem:[#allocation2 + $0xb8] sm:$0xf0] %vm249_vm1, %v2047_v19  ;;  %1534 = vrot.lane.b32.xlu1 %v1533_v43, %s1745_s30  ;;  %1678 = vset.pattern.permute.xlu0 %v1746_v61  ;;  %v1568_v15 = vpack.i.bf16 %v575_v49, %v493_v45  ;;  %v1593_v4 = vpack.i.bf16 %v521_v25, %v2043_v18  ;;  %v930_v43 = vld [vmem:[%s2471_s2] sm:$0xff] }
  0x3d   : > { %560 = vst.msk [vmem:[#allocation2 + $0x188] sm:$0xf] %vm242_vm0, %v2041_v17  ;;  %519 = vst.msk [vmem:[#allocation2 + $0x180] sm:$0xf] %vm242_vm0, %v2049_v20  ;;  %v1578_v26 = vpack.i.bf16 %v562_v0, %v2015_v7  ;;  %v603_v27 = vcombine.low %v2055_v23, %v2055_v23  ;;  %v1588_v16 = vpack.i.bf16 %v644_v3, %v2026_v12  ;;  %p1689_p3 = pnand %p1688_p2, %p1682_p13 }
  0x3e   : > { %642 = vst.msk [vmem:[#allocation2 + $0x198] sm:$0xf] %vm242_vm0, %v2051_v21  ;;  %601 = vst.msk [vmem:[#allocation2 + $0x190] sm:$0xf] %vm242_vm0, %v2055_v23  ;;  %v1598_v7 = vpack.i.bf16 %v2086_v33, %v2059_v24  ;;  %v1613_v18 = vpack.i.bf16 %v2051_v21, %v2055_v23  ;;  %v698_v12 = vcombine.low %v2093_v36, %v2093_v36 }
  0x3f   : > { %507 = vst.msk [vmem:[#allocation2 + $0xa0] sm:$0xf0] %vm249_vm1, %v2059_v24  ;;  %589 = vst.msk [vmem:[#allocation2 + $0xb0] sm:$0xf0] %vm249_vm1, %v2086_v33  ;;  %1539 = vrot.lane.b32.xlu0 %v1538_v9, %s1744_s29  ;;  %v1603_v19 = vpack.i.bf16 %v603_v27, %v2053_v22  ;;  %v780_v22 = vcombine.low %v2095_v37, %v2095_v37  ;;  %v1623_v24 = vpack.i.bf16 %v2095_v37, %v2093_v36 }
  0x40   : > { %696 = vst.msk [vmem:[#allocation2 + $0x58] sm:$0xf] %vm242_vm0, %v2093_v36  ;;  %778 = vst.msk [vmem:[#allocation2 + $0x68] sm:$0xf] %vm242_vm0, %v2095_v37  ;;  %1544 = vrot.lane.b32.xlu1 %v1543_v2, %s1745_s30  ;;  %v657_v21 = vcombine.low %v2098_v38, %v2098_v38  ;;  %v739_v17 = vcombine.low %v2100_v39, %v2100_v39  ;;  %v1633_v20 = vpack.i.bf16 %v2100_v39, %v2098_v38 }
  0x41   : > { %655 = vst.msk [vmem:[#allocation2 + $0x50] sm:$0xf] %vm242_vm0, %v2098_v38  ;;  %737 = vst.msk [vmem:[#allocation2 + $0x60] sm:$0xf] %vm242_vm0, %v2100_v39  ;;  %v1618_v29 = vpack.i.bf16 %v780_v22, %v698_v12  ;;  %v1643_v31 = vpack.i.bf16 %v2138_v40, %v2130_v58  ;;  %v685_v32 = vcombine.low %v2140_v62, %v2140_v62 }
  0x42   : > { %712 = vst.msk [vmem:[#allocation2 + $0xc8] sm:$0xf0] %vm249_vm1, %v2130_v58  ;;  %794 = vst.msk [vmem:[#allocation2 + $0xd8] sm:$0xf0] %vm249_vm1, %v2138_v40  ;;  %v1628_v23 = vpack.i.bf16 %v739_v17, %v657_v21  ;;  %v1638_v33 = vpack.i.bf16 %v726_v30, %v2110_v47  ;;  %v767_v37 = vcombine.low %v2148_v6, %v2148_v6 }
  0x43   : > { %724 = vst.msk [vmem:[#allocation2 + $0x1a8] sm:$0xf] %vm242_vm0, %v2132_v59  ;;  %683 = vst.msk [vmem:[#allocation2 + $0x1a0] sm:$0xf] %vm242_vm0, %v2140_v62  ;;  %1549 = vrot.lane.b32.xlu0 %v1548_v10, %s1744_s29  ;;  %v1653_v36 = vpack.i.bf16 %v685_v32, %v2134_v60  ;;  %v1648_v35 = vpack.i.bf16 %v808_v34, %v2120_v56  ;;  %v1658_v39 = vpack.i.bf16 %v2169_v51, %v2152_v8 }
  0x44   : > { %806 = vst.msk [vmem:[#allocation2 + $0x1b8] sm:$0xf] %vm242_vm0, %v2142_v63  ;;  %765 = vst.msk [vmem:[#allocation2 + $0x1b0] sm:$0xf] %vm242_vm0, %v2148_v6  ;;  %1554 = vrot.lane.b32.xlu1 %v1553_v53, %s1744_s29  ;;  %v1663_v38 = vpack.i.bf16 %v767_v37, %v2146_v5  ;;  %v1673_v41 = vpack.i.bf16 %v2142_v63, %v2148_v6  ;;  %v1668_v42 = vpack.i.bf16 %v2132_v59, %v2140_v62 }
  0x45   : > { %671 = vst.msk [vmem:[#allocation2 + $0xc0] sm:$0xf0] %vm249_vm1, %v2152_v8  ;;  %753 = vst.msk [vmem:[#allocation2 + $0xd0] sm:$0xf0] %vm249_vm1, %v2169_v51 }
  0x47   : > { %1559 = vrot.lane.b32.xlu0 %v1558_v52, %s1745_s30 }
  0x48   : > { %1564 = vrot.lane.b32.xlu1 %v1563_v50, %s1744_s29 }
  0x4b   : > { %1569 = vrot.lane.b32.xlu0 %v1568_v15, %s1745_s30 }
  0x4c   : > { %1574 = vrot.lane.b32.xlu1 %v1573_v14, %s1744_s29 }
  0x4f   : > { %1579 = vrot.lane.b32.xlu0 %v1578_v26, %s1745_s30 }
  0x50   : > { %1584 = vrot.lane.b32.xlu1 %v1583_v1, %s1744_s29 }
  0x53   : > { %1589 = vrot.lane.b32.xlu0 %v1588_v16, %s1745_s30 }
  0x54   : > { %1594 = vrot.lane.b32.xlu1 %v1593_v4, %s1745_s30 }
  0x57   : > { %1599 = vrot.lane.b32.xlu0 %v1598_v7, %s1744_s29 }
  0x58   : > { %1604 = vrot.lane.b32.xlu1 %v1603_v19, %s1745_s30 }
  0x5b   : > { %1609 = vrot.lane.b32.xlu0 %v1608_v28, %s1744_s29 }
  0x5c   : > { %1614 = vrot.lane.b32.xlu1 %v1613_v18, %s1744_s29 }
  0x5f   : > { %1619 = vrot.lane.b32.xlu0 %v1618_v29, %s1745_s30 }
  0x60   : > { %1624 = vrot.lane.b32.xlu1 %v1623_v24, %s1744_s29 }
  0x63   : > { %1629 = vrot.lane.b32.xlu0 %v1628_v23, %s1745_s30 }
  0x64   : > { %1634 = vrot.lane.b32.xlu1 %v1633_v20, %s1744_s29 }
  0x67   : > { %1639 = vrot.lane.b32.xlu0 %v1638_v33, %s1745_s30 }
  0x68   : > { %1644 = vrot.lane.b32.xlu1 %v1643_v31, %s1744_s29 }
  0x6b   : > { %1649 = vrot.lane.b32.xlu0 %v1648_v35, %s1745_s30 }
  0x6c   : > { %1654 = vrot.lane.b32.xlu1 %v1653_v36, %s1745_s30 }
  0x6f   : > { %1659 = vrot.lane.b32.xlu0 %v1658_v39, %s1744_s29 }
  0x70   : > { %1664 = vrot.lane.b32.xlu1 %v1663_v38, %s1745_s30 }
  0x73   : > { %1669 = vrot.lane.b32.xlu0 %v1668_v42, %s1744_s29 }
  0x74   : > { %1674 = vrot.lane.b32.xlu1 %v1673_v41, %s1744_s29 }
  0x77   : > { %933 = vperm.xlu0 %1678, %v930_v43  }
  0x90   : > { %v1475_v44 = vpop.permute.xlu1 %1474 }
  0x91   : > { %v1477_v47 = vunpack.i.h.bf16 %v1475_v44  ;;  %v1476_v48 = vunpack.i.l.bf16 %v1475_v44  ;;  %v1470_v54 = vpop.permute.xlu0 %1469 }
  0x92   : > { %v1472_v55 = vunpack.i.h.bf16 %v1470_v54  ;;  %v1471_v56 = vunpack.i.l.bf16 %v1470_v54 }
  0x93   : > { %324 = vst.msk [vmem:[#allocation2 + $0x1c8] sm:$0xf] %vm242_vm0, %v1477_v47  ;;  %283 = vst.msk [vmem:[#allocation2 + $0x1c0] sm:$0xf] %vm242_vm0, %v1476_v48 }
  0x94   : > { %254 = vst.msk [vmem:[#allocation2 + $0x70] sm:$0xf] %vm242_vm0, %v1472_v55  ;;  %296 = vst.msk [vmem:[#allocation2 + $0x78] sm:$0xf] %vm242_vm0, %v1471_v56  ;;  %v1485_v46 = vpop.permute.xlu1 %1484  ;;  %v2310_v56 = vld [vmem:[%s2470_s1] sm:$0xf] }
  0x95   : > { %v1487_v57 = vunpack.i.h.bf16 %v1485_v46  ;;  %v1486_v58 = vunpack.i.l.bf16 %v1485_v46  ;;  %v1480_v59 = vpop.permute.xlu0 %1479 }
  0x96   : > { %v1482_v60 = vunpack.i.h.bf16 %v1480_v59  ;;  %v1481_v40 = vunpack.i.l.bf16 %v1480_v59 }
  0x97   : > { %320 = vst.msk [vmem:[#allocation2 + $0x158] sm:$0xf0] %vm249_vm1, %v1487_v57 }
  0x98   : > { %306 = vst.msk [vmem:[#allocation2 + $0xe8] sm:$0xf] %vm242_vm0, %v1486_v58  ;;  %v1490_v62 = vpop.permute.xlu1 %1489 }
  0x99   : > { %250 = vst.msk [vmem:[#allocation2] sm:$0xf0] %vm249_vm1, %v1482_v60  ;;  %292 = vst.msk [vmem:[#allocation2 + $0x8] sm:$0xf0] %vm249_vm1, %v1481_v40  ;;  %v1492_v63 = vunpack.i.h.bf16 %v1490_v62  ;;  %v1491_v2 = vunpack.i.l.bf16 %v1490_v62  ;;  %v1495_v5 = vpop.permute.xlu0 %1494 }
  0x9a   : > { %v1497_v6 = vunpack.i.h.bf16 %v1495_v5  ;;  %v1496_v8 = vunpack.i.l.bf16 %v1495_v5  ;;  %v875_v19 = vld [vmem:[#allocation2 + $0x1c8] sm:$0xf]  ;;  %v874_v12 = vld [vmem:[#allocation2 + $0x1c0] sm:$0xf] }
  0x9b   : > { %269 = vst.msk [vmem:[#allocation2 + $0xe0] sm:$0xf0] %vm249_vm1, %v1492_v63  ;;  %310 = vst.msk [vmem:[#allocation2 + $0xe8] sm:$0xf0] %vm249_vm1, %v1491_v2  ;;  %v833_v50 = vld [vmem:[#allocation2 + $0x78] sm:$0xff]  ;;  %v832_v49 = vld [vmem:[#allocation2 + $0x70] sm:$0xff]  ;;  %v917_v30 = vpack.c.bf16 %v875_v19, %v875_v19  ;;  %v916_v32 = vpack.c.bf16 %v874_v12, %v874_v12 }
  0x9c   : > { %279 = vst.msk [vmem:[#allocation2 + $0x150] sm:$0xf0] %vm249_vm1, %v1497_v6  ;;  %v1505_v9 = vpop.permute.xlu1 %1504 }
  0x9d   : > { %265 = vst.msk [vmem:[#allocation2 + $0xe0] sm:$0xf] %vm242_vm0, %v1496_v8  ;;  %v1507_v51 = vunpack.i.h.bf16 %v1505_v9  ;;  %v1506_v53 = vunpack.i.l.bf16 %v1505_v9  ;;  %v1500_v10 = vpop.permute.xlu0 %1499  ;;  %v942_v44 = vsel %vm940_vm2, %v916_v32, 0 }
  0x9e   : > { %v1502_v11 = vunpack.i.h.bf16 %v1500_v10  ;;  %v1501_v13 = vunpack.i.l.bf16 %v1500_v10  ;;  %v861_v16 = vld [vmem:[#allocation2 + $0x158] sm:$0xff] }
  0x9f   : > { %460 = vst.msk [vmem:[#allocation2 + $0x98] sm:$0xf] %vm242_vm0, %v1507_v51  ;;  %378 = vst.msk [vmem:[#allocation2 + $0x88] sm:$0xf] %vm242_vm0, %v1506_v53 }
  0xa0   : > { %v819_v52 = vld [vmem:[#allocation2 + $0x8] sm:$0xff]  ;;  %v818_v45 = vld [vmem:[#allocation2] sm:$0xff]  ;;  %456 = vst.msk [vmem:[#allocation2 + $0x28] sm:$0xf0] %vm249_vm1, %v1502_v11  ;;  %374 = vst.msk [vmem:[#allocation2 + $0x18] sm:$0xf0] %vm249_vm1, %v1501_v13 }
  0xa1   : > { %v889_v15 = vpack.c.bf16 %v833_v50, %v819_v52  ;;  %v888_v0 = vpack.c.bf16 %v832_v49, %v818_v45  ;;  %v1510_v26 = vpop.permute.xlu0 %1509 }
  0xa2   : > { %v1512_v3 = vunpack.i.h.bf16 %v1510_v26  ;;  %v1511_v4 = vunpack.i.l.bf16 %v1510_v26  ;;  %v847_v27 = vld [vmem:[#allocation2 + $0xe8] sm:$0xff] }
  0xa3   : > { %983 = vmatprep.subr.bf16.mxu0 %v889_v15  ;;  %v903_v7 = vpack.c.bf16 %v861_v16, %v847_v27  ;;  %v860_v28 = vld [vmem:[#allocation2 + $0x150] sm:$0xff] }
  0xa4   : > { %984 = vmatpush1.bf16.msra.mxu0 %v888_v0  ;;  %v846_v18 = vld [vmem:[#allocation2 + $0xe0] sm:$0xff]  ;;  %415 = vst.msk [vmem:[#allocation2 + $0x20] sm:$0xf0] %vm249_vm1, %v1512_v3  ;;  %333 = vst.msk [vmem:[#allocation2 + $0x10] sm:$0xf0] %vm249_vm1, %v1511_v4 }
  0xa5   : > { %v902_v24 = vpack.c.bf16 %v860_v28, %v846_v18  ;;  %985 = vmatprep.subr.bf16.mxu0 %v903_v7 }
  0xa6   : > { %v1515_v14 = vpop.permute.xlu1 %1514  ;;  %v835_v31 = vld [vmem:[#allocation2 + $0x88] sm:$0xff]  ;;  %v837_v36 = vld [vmem:[#allocation2 + $0x98] sm:$0xff] }
  0xa7   : > { %v1517_v1 = vunpack.i.h.bf16 %v1515_v14  ;;  %v1516_v25 = vunpack.i.l.bf16 %v1515_v14  ;;  %v821_v33 = vld [vmem:[#allocation2 + $0x18] sm:$0xff]  ;;  %v823_v34 = vld [vmem:[#allocation2 + $0x28] sm:$0xff] }
  0xa8   : > { %986 = vmatpush1.bf16.msra.mxu0 %v902_v24  ;;  %v891_v35 = vpack.c.bf16 %v835_v31, %v821_v33  ;;  %v893_v47 = vpack.c.bf16 %v837_v36, %v823_v34 }
  0xa9   : > { %419 = vst.msk [vmem:[#allocation2 + $0x90] sm:$0xf] %vm242_vm0, %v1517_v1  ;;  %337 = vst.msk [vmem:[#allocation2 + $0x80] sm:$0xf] %vm242_vm0, %v1516_v25  ;;  %v1520_v17 = vpop.permute.xlu0 %1519  ;;  %1405 = vmatprep.subr.msk.bf16.mxu0 %vm940_vm2, %v917_v30 }
  0xaa   : > { %v1525_v22 = vpop.permute.xlu1 %1524  ;;  %v1522_v20 = vunpack.i.h.bf16 %v1520_v17  ;;  %v1521_v23 = vunpack.i.l.bf16 %v1520_v17  ;;  %1024 = vmatprep.subr.bf16.mxu1 %v891_v35 }
  0xab   : > { %v1527_v29 = vunpack.i.h.bf16 %v1525_v22  ;;  %v1526_v21 = vunpack.i.l.bf16 %v1525_v22  ;;  %v820_v55 = vld [vmem:[#allocation2 + $0x10] sm:$0xff]  ;;  %v822_v46 = vld [vmem:[#allocation2 + $0x20] sm:$0xff] }
  0xac   : > { %402 = vst.msk [vmem:[#allocation2 + $0x168] sm:$0xf0] %vm249_vm1, %v1522_v20  ;;  %988 = vmatpush1.bf16.msra.mxu0 %v942_v44 }
  0xad   : > { %474 = vst.msk [vmem:[#allocation2 + $0x108] sm:$0xf0] %vm249_vm1, %v1527_v29  ;;  %392 = vst.msk [vmem:[#allocation2 + $0xf8] sm:$0xf0] %vm249_vm1, %v1526_v21  ;;  %v1530_v41 = vpop.permute.xlu0 %1529  ;;  %1065 = vmatprep.subr.bf16.mxu0 %v893_v47 }
  0xae   : > { %388 = vst.msk [vmem:[#allocation2 + $0xf8] sm:$0xf] %vm242_vm0, %v1521_v23  ;;  %v1535_v37 = vpop.permute.xlu1 %1534  ;;  %v1532_v42 = vunpack.i.h.bf16 %v1530_v41  ;;  %v1531_v43 = vunpack.i.l.bf16 %v1530_v41 }
  0xaf   : > { %v1537_v38 = vunpack.i.h.bf16 %v1535_v37  ;;  %v1536_v39 = vunpack.i.l.bf16 %v1535_v37  ;;  %1406 = vmatmul.mubr.msk.bf16.vlgmr.msra.gmra.mrb[0].mxu0 %vm936_vm3, %v2310_v56 }
  0xb0   : > { %v834_v48 = vld [vmem:[#allocation2 + $0x80] sm:$0xff]  ;;  %v836_v54 = vld [vmem:[#allocation2 + $0x90] sm:$0xff]  ;;  %484 = vst.msk [vmem:[#allocation2 + $0x178] sm:$0xf0] %vm249_vm1, %v1532_v42  ;;  %1097 = vmatprep.mubr.bf16.mxu0 %v1746_v61 }
  0xb1   : > { %361 = vst.msk [vmem:[#allocation2 + $0x160] sm:$0xf0] %vm249_vm1, %v1537_v38  ;;  %v890_v58 = vpack.c.bf16 %v834_v48, %v820_v55  ;;  %v892_v59 = vpack.c.bf16 %v836_v54, %v822_v46  ;;  %v1540_v62 = vpop.permute.xlu0 %1539 }
  0xb2   : > { %347 = vst.msk [vmem:[#allocation2 + $0xf0] sm:$0xf] %vm242_vm0, %v1536_v39  ;;  %470 = vst.msk [vmem:[#allocation2 + $0x108] sm:$0xf] %vm242_vm0, %v1531_v43  ;;  %v1545_v57 = vpop.permute.xlu1 %1544  ;;  %v1542_v63 = vunpack.i.h.bf16 %v1540_v62  ;;  %v1541_v2 = vunpack.i.l.bf16 %v1540_v62 }
  0xb3   : > { %v1547_v60 = vunpack.i.h.bf16 %v1545_v57  ;;  %v1546_v40 = vunpack.i.l.bf16 %v1545_v57  ;;  %1025 = vmatpush1.bf16.msra.mxu1 %v890_v58  ;;  %1066 = vmatpush1.bf16.msra.mxu0 %v892_v59  ;;  %v863_v6 = vld [vmem:[#allocation2 + $0x168] sm:$0xff] }
  0xb4   : > { %433 = vst.msk [vmem:[#allocation2 + $0x100] sm:$0xf0] %vm249_vm1, %v1542_v63  ;;  %351 = vst.msk [vmem:[#allocation2 + $0xf0] sm:$0xf0] %vm249_vm1, %v1541_v2 }
  0xb5   : > { %443 = vst.msk [vmem:[#allocation2 + $0x170] sm:$0xf0] %vm249_vm1, %v1547_v60  ;;  %v849_v5 = vld [vmem:[#allocation2 + $0xf8] sm:$0xff]  ;;  %v1550_v10 = vpop.permute.xlu0 %1549 }
  0xb6   : > { %429 = vst.msk [vmem:[#allocation2 + $0x100] sm:$0xf] %vm242_vm0, %v1546_v40  ;;  %v1555_v8 = vpop.permute.xlu1 %1554  ;;  %v905_v9 = vpack.c.bf16 %v863_v6, %v849_v5  ;;  %v1552_v11 = vunpack.i.h.bf16 %v1550_v10  ;;  %v1551_v13 = vunpack.i.l.bf16 %v1550_v10 }
  0xb7   : > { %v1557_v51 = vunpack.i.h.bf16 %v1555_v8  ;;  %v1556_v53 = vunpack.i.l.bf16 %v1555_v8  ;;  %v865_v52 = vld [vmem:[#allocation2 + $0x178] sm:$0xff] }
  0xb8   : > { %1026 = vmatprep.subr.bf16.mxu1 %v905_v9  ;;  %406 = vst.msk [vmem:[#allocation2 + $0x1d8] sm:$0xf] %vm242_vm0, %v1552_v11  ;;  %365 = vst.msk [vmem:[#allocation2 + $0x1d0] sm:$0xf] %vm242_vm0, %v1551_v13  ;;  %v862_v4 = vld [vmem:[#allocation2 + $0x160] sm:$0xff] }
  0xb9   : > { %488 = vst.msk [vmem:[#allocation2 + $0x1e8] sm:$0xf] %vm242_vm0, %v1557_v51  ;;  %447 = vst.msk [vmem:[#allocation2 + $0x1e0] sm:$0xf] %vm242_vm0, %v1556_v53  ;;  %v851_v50 = vld [vmem:[#allocation2 + $0x108] sm:$0xff]  ;;  %v1560_v0 = vpop.permute.xlu0 %1559 }
  0xba   : > { %v1565_v45 = vpop.permute.xlu1 %1564  ;;  %v907_v49 = vpack.c.bf16 %v865_v52, %v851_v50  ;;  %v1562_v1 = vunpack.i.h.bf16 %v1560_v0  ;;  %v1561_v25 = vunpack.i.l.bf16 %v1560_v0 }
  0xbb   : > { %v1567_v14 = vunpack.i.h.bf16 %v1565_v45  ;;  %v1566_v15 = vunpack.i.l.bf16 %v1565_v45  ;;  %v848_v3 = vld [vmem:[#allocation2 + $0xf0] sm:$0xff] }
  0xbc   : > { %1067 = vmatprep.subr.bf16.mxu0 %v907_v49  ;;  %v864_v26 = vld [vmem:[#allocation2 + $0x170] sm:$0xff]  ;;  %620 = vst.msk [vmem:[#allocation2 + $0x48] sm:$0xf0] %vm249_vm1, %v1562_v1  ;;  %538 = vst.msk [vmem:[#allocation2 + $0x38] sm:$0xf0] %vm249_vm1, %v1561_v25  ;;  %v904_v19 = vpack.c.bf16 %v862_v4, %v848_v3 }
  0xbd   : > { %624 = vst.msk [vmem:[#allocation2 + $0xb8] sm:$0xf] %vm242_vm0, %v1567_v14  ;;  %542 = vst.msk [vmem:[#allocation2 + $0xa8] sm:$0xf] %vm242_vm0, %v1566_v15  ;;  %v850_v27 = vld [vmem:[#allocation2 + $0x100] sm:$0xff]  ;;  %v1570_v12 = vpop.permute.xlu0 %1569 }
  0xbe   : > { %v1575_v16 = vpop.permute.xlu1 %1574  ;;  %v906_v7 = vpack.c.bf16 %v864_v26, %v850_v27  ;;  %v1572_v22 = vunpack.i.h.bf16 %v1570_v12  ;;  %v1571_v24 = vunpack.i.l.bf16 %v1570_v12  ;;  %1027 = vmatpush1.bf16.msra.mxu1 %v904_v19 }
  0xbf   : > { %v1577_v18 = vunpack.i.h.bf16 %v1575_v16  ;;  %v1576_v28 = vunpack.i.l.bf16 %v1575_v16  ;;  %v877_v17 = vld [vmem:[#allocation2 + $0x1d8] sm:$0xf]  ;;  %v876_v23 = vld [vmem:[#allocation2 + $0x1d0] sm:$0xf] }
  0xc0   : > { %1068 = vmatpush1.bf16.msra.mxu0 %v906_v7  ;;  %v879_v29 = vld [vmem:[#allocation2 + $0x1e8] sm:$0xf]  ;;  %v878_v21 = vld [vmem:[#allocation2 + $0x1e0] sm:$0xf]  ;;  %579 = vst.msk [vmem:[#allocation2 + $0x40] sm:$0xf0] %vm249_vm1, %v1572_v22  ;;  %v919_v32 = vpack.c.bf16 %v877_v17, %v877_v17  ;;  %v918_v33 = vpack.c.bf16 %v876_v23, %v876_v23 }
  0xc1   : > { %583 = vst.msk [vmem:[#allocation2 + $0xb0] sm:$0xf] %vm242_vm0, %v1577_v18  ;;  %501 = vst.msk [vmem:[#allocation2 + $0xa0] sm:$0xf] %vm242_vm0, %v1576_v28  ;;  %v921_v20 = vpack.c.bf16 %v879_v29, %v879_v29  ;;  %v920_v30 = vpack.c.bf16 %v878_v21, %v878_v21  ;;  %v1580_v37 = vpop.permute.xlu0 %1579 }
  0xc2   : > { %497 = vst.msk [vmem:[#allocation2 + $0x30] sm:$0xf0] %vm249_vm1, %v1571_v24  ;;  %v1585_v31 = vpop.permute.xlu1 %1584  ;;  %v1582_v38 = vunpack.i.h.bf16 %v1580_v37  ;;  %v1581_v39 = vunpack.i.l.bf16 %v1580_v37  ;;  %1407 = vmatprep.subr.msk.bf16.mxu1 %vm940_vm2, %v919_v32  ;;  %v948_v41 = vsel %vm940_vm2, %v918_v33, 0 }
  0xc3   : > { %v1587_v34 = vunpack.i.h.bf16 %v1585_v31  ;;  %v1586_v36 = vunpack.i.l.bf16 %v1585_v31  ;;  %1409 = vmatprep.subr.msk.bf16.mxu0 %vm940_vm2, %v921_v20  ;;  %v954_v35 = vsel %vm940_vm2, %v920_v30, 0  ;;  %1029 = vmatpush1.bf16.msra.mxu1 %v948_v41  ;;  %v825_v44 = vld [vmem:[#allocation2 + $0x38] sm:$0xff]  ;;  %v827_v47 = vld [vmem:[#allocation2 + $0x48] sm:$0xff] }
  0xc4   : > { %1070 = vmatpush1.bf16.msra.mxu0 %v954_v35  ;;  %v839_v42 = vld [vmem:[#allocation2 + $0xa8] sm:$0xff]  ;;  %v841_v43 = vld [vmem:[#allocation2 + $0xb8] sm:$0xff]  ;;  %566 = vst.msk [vmem:[#allocation2 + $0x188] sm:$0xf0] %vm249_vm1, %v1582_v38 }
  0xc5   : > { %638 = vst.msk [vmem:[#allocation2 + $0x128] sm:$0xf0] %vm249_vm1, %v1587_v34  ;;  %556 = vst.msk [vmem:[#allocation2 + $0x118] sm:$0xf0] %vm249_vm1, %v1586_v36  ;;  %v895_v54 = vpack.c.bf16 %v839_v42, %v825_v44  ;;  %v897_v55 = vpack.c.bf16 %v841_v43, %v827_v47  ;;  %v1590_v58 = vpop.permute.xlu0 %1589 }
  0xc6   : > { %552 = vst.msk [vmem:[#allocation2 + $0x118] sm:$0xf] %vm242_vm0, %v1581_v39  ;;  %v1595_v48 = vpop.permute.xlu1 %1594  ;;  %v1592_v59 = vunpack.i.h.bf16 %v1590_v58  ;;  %v1591_v60 = vunpack.i.l.bf16 %v1590_v58  ;;  %1408 = vmatmul.mubr.msk.bf16.vlgmr.msra.gmra.mrb[0].mxu1 %vm936_vm3, %v2310_v56 }
  0xc7   : > { %v1597_v46 = vunpack.i.h.bf16 %v1595_v48  ;;  %v1596_v57 = vunpack.i.l.bf16 %v1595_v48  ;;  %1410 = vmatmul.mubr.msk.bf16.vlgmr.msra.gmra.mrb[4].mxu0 %vm936_vm3, %v2310_v56  ;;  %1106 = vmatprep.subr.bf16.mxu1 %v895_v54  ;;  %v826_v2 = vld [vmem:[#allocation2 + $0x40] sm:$0xff] }
  0xc8   : > { %1147 = vmatprep.subr.bf16.mxu0 %v897_v55  ;;  %v838_v40 = vld [vmem:[#allocation2 + $0xa0] sm:$0xff]  ;;  %v840_v62 = vld [vmem:[#allocation2 + $0xb0] sm:$0xff]  ;;  %1179 = vmatprep.mubr.bf16.mxu0 %v1746_v61  ;;  %648 = vst.msk [vmem:[#allocation2 + $0x198] sm:$0xf0] %vm249_vm1, %v1592_v59 }
  0xc9   : > { %525 = vst.msk [vmem:[#allocation2 + $0x180] sm:$0xf0] %vm249_vm1, %v1597_v46  ;;  %v824_v63 = vld [vmem:[#allocation2 + $0x30] sm:$0xff]  ;;  %v896_v8 = vpack.c.bf16 %v840_v62, %v826_v2  ;;  %1138 = vmatprep.mubr.bf16.mxu1 %v1746_v61  ;;  %v1600_v53 = vpop.permute.xlu0 %1599 }
  0xca   : > { %511 = vst.msk [vmem:[#allocation2 + $0x110] sm:$0xf] %vm242_vm0, %v1596_v57  ;;  %634 = vst.msk [vmem:[#allocation2 + $0x128] sm:$0xf] %vm242_vm0, %v1591_v60  ;;  %v1605_v5 = vpop.permute.xlu1 %1604  ;;  %v894_v6 = vpack.c.bf16 %v838_v40, %v824_v63  ;;  %v1602_v10 = vunpack.i.h.bf16 %v1600_v53  ;;  %v1601_v11 = vunpack.i.l.bf16 %v1600_v53 }
  0xcb   : > { %v1607_v9 = vunpack.i.h.bf16 %v1605_v5  ;;  %v1606_v51 = vunpack.i.l.bf16 %v1605_v5  ;;  %1148 = vmatpush1.bf16.msra.mxu0 %v896_v8  ;;  %v867_v50 = vld [vmem:[#allocation2 + $0x188] sm:$0xff] }
  0xcc   : > { %1107 = vmatpush1.bf16.msra.mxu1 %v894_v6  ;;  %597 = vst.msk [vmem:[#allocation2 + $0x120] sm:$0xf0] %vm249_vm1, %v1602_v10  ;;  %515 = vst.msk [vmem:[#allocation2 + $0x110] sm:$0xf0] %vm249_vm1, %v1601_v11 }
  0xcd   : > { %607 = vst.msk [vmem:[#allocation2 + $0x190] sm:$0xf0] %vm249_vm1, %v1607_v9  ;;  %v853_v13 = vld [vmem:[#allocation2 + $0x118] sm:$0xff]  ;;  %v1610_v15 = vpop.permute.xlu0 %1609 }
  0xce   : > { %593 = vst.msk [vmem:[#allocation2 + $0x120] sm:$0xf] %vm242_vm0, %v1606_v51  ;;  %v1615_v52 = vpop.permute.xlu1 %1614  ;;  %v909_v45 = vpack.c.bf16 %v867_v50, %v853_v13  ;;  %v1612_v0 = vunpack.i.h.bf16 %v1610_v15  ;;  %v1611_v1 = vunpack.i.l.bf16 %v1610_v15 }
  0xcf   : > { %v1617_v49 = vunpack.i.h.bf16 %v1615_v52  ;;  %v1616_v14 = vunpack.i.l.bf16 %v1615_v52  ;;  %v869_v26 = vld [vmem:[#allocation2 + $0x198] sm:$0xff] }
  0xd0   : > { %1108 = vmatprep.subr.bf16.mxu1 %v909_v45  ;;  %570 = vst.msk [vmem:[#allocation2 + $0x1f8] sm:$0xf] %vm242_vm0, %v1612_v0  ;;  %529 = vst.msk [vmem:[#allocation2 + $0x1f0] sm:$0xf] %vm242_vm0, %v1611_v1  ;;  %v866_v22 = vld [vmem:[#allocation2 + $0x180] sm:$0xff] }
  0xd1   : > { %652 = vst.msk [vmem:[#allocation2 + $0x208] sm:$0xf] %vm242_vm0, %v1617_v49  ;;  %611 = vst.msk [vmem:[#allocation2 + $0x200] sm:$0xf] %vm242_vm0, %v1616_v14  ;;  %v855_v25 = vld [vmem:[#allocation2 + $0x128] sm:$0xff]  ;;  %v1620_v19 = vpop.permute.xlu0 %1619 }
  0xd2   : > { %v1625_v3 = vpop.permute.xlu1 %1624  ;;  %v911_v4 = vpack.c.bf16 %v869_v26, %v855_v25  ;;  %v1622_v7 = vunpack.i.h.bf16 %v1620_v19  ;;  %v1621_v18 = vunpack.i.l.bf16 %v1620_v19 }
  0xd3   : > { %v1627_v27 = vunpack.i.h.bf16 %v1625_v3  ;;  %v1626_v16 = vunpack.i.l.bf16 %v1625_v3  ;;  %v852_v12 = vld [vmem:[#allocation2 + $0x110] sm:$0xff] }
  0xd4   : > { %1149 = vmatprep.subr.bf16.mxu0 %v911_v4  ;;  %v868_v28 = vld [vmem:[#allocation2 + $0x190] sm:$0xff]  ;;  %784 = vst.msk [vmem:[#allocation2 + $0x68] sm:$0xf0] %vm249_vm1, %v1622_v7  ;;  %702 = vst.msk [vmem:[#allocation2 + $0x58] sm:$0xf0] %vm249_vm1, %v1621_v18  ;;  %v908_v21 = vpack.c.bf16 %v866_v22, %v852_v12 }
  0xd5   : > { %788 = vst.msk [vmem:[#allocation2 + $0xd8] sm:$0xf] %vm242_vm0, %v1627_v27  ;;  %706 = vst.msk [vmem:[#allocation2 + $0xc8] sm:$0xf] %vm242_vm0, %v1626_v16  ;;  %v854_v24 = vld [vmem:[#allocation2 + $0x120] sm:$0xff]  ;;  %v1630_v30 = vpop.permute.xlu0 %1629 }
  0xd6   : > { %v1635_v29 = vpop.permute.xlu1 %1634  ;;  %v910_v17 = vpack.c.bf16 %v868_v28, %v854_v24  ;;  %v1632_v31 = vunpack.i.h.bf16 %v1630_v30  ;;  %v1631_v32 = vunpack.i.l.bf16 %v1630_v30  ;;  %1109 = vmatpush1.bf16.msra.mxu1 %v908_v21 }
  0xd7   : > { %v1637_v20 = vunpack.i.h.bf16 %v1635_v29  ;;  %v1636_v23 = vunpack.i.l.bf16 %v1635_v29  ;;  %v881_v36 = vld [vmem:[#allocation2 + $0x1f8] sm:$0xf]  ;;  %v880_v35 = vld [vmem:[#allocation2 + $0x1f0] sm:$0xf] }
  0xd8   : > { %1150 = vmatpush1.bf16.msra.mxu0 %v910_v17  ;;  %v883_v33 = vld [vmem:[#allocation2 + $0x208] sm:$0xf]  ;;  %v882_v34 = vld [vmem:[#allocation2 + $0x200] sm:$0xf]  ;;  %743 = vst.msk [vmem:[#allocation2 + $0x60] sm:$0xf0] %vm249_vm1, %v1632_v31  ;;  %v923_v41 = vpack.c.bf16 %v881_v36, %v881_v36  ;;  %v922_v42 = vpack.c.bf16 %v880_v35, %v880_v35 }
  0xd9   : > { %747 = vst.msk [vmem:[#allocation2 + $0xd0] sm:$0xf] %vm242_vm0, %v1637_v20  ;;  %665 = vst.msk [vmem:[#allocation2 + $0xc0] sm:$0xf] %vm242_vm0, %v1636_v23  ;;  %v925_v37 = vpack.c.bf16 %v883_v33, %v883_v33  ;;  %v924_v38 = vpack.c.bf16 %v882_v34, %v882_v34  ;;  %v1640_v47 = vpop.permute.xlu0 %1639 }
  0xda   : > { %661 = vst.msk [vmem:[#allocation2 + $0x50] sm:$0xf0] %vm249_vm1, %v1631_v32  ;;  %v1645_v39 = vpop.permute.xlu1 %1644  ;;  %v1642_v54 = vunpack.i.h.bf16 %v1640_v47  ;;  %v1641_v55 = vunpack.i.l.bf16 %v1640_v47  ;;  %1411 = vmatprep.subr.msk.bf16.mxu1 %vm940_vm2, %v923_v41  ;;  %v960_v46 = vsel %vm940_vm2, %v922_v42, 0 }
  0xdb   : > { %v1647_v43 = vunpack.i.h.bf16 %v1645_v39  ;;  %v1646_v44 = vunpack.i.l.bf16 %v1645_v39  ;;  %1413 = vmatprep.subr.msk.bf16.mxu0 %vm940_vm2, %v925_v37  ;;  %v966_v48 = vsel %vm940_vm2, %v924_v38, 0  ;;  %1111 = vmatpush1.bf16.msra.mxu1 %v960_v46  ;;  %v829_v59 = vld [vmem:[#allocation2 + $0x58] sm:$0xff]  ;;  %v831_v60 = vld [vmem:[#allocation2 + $0x68] sm:$0xff] }
  0xdc   : > { %1152 = vmatpush1.bf16.msra.mxu0 %v966_v48  ;;  %v843_v57 = vld [vmem:[#allocation2 + $0xc8] sm:$0xff]  ;;  %v845_v58 = vld [vmem:[#allocation2 + $0xd8] sm:$0xff]  ;;  %730 = vst.msk [vmem:[#allocation2 + $0x1a8] sm:$0xf0] %vm249_vm1, %v1642_v54 }
  0xdd   : > { %802 = vst.msk [vmem:[#allocation2 + $0x148] sm:$0xf0] %vm249_vm1, %v1647_v43  ;;  %720 = vst.msk [vmem:[#allocation2 + $0x138] sm:$0xf0] %vm249_vm1, %v1646_v44  ;;  %v899_v62 = vpack.c.bf16 %v843_v57, %v829_v59  ;;  %v901_v63 = vpack.c.bf16 %v845_v58, %v831_v60  ;;  %v1650_v6 = vpop.permute.xlu0 %1649 }
  0xde   : > { %716 = vst.msk [vmem:[#allocation2 + $0x138] sm:$0xf] %vm242_vm0, %v1641_v55  ;;  %v1655_v40 = vpop.permute.xlu1 %1654  ;;  %v1652_v8 = vunpack.i.h.bf16 %v1650_v6  ;;  %v1651_v9 = vunpack.i.l.bf16 %v1650_v6  ;;  %1412 = vmatmul.mubr.msk.bf16.vlgmr.msra.gmra.mrb[4].mxu1 %vm936_vm3, %v2310_v56 }
  0xdf   : > { %v1657_v2 = vunpack.i.h.bf16 %v1655_v40  ;;  %v1656_v5 = vunpack.i.l.bf16 %v1655_v40  ;;  %1414 = vmatmul.mubr.msk.bf16.vlgmr.msra.gmra.mrb[8].mxu0 %vm936_vm3, %v2310_v56  ;;  %1188 = vmatprep.subr.bf16.mxu1 %v899_v62  ;;  %v830_v11 = vld [vmem:[#allocation2 + $0x60] sm:$0xff] }
  0xe0   : > { %1229 = vmatprep.subr.bf16.mxu0 %v901_v63  ;;  %v842_v51 = vld [vmem:[#allocation2 + $0xc0] sm:$0xff]  ;;  %v844_v53 = vld [vmem:[#allocation2 + $0xd0] sm:$0xff]  ;;  %1261 = vmatprep.mubr.bf16.mxu0 %v1746_v61  ;;  %812 = vst.msk [vmem:[#allocation2 + $0x1b8] sm:$0xf0] %vm249_vm1, %v1652_v8 }
  0xe1   : > { %689 = vst.msk [vmem:[#allocation2 + $0x1a0] sm:$0xf0] %vm249_vm1, %v1657_v2  ;;  %v828_v10 = vld [vmem:[#allocation2 + $0x50] sm:$0xff]  ;;  %v900_v52 = vpack.c.bf16 %v844_v53, %v830_v11  ;;  %1220 = vmatprep.mubr.bf16.mxu1 %v1746_v61  ;;  %v1660_v14 = vpop.permute.xlu0 %1659 }
  0xe2   : > { %675 = vst.msk [vmem:[#allocation2 + $0x130] sm:$0xf] %vm242_vm0, %v1656_v5  ;;  %798 = vst.msk [vmem:[#allocation2 + $0x148] sm:$0xf] %vm242_vm0, %v1651_v9  ;;  %v1665_v13 = vpop.permute.xlu1 %1664  ;;  %v898_v50 = vpack.c.bf16 %v842_v51, %v828_v10  ;;  %v1662_v15 = vunpack.i.h.bf16 %v1660_v14  ;;  %v1661_v0 = vunpack.i.l.bf16 %v1660_v14 }
  0xe3   : > { %v1667_v45 = vunpack.i.h.bf16 %v1665_v13  ;;  %v1666_v49 = vunpack.i.l.bf16 %v1665_v13  ;;  %1230 = vmatpush1.bf16.msra.mxu0 %v900_v52  ;;  %v871_v25 = vld [vmem:[#allocation2 + $0x1a8] sm:$0xff] }
  0xe4   : > { %1189 = vmatpush1.bf16.msra.mxu1 %v898_v50  ;;  %761 = vst.msk [vmem:[#allocation2 + $0x140] sm:$0xf0] %vm249_vm1, %v1662_v15  ;;  %679 = vst.msk [vmem:[#allocation2 + $0x130] sm:$0xf0] %vm249_vm1, %v1661_v0 }
  0xe5   : > { %771 = vst.msk [vmem:[#allocation2 + $0x1b0] sm:$0xf0] %vm249_vm1, %v1667_v45  ;;  %v857_v1 = vld [vmem:[#allocation2 + $0x138] sm:$0xff]  ;;  %v1670_v27 = vpop.permute.xlu0 %1669 }
  0xe6   : > { %757 = vst.msk [vmem:[#allocation2 + $0x140] sm:$0xf] %vm242_vm0, %v1666_v49  ;;  %v1675_v26 = vpop.permute.xlu1 %1674  ;;  %v913_v3 = vpack.c.bf16 %v871_v25, %v857_v1  ;;  %v1672_v16 = vunpack.i.h.bf16 %v1670_v27  ;;  %v1671_v19 = vunpack.i.l.bf16 %v1670_v27 }
  0xe7   : > { %v1677_v61 = vunpack.i.h.bf16 %v1675_v26  ;;  %v1676_v4 = vunpack.i.l.bf16 %v1675_v26  ;;  %v873_v18 = vld [vmem:[#allocation2 + $0x1b8] sm:$0xff] }
  0xe8   : > { %1190 = vmatprep.subr.bf16.mxu1 %v913_v3  ;;  %734 = vst.msk [vmem:[#allocation2 + $0x218] sm:$0xf] %vm242_vm0, %v1672_v16  ;;  %693 = vst.msk [vmem:[#allocation2 + $0x210] sm:$0xf] %vm242_vm0, %v1671_v19  ;;  %v870_v24 = vld [vmem:[#allocation2 + $0x1a0] sm:$0xff] }
  0xe9   : > { %816 = vst.msk [vmem:[#allocation2 + $0x228] sm:$0xf] %vm242_vm0, %v1677_v61  ;;  %775 = vst.msk [vmem:[#allocation2 + $0x220] sm:$0xf] %vm242_vm0, %v1676_v4  ;;  %v859_v7 = vld [vmem:[#allocation2 + $0x148] sm:$0xff] }
  0xea   : > { %v915_v28 = vpack.c.bf16 %v873_v18, %v859_v7 }
  0xeb   : > { %v856_v22 = vld [vmem:[#allocation2 + $0x130] sm:$0xff] }
  0xec   : > { %1231 = vmatprep.subr.bf16.mxu0 %v915_v28  ;;  %v872_v12 = vld [vmem:[#allocation2 + $0x1b0] sm:$0xff]  ;;  %v912_v21 = vpack.c.bf16 %v870_v24, %v856_v22 }
  0xed   : > { %v858_v29 = vld [vmem:[#allocation2 + $0x140] sm:$0xff] }
  0xee   : > { %v914_v17 = vpack.c.bf16 %v872_v12, %v858_v29  ;;  %1191 = vmatpush1.bf16.msra.mxu1 %v912_v21 }
  0xef   : > { %v885_v30 = vld [vmem:[#allocation2 + $0x218] sm:$0xf]  ;;  %v884_v32 = vld [vmem:[#allocation2 + $0x210] sm:$0xf] }
  0xf0   : > { %1232 = vmatpush1.bf16.msra.mxu0 %v914_v17  ;;  %v887_v20 = vld [vmem:[#allocation2 + $0x228] sm:$0xf]  ;;  %v886_v23 = vld [vmem:[#allocation2 + $0x220] sm:$0xf]  ;;  %v927_v34 = vpack.c.bf16 %v885_v30, %v885_v30  ;;  %v926_v36 = vpack.c.bf16 %v884_v32, %v884_v32 }
  0xf1   : > { %v929_v31 = vpack.c.bf16 %v887_v20, %v887_v20  ;;  %v928_v33 = vpack.c.bf16 %v886_v23, %v886_v23 }
  0xf2   : > { %1415 = vmatprep.subr.msk.bf16.mxu1 %vm940_vm2, %v927_v34  ;;  %v972_v35 = vsel %vm940_vm2, %v926_v36, 0 }
  0xf3   : > { %1417 = vmatprep.subr.msk.bf16.mxu0 %vm940_vm2, %v929_v31  ;;  %v978_v37 = vsel %vm940_vm2, %v928_v33, 0  ;;  %1193 = vmatpush1.bf16.msra.mxu1 %v972_v35 }
  0xf4   : > { %1234 = vmatpush1.bf16.msra.mxu0 %v978_v37 }
  0xf6   : > { %1416 = vmatmul.mubr.msk.bf16.vlgmr.msra.gmra.mrb[8].mxu1 %vm936_vm3, %v2310_v56  ;;  %v934_v38 = vpop.permute.xlu0 %933 }
  0xf7   : > { %1418 = vmatmul.mubr.msk.bf16.vlgmr.msra.gmra.mrb[12].mxu0 %vm936_vm3, %v2310_v56 }
 0x182   : > { %v1017_v39 = vpop.f32.mrb[0].mxu0 }
 0x183   : > { %v1019_v41 = vpop.f32.mrb[1].mxu0  ;;  %v1018_v42 = vadd.f32 %v1017_v39, %v934_v38 }
 0x184   : > { %v1021_v43 = vpop.f32.mrb[2].mxu0  ;;  %v1020_v44 = vadd.f32 %v1019_v41, %v934_v38 }
 0x185   : > { %1270 = vst [vmem:[%s2404_s10] sm:$0xff] %v1018_v42  ;;  %v1022_v47 = vpop.f32.mrb[3].mxu0 }
 0x186   : > { %1271 = vst [vmem:[%s2404_s10 + $0x8] sm:$0xff] %v1020_v44 }
 0x199   : > { %v1058_v55 = vpop.f32.mrb[0].mxu1 }
 0x19a   : > { %v1099_v56 = vpop.f32.mrb[4].mxu0  ;;  %v1059_v58 = vadd.f32 %v1058_v55, %v934_v38  ;;  %v1060_v59 = vpop.f32.mrb[1].mxu1 }
 0x19b   : > { %v1100_v48 = vadd.f32 %v1099_v56, %v934_v38  ;;  %v1101_v54 = vpop.f32.mrb[5].mxu0  ;;  %v1061_v40 = vadd.f32 %v1060_v59, %v934_v38  ;;  %v1062_v62 = vpop.f32.mrb[2].mxu1 }
 0x19c   : > { %v1102_v46 = vadd.f32 %v1101_v54, %v934_v38  ;;  %v1103_v57 = vpop.f32.mrb[6].mxu0  ;;  %1272 = vst [vmem:[%s2404_s10 + $0x10] sm:$0xff] %v1059_v58  ;;  %v1063_v63 = vpop.f32.mrb[3].mxu1 }
 0x19d   : > { %1274 = vst [vmem:[%s2404_s10 + $0x20] sm:$0xff] %v1100_v48  ;;  %v1104_v60 = vpop.f32.mrb[7].mxu0  ;;  %1273 = vst [vmem:[%s2404_s10 + $0x18] sm:$0xff] %v1061_v40 }
 0x19e   : > { %1275 = vst [vmem:[%s2404_s10 + $0x28] sm:$0xff] %v1102_v46 }
 0x1b1   : > { %v1140_v8 = vpop.f32.mrb[4].mxu1 }
 0x1b2   : > { %v1181_v2 = vpop.f32.mrb[8].mxu0  ;;  %v1141_v53 = vadd.f32 %v1140_v8, %v934_v38  ;;  %v1142_v10 = vpop.f32.mrb[5].mxu1 }
 0x1b3   : > { %v1182_v5 = vadd.f32 %v1181_v2, %v934_v38  ;;  %v1183_v6 = vpop.f32.mrb[9].mxu0  ;;  %v1143_v13 = vadd.f32 %v1142_v10, %v934_v38  ;;  %v1144_v50 = vpop.f32.mrb[6].mxu1 }
 0x1b4   : > { %v1184_v9 = vadd.f32 %v1183_v6, %v934_v38  ;;  %v1185_v51 = vpop.f32.mrb[10].mxu0  ;;  %1276 = vst [vmem:[%s2404_s10 + $0x30] sm:$0xff] %v1141_v53  ;;  %v1145_v52 = vpop.f32.mrb[7].mxu1 }
 0x1b5   : > { %1278 = vst [vmem:[%s2404_s10 + $0x40] sm:$0xff] %v1182_v5  ;;  %v1186_v11 = vpop.f32.mrb[11].mxu0  ;;  %1277 = vst [vmem:[%s2404_s10 + $0x38] sm:$0xff] %v1143_v13 }
 0x1b6   : > { %1279 = vst [vmem:[%s2404_s10 + $0x48] sm:$0xff] %v1184_v9 }
 0x1c9   : > { %v1222_v49 = vpop.f32.mrb[8].mxu1 }
 0x1ca   : > { %v1263_v45 = vpop.f32.mrb[12].mxu0  ;;  %v1223_v0 = vadd.f32 %v1222_v49, %v934_v38  ;;  %v1224_v1 = vpop.f32.mrb[9].mxu1 }
 0x1cb   : > { %v1264_v14 = vadd.f32 %v1263_v45, %v934_v38  ;;  %v1265_v15 = vpop.f32.mrb[13].mxu0  ;;  %v1225_v3 = vadd.f32 %v1224_v1, %v934_v38  ;;  %v1226_v61 = vpop.f32.mrb[10].mxu1 }
 0x1cc   : > { %v1266_v25 = vadd.f32 %v1265_v15, %v934_v38  ;;  %v1267_v26 = vpop.f32.mrb[14].mxu0  ;;  %1280 = vst [vmem:[%s2404_s10 + $0x50] sm:$0xff] %v1223_v0  ;;  %v1227_v27 = vpop.f32.mrb[11].mxu1 }
 0x1cd   : > { %1282 = vst [vmem:[%s2404_s10 + $0x60] sm:$0xff] %v1264_v14  ;;  %v1268_v4 = vpop.f32.mrb[15].mxu0  ;;  %1281 = vst [vmem:[%s2404_s10 + $0x58] sm:$0xff] %v1225_v3 }
 0x1ce   : > { %1283 = vst [vmem:[%s2404_s10 + $0x68] sm:$0xff] %v1266_v25 }
 0x1cf   : > { %1692 = shalt.err (!%p1689_p3)
}
 0x1d0   : > { %s1693_s29 = scalar_lea.hbm %s2422_s20, 1792  ;;  %s1697_s5 = scalar_lea.hbm %s2472_s3, 3584 }
 0x1d1   : > { %p1694_p4 = scmp.ne.s32.totalorder %s2422_s20, %s1693_s29  ;;  %p1698_p9 = scmp.lt.u32.totalorder %s2422_s20, %s2472_s3 }
 0x1d2   : > { %p1699_p10 = scmp.lt.u32.totalorder %s1697_s5, %s1693_s29  ;;  %p1701_p12 = scmp.lt.u32.totalorder %s1693_s29, %s2422_s20 }
 0x1d3   : > { %p1695_p7 = pnand %p1694_p4, %p1806_p5 }
 0x1d4   : > { %p1700_p11 = por %p1699_p10, %p1698_p9 }
 0x1d5   : > { %p1696_p8 = pneg %p1695_p7 }
 0x1d6   : > { %p1702_p13 = por %p1701_p12, %p1700_p11 }
 0x1d8   : > { %p1703_p0 = pnand %p1702_p13, %p1696_p8 }
 0x1da   : > { %1706 = shalt.err (!%p1703_p0)
}
 0x1db   : > { %1425 = dma.vmem_to_hbm [thread:$0]  (%p1806_p5), %s2424_s17, 1792, %s2422_s20, %s1285_s24  }
 0x1dc PF: > { %p1431_p1 = scmp.ge.s32.totalorder %s1741_s15, 2  ;;  %s1311_s8 = sand.u32 1, %s1729_s12  }
 0x1dd   : > { %s1312_s9 = scalar_lea.sflag [#allocation4], %s1311_s8 }
 0x1de   : > { %p1428_p2 = pnand %p1431_p1, %p1810_p6 }
 0x1e0   : > { %1724 = dma.done.wait (!%p1428_p2), %s1312_s9, 1792  }
 0x1e1   : > { %1726 = vsyncadd (!%p1428_p2), %s1312_s9, 4294965504  ;;  %p13_p3 = scmp.ge.s32.totalorder %s1793_s18, 4   ;;  %s2475_s12 = smov %s1733_s13 }
 0x1e2   : > { %s2476_s13 = smov %s1737_s14  ;;  %s2477_s14 = smov %s1804_s21 }
 0x1e3   : > { %s2478_s15 = smov %s1793_s18  ;;  %15 = sbr.rel (!%p13_p3) target bundleno = 3 (0x3), region = 82 }
 0x1ea   :  { %1317 = vsyncpa [#allocation4], 1 }
 0x1eb   :  { %1319 = vsyncpa [#allocation4 + $0x1], 1 }

</bundles_post_ra>
